<compile_context>
chip_gen: v7x
topology: tpu7x:2x2x1
jax: 0.10.0
libtpu: 0.0.40
codegen_flags: <defaults>
</compile_context>

<pallas_src>
import functools
import math

import jax
import jax.numpy as jnp
from jax.experimental import pallas as pl
from jax.experimental.pallas import tpu as pltpu


# ----------------------------------------------------------------------------
# helpers
# ----------------------------------------------------------------------------
def _round_up(x, m):
    return ((x + m - 1) // m) * m


def _activate(x, act, neg_slope):
    if act == "leaky":
        return jnp.where(x > 0.0, x, x * neg_slope)
    if act == "relu":
        return jnp.maximum(x, 0.0)
    if act == "sigmoid":
        return jax.nn.sigmoid(x)
    if act == "tanh":
        return jnp.tanh(x)
    return x


# ----------------------------------------------------------------------------
# Pallas kernel 1: single fused GEMM + bias + activation.
#   x_ref: (TM, K) compute dtype, w_ref: (K, N) compute dtype (resident),
#   b_ref: (1, N) f32 (resident), o_ref: (TM, N) f32.
# ----------------------------------------------------------------------------
def _gemm_bias_act_kernel(x_ref, w_ref, b_ref, o_ref, *, act, neg_slope):
    acc = jnp.dot(x_ref[...], w_ref[...], preferred_element_type=jnp.float32)
    acc = acc + b_ref[...]
    o_ref[...] = _activate(acc, act, neg_slope).astype(o_ref.dtype)


def _fused_tap_gemm(xp, w_taps, b, act, neg_slope, compute_dtype):
    """Stride-1 'valid' conv as ONE fused GEMM per layer.

    xp: (B, Hp, Wp, Cg) zero-padded NHWC input.
    w_taps: (A, A, Cg, Ce) taps.  Returns (B, Hp-A+1, Wp-A+1, Ce) float32.

    Lane-dense packing: g = 128 // Ce consecutive output columns share one GEMM
    row.  The LHS row holds the A x (A+g-1) window covering all g positions and
    the RHS holds g column-shifted copies of the taps, so the output row is
    g*Ce (>=120) lanes wide and K = A*(A+g-1)*Cg fills the MXU depth.
    """
    B, Hp, Wp, Cg = xp.shape
    A = w_taps.shape[0]
    Ce = w_taps.shape[-1]
    assert w_taps.shape[:3] == (A, A, Cg)
    OH = Hp - A + 1
    OW = Wp - A + 1

    g = max(1, min(128 // Ce, OW)) if Ce < 128 else 1
    OW_pad = _round_up(OW, g)
    if OW_pad > OW:                       # junk columns (read zero pad, cropped below)
        xp = jnp.pad(xp, ((0, 0), (0, 0), (0, OW_pad - OW), (0, 0)))
    OW_g = OW_pad // g
    W_win = A + g - 1
    K = A * W_win * Cg
    N = g * Ce

    # --- wrapper-side im2col with the shared g-column window (casts early so the
    #     layout ops move bf16 bytes when bf16 is enabled) ---------------------
    xp = xp.astype(compute_dtype)
    xr = jnp.stack([xp[:, a:a + OH, :, :] for a in range(A)], axis=3)  # (B,OH,Wp',A,Cg)
    span = (OW_g - 1) * g + 1
    lhs = jnp.stack([xr[:, :, bb:bb + span:g, :, :] for bb in range(W_win)],
                    axis=4)                                            # (B,OH,OW_g,A,W_win,Cg)
    M_tot = B * OH * OW_g
    lhs = lhs.reshape(M_tot, K)

    # --- RHS: g column-shifted copies of the taps -> (K, g*Ce) ---------------
    rhs = jnp.stack(
        [jnp.pad(w_taps, ((0, 0), (dj, g - 1 - dj), (0, 0), (0, 0))) for dj in range(g)],
        axis=3)                                                        # (A,W_win,Cg,g,Ce)
    rhs = rhs.reshape(K, N).astype(compute_dtype)
    bias = jnp.tile(b.astype(jnp.float32), g).reshape(1, N)

    # --- M tiling: batch folded in, 1-D "parallel" grid, 16-row alignment ----
    nt = max(1, -(-M_tot // 256))
    TM = _round_up(-(-M_tot // nt), 16)
    M_pad = nt * TM
    if M_pad > M_tot:
        lhs = jnp.pad(lhs, ((0, M_pad - M_tot), (0, 0)))

    itemsize = jnp.dtype(compute_dtype).itemsize
    cost = pl.CostEstimate(
        flops=2 * M_pad * K * N,
        transcendentals=0,
        bytes_accessed=(M_pad * K + K * N) * itemsize + (M_pad * N + N) * 4)

    kernel = functools.partial(_gemm_bias_act_kernel, act=act, neg_slope=neg_slope)
    out = pl.pallas_call(
        kernel,
        out_shape=jax.ShapeDtypeStruct((M_pad, N), jnp.float32),
        grid=(nt,),
        in_specs=[pl.BlockSpec((TM, K), lambda i: (i, 0)),
                  pl.BlockSpec((K, N), lambda i: (0, 0)),     # weights resident
                  pl.BlockSpec((1, N), lambda i: (0, 0))],    # bias resident
        out_specs=pl.BlockSpec((TM, N), lambda i: (i, 0)),
        compiler_params=pltpu.CompilerParams(dimension_semantics=("parallel",)),
        cost_estimate=cost,
    )(lhs, rhs, bias)

    out = out[:M_tot].reshape(B, OH, OW_g, g, Ce).reshape(B, OH, OW_pad, Ce)
    return out[:, :, :OW, :]


# ----------------------------------------------------------------------------
# stride-2 Conv2d = space-to-depth + stride-1 tap conv
# ----------------------------------------------------------------------------
def conv2d_s2(x, w_oihw, b, padding, act, neg_slope=0.01, compute_dtype=jnp.float32):
    """x: (B,H,W,Cin) NHWC.  w: (Cout,Cin,k,k) torch Conv2d layout.  stride=2."""
    B, H, W, Cin = x.shape
    Cout, Cin_w, k, _ = w_oihw.shape
    assert Cin == Cin_w
    Hp, Wp = H + 2 * padding, W + 2 * padding
    assert Hp % 2 == 0 and Wp % 2 == 0
    A = (k + 1) // 2

    xp = jnp.pad(x, ((0, 0), (padding, padding), (padding, padding), (0, 0)))
    xs = xp.reshape(B, Hp // 2, 2, Wp // 2, 2, Cin)
    xs = xs.transpose(0, 1, 3, 2, 4, 5).reshape(B, Hp // 2, Wp // 2, 4 * Cin)

    w_t = jnp.transpose(w_oihw, (2, 3, 1, 0))                    # (k,k,Cin,Cout)
    w_t = jnp.pad(w_t, ((0, 2 * A - k), (0, 2 * A - k), (0, 0), (0, 0)))
    w2 = w_t.reshape(A, 2, A, 2, Cin, Cout).transpose(0, 2, 1, 3, 4, 5)
    w2 = w2.reshape(A, A, 4 * Cin, Cout)

    return _fused_tap_gemm(xs, w2, b, act, neg_slope, compute_dtype)


# ----------------------------------------------------------------------------
# stride-2 ConvTranspose2d = sub-pixel stride-1 tap conv (4*Cout parity
# channels) + depth-to-space + crop.  No zero-dilated input.
# ----------------------------------------------------------------------------
def conv_transpose2d_s2(x, w_iohw, b, padding, output_padding, act,
                        neg_slope=0.01, compute_dtype=jnp.float32):
    """x: (B,H,W,Cin) NHWC.  w: (Cin,Cout,k,k) torch ConvTranspose2d layout."""
    B, H, W, Cin = x.shape
    Cin_w, Cout, k, _ = w_iohw.shape
    assert Cin == Cin_w
    A = (k + 1) // 2
    outH = (H - 1) * 2 - 2 * padding + k + output_padding
    outW = (W - 1) * 2 - 2 * padding + k + output_padding
    max_u = (padding + outH - 1) // 2
    max_v = (padding + outW - 1) // 2
    pad_b = max(0, max_u + 1 - H)
    pad_r = max(0, max_v + 1 - W)

    xp = jnp.pad(x, ((0, 0), (A - 1, pad_b), (A - 1, pad_r), (0, 0)))

    # Wbig[a',b',cin,(ry*2+rx)*Cout+cout] = W[cin,cout, 2*(A-1-a')+ry, 2*(A-1-b')+rx]
    w_t = jnp.transpose(w_iohw, (2, 3, 0, 1))                    # (k,k,Cin,Cout)
    w_t = jnp.pad(w_t, ((0, 2 * A - k), (0, 2 * A - k), (0, 0), (0, 0)))
    w6 = w_t.reshape(A, 2, A, 2, Cin, Cout)[::-1, :, ::-1, :, :, :]
    wbig = w6.transpose(0, 2, 4, 1, 3, 5).reshape(A, A, Cin, 4 * Cout)
    b_big = jnp.tile(b, 4)

    y = _fused_tap_gemm(xp, wbig, b_big, act, neg_slope, compute_dtype)  # (B,U,V,4*Cout)
    _, U, V, _ = y.shape
    y = y.reshape(B, U, V, 2, 2, Cout).transpose(0, 1, 3, 2, 4, 5)
    y = y.reshape(B, 2 * U, 2 * V, Cout)
    return y[:, padding:padding + outH, padding:padding + outW, :]


# ----------------------------------------------------------------------------
# Pallas kernel 2: fused head (flatten -> embedding -> clustering -> deembedding)
# ----------------------------------------------------------------------------
def _head_kernel(flat_ref, ew_ref, eb_ref, cw_ref, dw_ref, db_ref,
                 emb_ref, clu_ref, dec_ref, *, alpha, neg_slope):
    flat = flat_ref[...]
    emb = jnp.dot(flat, ew_ref[...], preferred_element_type=jnp.float32) + eb_ref[...]
    emb_ref[...] = emb

    # Student-t soft assignment (ClusterlingLayer)
    wT = cw_ref[...]                                            # (in, out) = weight.T
    xsq = jnp.sum(emb * emb, axis=1, keepdims=True)
    wsq = jnp.sum(wT * wT, axis=0, keepdims=True)
    xw = jnp.dot(emb, wT, preferred_element_type=jnp.float32)
    dist = jnp.maximum(xsq + wsq - 2.0 * xw, 0.0)
    q = pl.reciprocal(1.0 + dist / alpha, approx=True)
    p = (alpha + 1.0) / 2.0
    if p != 1.0:
        q = q ** p
    # exact divide for the normalization so rows sum to 1 (per review).
    clu_ref[...] = q / jnp.sum(q, axis=1, keepdims=True)

    dec = jnp.dot(emb, dw_ref[...], preferred_element_type=jnp.float32) + db_ref[...]
    dec_ref[...] = jnp.where(dec > 0.0, dec, dec * neg_slope)


def head_forward(flat, emb_w, emb_b, clust_w, deemb_w, deemb_b,
                 alpha=1.0, neg_slope=0.01):
    B, Lf = flat.shape
    nc = emb_w.shape[1]
    kernel = functools.partial(_head_kernel, alpha=alpha, neg_slope=neg_slope)
    vspec = lambda: pl.BlockSpec(memory_space=pltpu.MemorySpace.VMEM)
    emb, clu, dec = pl.pallas_call(
        kernel,
        out_shape=(jax.ShapeDtypeStruct((B, nc), jnp.float32),
                   jax.ShapeDtypeStruct((B, nc), jnp.float32),
                   jax.ShapeDtypeStruct((B, Lf), jnp.float32)),
        in_specs=[vspec() for _ in range(6)],
        out_specs=(vspec(), vspec(), vspec()),
    )(flat.astype(jnp.float32),
      emb_w.astype(jnp.float32), emb_b.reshape(1, nc).astype(jnp.float32),
      jnp.transpose(clust_w).astype(jnp.float32),
      deemb_w.astype(jnp.float32), deemb_b.reshape(1, Lf).astype(jnp.float32))
    return emb, clu, dec


# ----------------------------------------------------------------------------
# CAE_5 parameters (deterministic synthetic) and forward
# ----------------------------------------------------------------------------
def init_params(key, input_shape, filters, num_clusters):
    H = input_shape[0]
    Cimg = input_shape[2]
    s5 = (H // 16 - 1) // 2
    lin_features_len = s5 * s5 * filters[4]

    def uinit(k, shape, fan_in):
        bound = 1.0 / math.sqrt(fan_in)
        return jax.random.uniform(k, shape, jnp.float32, -bound, bound)

    keys = jax.random.split(key, 32)
    ki = iter(range(32))
    p = {}
    conv_defs = [
        ("conv1", filters[0], Cimg, 5),
        ("conv2", filters[1], filters[0], 5),
        ("conv3", filters[2], filters[1], 5),
        ("conv4", filters[3], filters[2], 5),
        ("conv5", filters[4], filters[3], 3),
    ]
    for name, co, ci, k in conv_defs:
        fan_in = ci * k * k
        p[name + "_w"] = uinit(keys[next(ki)], (co, ci, k, k), fan_in)
        p[name + "_b"] = uinit(keys[next(ki)], (co,), fan_in)

    p["emb_w"] = uinit(keys[next(ki)], (lin_features_len, num_clusters), lin_features_len)
    p["emb_b"] = uinit(keys[next(ki)], (num_clusters,), lin_features_len)
    p["deemb_w"] = uinit(keys[next(ki)], (num_clusters, lin_features_len), num_clusters)
    p["deemb_b"] = uinit(keys[next(ki)], (lin_features_len,), num_clusters)

    deconv_defs = [
        ("deconv5", filters[4], filters[3], 3),
        ("deconv4", filters[3], filters[2], 5),
        ("deconv3", filters[2], filters[1], 5),
        ("deconv2", filters[1], filters[0], 5),
        ("deconv1", filters[0], Cimg, 5),
    ]
    for name, ci, co, k in deconv_defs:
        fan_in = ci * k * k
        p[name + "_w"] = uinit(keys[next(ki)], (ci, co, k, k), fan_in)  # torch layout
        p[name + "_b"] = uinit(keys[next(ki)], (co,), fan_in)

    bound = math.sqrt(6.0 / (num_clusters + num_clusters))
    p["clust_w"] = jax.random.uniform(keys[next(ki)], (num_clusters, num_clusters),
                                      jnp.float32, -bound, bound)
    return p


def cae5_forward(params, x_nchw, input_shape, filters, num_clusters,
                 neg_slope=0.01, activations=False, alpha=1.0, use_bf16=True):
    H = input_shape[0]
    s5 = (H // 16 - 1) // 2
    B = x_nchw.shape[0]
    cdt = jnp.bfloat16 if use_bf16 else jnp.float32

    x = jnp.transpose(x_nchw, (0, 2, 3, 1)).astype(jnp.float32)   # NCHW -> NHWC

    # TODO(synk): fuse the tiny middle layers (conv3..conv5 + head + deconv5..deconv4)
    # into one pallas_call with VMEM-resident intermediates and in-kernel s2d/d2s to
    # remove the remaining per-layer launch + HBM round-trips.
    x = conv2d_s2(x, params["conv1_w"], params["conv1_b"], 2, "leaky", neg_slope, cdt)
    x = conv2d_s2(x, params["conv2_w"], params["conv2_b"], 2, "leaky", neg_slope, cdt)
    x = conv2d_s2(x, params["conv3_w"], params["conv3_b"], 2, "leaky", neg_slope, cdt)
    x = conv2d_s2(x, params["conv4_w"], params["conv4_b"], 2, "leaky", neg_slope, cdt)
    act5 = "sigmoid" if activations else "leaky"
    x = conv2d_s2(x, params["conv5_w"], params["conv5_b"], 0, act5, neg_slope, cdt)

    # Flatten in NCHW order to match torch's x.view(B, -1).
    flat = jnp.transpose(x, (0, 3, 1, 2)).reshape(B, -1)

    emb, clustering_out, dec = head_forward(
        flat, params["emb_w"], params["emb_b"], params["clust_w"],
        params["deemb_w"], params["deemb_b"], alpha, neg_slope)
    extra_out = emb

    x = dec.reshape(B, filters[4], s5, s5)
    x = jnp.transpose(x, (0, 2, 3, 1))                             # -> NHWC

    op = 1 if (H // 16) % 2 == 0 else 0
    x = conv_transpose2d_s2(x, params["deconv5_w"], params["deconv5_b"], 0, op,
                            "leaky", neg_slope, cdt)
    op = 1 if (H // 8) % 2 == 0 else 0
    x = conv_transpose2d_s2(x, params["deconv4_w"], params["deconv4_b"], 2, op,
                            "leaky", neg_slope, cdt)
    op = 1 if (H // 4) % 2 == 0 else 0
    x = conv_transpose2d_s2(x, params["deconv3_w"], params["deconv3_b"], 2, op,
                            "leaky", neg_slope, cdt)
    op = 1 if (H // 2) % 2 == 0 else 0
    x = conv_transpose2d_s2(x, params["deconv2_w"], params["deconv2_b"], 2, op,
                            "leaky", neg_slope, cdt)
    op = 1 if H % 2 == 0 else 0
    act1 = "tanh" if activations else "none"
    x = conv_transpose2d_s2(x, params["deconv1_w"], params["deconv1_b"], 2, op,
                            act1, neg_slope, cdt)

    x_out = jnp.transpose(x, (0, 3, 1, 2))                         # NHWC -> NCHW
    return x_out, clustering_out, extra_out


# ----------------------------------------------------------------------------
# Pure-JAX (XLA) reference for correctness checking
# ----------------------------------------------------------------------------
def reference_forward(params, x_nchw, input_shape, filters, num_clusters,
                      neg_slope=0.01, activations=False, alpha=1.0):
    H = input_shape[0]
    s5 = (H // 16 - 1) // 2
    B = x_nchw.shape[0]
    dn = ("NCHW", "OIHW", "NCHW")

    def lk(v):
        return jnp.where(v > 0.0, v, v * neg_slope)

    def conv(x, w, b, stride, pad):
        y = jax.lax.conv_general_dilated(x, w, (stride, stride),
                                         [(pad, pad), (pad, pad)],
                                         dimension_numbers=dn)
        return y + b.reshape(1, -1, 1, 1)

    def deconv(x, w_iohw, b, pad, op):
        k = w_iohw.shape[2]
        w_conv = jnp.transpose(w_iohw, (1, 0, 2, 3))[:, :, ::-1, ::-1]
        y = jax.lax.conv_general_dilated(
            x, w_conv, (1, 1),
            [(k - 1 - pad, k - 1 - pad + op), (k - 1 - pad, k - 1 - pad + op)],
            lhs_dilation=(2, 2), dimension_numbers=dn)
        return y + b.reshape(1, -1, 1, 1)

    x = x_nchw.astype(jnp.float32)
    x = lk(conv(x, params["conv1_w"], params["conv1_b"], 2, 2))
    x = lk(conv(x, params["conv2_w"], params["conv2_b"], 2, 2))
    x = lk(conv(x, params["conv3_w"], params["conv3_b"], 2, 2))
    x = lk(conv(x, params["conv4_w"], params["conv4_b"], 2, 2))
    x = conv(x, params["conv5_w"], params["conv5_b"], 2, 0)
    x = jax.nn.sigmoid(x) if activations else lk(x)
    flat = x.reshape(B, -1)
    emb = flat @ params["emb_w"] + params["emb_b"]
    diff = emb[:, None, :] - params["clust_w"][None, :, :]
    dist = jnp.sum(diff * diff, axis=2)
    q = 1.0 / (1.0 + dist / alpha)
    q = q ** ((alpha + 1.0) / 2.0)
    clu = q / jnp.sum(q, axis=1, keepdims=True)
    x = lk(emb @ params["deemb_w"] + params["deemb_b"])
    x = x.reshape(B, filters[4], s5, s5)
    op = 1 if (H // 16) % 2 == 0 else 0
    x = lk(deconv(x, params["deconv5_w"], params["deconv5_b"], 0, op))
    op = 1 if (H // 8) % 2 == 0 else 0
    x = lk(deconv(x, params["deconv4_w"], params["deconv4_b"], 2, op))
    op = 1 if (H // 4) % 2 == 0 else 0
    x = lk(deconv(x, params["deconv3_w"], params["deconv3_b"], 2, op))
    op = 1 if (H // 2) % 2 == 0 else 0
    x = lk(deconv(x, params["deconv2_w"], params["deconv2_b"], 2, op))
    op = 1 if H % 2 == 0 else 0
    x = deconv(x, params["deconv1_w"], params["deconv1_b"], 2, op)
    if activations:
        x = jnp.tanh(x)
    return x, clu, emb


# ----------------------------------------------------------------------------
if __name__ == "__main__":
    # Small but architecture-consistent configuration (H multiple of 16, >= 48).
    input_shape = [64, 64, 3]
    filters = [8, 16, 32, 32, 64]
    num_clusters = 10
    batch = 2

    key = jax.random.PRNGKey(0)
    kx, kp = jax.random.split(key)
    x = jax.random.normal(kx, (batch, input_shape[2], input_shape[0], input_shape[1]),
                          jnp.float32)
    params = init_params(kp, input_shape, filters, num_clusters)

    fwd_fast = jax.jit(functools.partial(cae5_forward, input_shape=input_shape,
                                         filters=filters, num_clusters=num_clusters,
                                         use_bf16=True))
    fwd_f32 = jax.jit(functools.partial(cae5_forward, input_shape=input_shape,
                                        filters=filters, num_clusters=num_clusters,
                                        use_bf16=False))
    ref = jax.jit(functools.partial(reference_forward, input_shape=input_shape,
                                    filters=filters, num_clusters=num_clusters))

    # default (bf16 MXU inputs) path
    recon, clustering_out, extra_out = fwd_fast(params, x)
    jax.block_until_ready((recon, clustering_out, extra_out))
    # strict f32 path for numerical validation
    recon32, clu32, emb32 = fwd_f32(params, x)
    jax.block_until_ready((recon32, clu32, emb32))
    # XLA reference
    recon_r, clu_r, emb_r = ref(params, x)
    jax.block_until_ready((recon_r, clu_r, emb_r))

    assert recon.shape == (batch, input_shape[2], input_shape[0], input_shape[1])
    assert clustering_out.shape == (batch, num_clusters)
    assert extra_out.shape == (batch, num_clusters)

    # f32 kernel path vs. pure-JAX reference (tight)
    assert bool(jnp.allclose(emb32, emb_r, rtol=1e-3, atol=1e-3))
    assert bool(jnp.allclose(clu32, clu_r, rtol=0.0, atol=2e-2))
    assert bool(jnp.allclose(recon32, recon_r, rtol=2e-3, atol=2e-3))
    assert bool(jnp.allclose(jnp.sum(clu32, axis=1), 1.0, atol=1e-3))

    # default bf16 path: sanity (clustering rows exactly normalized; recon close)
    assert bool(jnp.isfinite(recon).all())
    assert bool(jnp.allclose(jnp.sum(clustering_out, axis=1), 1.0, atol=1e-3))
    assert bool(jnp.allclose(recon, recon_r, rtol=1.5e-1, atol=5e-2))

    print("KERNEL_OK")
</pallas_src>

<mosaic_0001>
module attributes {stable_mosaic.version = 11 : i64} {
  func.func @_gemm_bias_act_kernel(%arg0: i32, %arg1: memref<128x648xbf16, #tpu.memory_space<vmem>>, %arg2: memref<648x128xbf16, #tpu.memory_space<vmem>>, %arg3: memref<1x128xf32, #tpu.memory_space<vmem>>, %arg4: memref<128x128xf32, #tpu.memory_space<vmem>>) attributes {dimension_semantics = [#tpu.dimension_semantics<parallel>], iteration_bounds = array<i64: 1>, scalar_prefetch = 0 : i64, scratch_operands = 0 : i64, tpu.core_type = #tpu.core_type<tc>, window_params = [{transform_indices = @transform_0, window_bounds = array<i64: 128, 648>}, {pipeline_mode = #tpu.pipeline_mode<synchronous>, transform_indices = @transform_1, window_bounds = array<i64: 648, 128>}, {pipeline_mode = #tpu.pipeline_mode<synchronous>, transform_indices = @transform_2, window_bounds = array<i64: 1, 128>}, {transform_indices = @transform_3, window_bounds = array<i64: 128, 128>}]} {
    %c0 = arith.constant 0 : index
    %c0_0 = arith.constant 0 : index
    %0 = vector.load %arg1[%c0, %c0_0] : memref<128x648xbf16, #tpu.memory_space<vmem>>, vector<128x648xbf16>
    %c0_1 = arith.constant 0 : index
    %c0_2 = arith.constant 0 : index
    %1 = vector.load %arg2[%c0_1, %c0_2] : memref<648x128xbf16, #tpu.memory_space<vmem>>, vector<648x128xbf16>
    %cst = arith.constant dense<0.000000e+00> : vector<128x128xf32>
    %2 = tpu.matmul %0, %1, %cst {dimension_numbers = #tpu.dot_dimension_numbers<[1], [0], [0], [1], [0, 0, 1, 1], [], []>} : vector<128x648xbf16>, vector<648x128xbf16>, vector<128x128xf32> -> vector<128x128xf32>
    %c0_3 = arith.constant 0 : index
    %c0_4 = arith.constant 0 : index
    %3 = vector.load %arg3[%c0_3, %c0_4] : memref<1x128xf32, #tpu.memory_space<vmem>>, vector<1x128xf32>
    %4 = vector.broadcast %3 : vector<1x128xf32> to vector<128x128xf32>
    %5 = arith.addf %2, %4 : vector<128x128xf32>
    %cst_5 = arith.constant 0.000000e+00 : f32
    %6 = vector.broadcast %cst_5 : f32 to vector<128x128xf32>
    %7 = arith.cmpf ogt, %5, %6 : vector<128x128xf32>
    %cst_6 = arith.constant 0.00999999977 : f32
    %8 = vector.broadcast %cst_6 : f32 to vector<128x128xf32>
    %9 = arith.mulf %5, %8 : vector<128x128xf32>
    %10 = arith.select %7, %5, %9 : vector<128x128xi1>, vector<128x128xf32>
    %c0_7 = arith.constant 0 : index
    %c0_8 = arith.constant 0 : index
    %11 = vector.load %arg4[%c0_7, %c0_8] : memref<128x128xf32, #tpu.memory_space<vmem>>, vector<128x128xf32>
    tpu.vector_store %arg4[%c0_7, %c0_8], %10 {strides = array<i32>} : memref<128x128xf32, #tpu.memory_space<vmem>>, vector<128x128xf32>,
    return
  }
  func.func @transform_0(%arg0: i32) -> (i32, i32) {
    %c0_i32 = arith.constant 0 : i32
    %c0_i32_0 = arith.constant 0 : i32
    return %arg0, %c0_i32 : i32, i32
  }
  func.func @transform_1(%arg0: i32) -> (i32, i32) {
    %c0_i32 = arith.constant 0 : i32
    %c0_i32_0 = arith.constant 0 : i32
    %c0_i32_1 = arith.constant 0 : i32
    return %c0_i32, %c0_i32_0 : i32, i32
  }
  func.func @transform_2(%arg0: i32) -> (i32, i32) {
    %c0_i32 = arith.constant 0 : i32
    %c0_i32_0 = arith.constant 0 : i32
    %c0_i32_1 = arith.constant 0 : i32
    return %c0_i32, %c0_i32_0 : i32, i32
  }
  func.func @transform_3(%arg0: i32) -> (i32, i32) {
    %c0_i32 = arith.constant 0 : i32
    %c0_i32_0 = arith.constant 0 : i32
    return %arg0, %c0_i32 : i32, i32
  }
}

module attributes {stable_mosaic.version = 11 : i64} {
  func.func @_gemm_bias_act_kernel(%arg0: i32, %arg1: memref<64x960xbf16, #tpu.memory_space<vmem>>, %arg2: memref<960x128xbf16, #tpu.memory_space<vmem>>, %arg3: memref<1x128xf32, #tpu.memory_space<vmem>>, %arg4: memref<64x128xf32, #tpu.memory_space<vmem>>) attributes {dimension_semantics = [#tpu.dimension_semantics<parallel>], iteration_bounds = array<i64: 1>, scalar_prefetch = 0 : i64, scratch_operands = 0 : i64, tpu.core_type = #tpu.core_type<tc>, window_params = [{transform_indices = @transform_0, window_bounds = array<i64: 64, 960>}, {pipeline_mode = #tpu.pipeline_mode<synchronous>, transform_indices = @transform_1, window_bounds = array<i64: 960, 128>}, {pipeline_mode = #tpu.pipeline_mode<synchronous>, transform_indices = @transform_2, window_bounds = array<i64: 1, 128>}, {transform_indices = @transform_3, window_bounds = array<i64: 64, 128>}]} {
    %c0 = arith.constant 0 : index
    %c0_0 = arith.constant 0 : index
    %0 = vector.load %arg1[%c0, %c0_0] : memref<64x960xbf16, #tpu.memory_space<vmem>>, vector<64x960xbf16>
    %c0_1 = arith.constant 0 : index
    %c0_2 = arith.constant 0 : index
    %1 = vector.load %arg2[%c0_1, %c0_2] : memref<960x128xbf16, #tpu.memory_space<vmem>>, vector<960x128xbf16>
    %cst = arith.constant dense<0.000000e+00> : vector<64x128xf32>
    %2 = tpu.matmul %0, %1, %cst {dimension_numbers = #tpu.dot_dimension_numbers<[1], [0], [0], [1], [0, 0, 1, 1], [], []>} : vector<64x960xbf16>, vector<960x128xbf16>, vector<64x128xf32> -> vector<64x128xf32>
    %c0_3 = arith.constant 0 : index
    %c0_4 = arith.constant 0 : index
    %3 = vector.load %arg3[%c0_3, %c0_4] : memref<1x128xf32, #tpu.memory_space<vmem>>, vector<1x128xf32>
    %4 = vector.broadcast %3 : vector<1x128xf32> to vector<64x128xf32>
    %5 = arith.addf %2, %4 : vector<64x128xf32>
    %cst_5 = arith.constant 0.000000e+00 : f32
    %6 = vector.broadcast %cst_5 : f32 to vector<64x128xf32>
    %7 = arith.cmpf ogt, %5, %6 : vector<64x128xf32>
    %cst_6 = arith.constant 0.00999999977 : f32
    %8 = vector.broadcast %cst_6 : f32 to vector<64x128xf32>
    %9 = arith.mulf %5, %8 : vector<64x128xf32>
    %10 = arith.select %7, %5, %9 : vector<64x128xi1>, vector<64x128xf32>
    %c0_7 = arith.constant 0 : index
    %c0_8 = arith.constant 0 : index
    %11 = vector.load %arg4[%c0_7, %c0_8] : memref<64x128xf32, #tpu.memory_space<vmem>>, vector<64x128xf32>
    tpu.vector_store %arg4[%c0_7, %c0_8], %10 {strides = array<i32>} : memref<64x128xf32, #tpu.memory_space<vmem>>, vector<64x128xf32>,
    return
  }
  func.func @transform_0(%arg0: i32) -> (i32, i32) {
    %c0_i32 = arith.constant 0 : i32
    %c0_i32_0 = arith.constant 0 : i32
    return %arg0, %c0_i32 : i32, i32
  }
  func.func @transform_1(%arg0: i32) -> (i32, i32) {
    %c0_i32 = arith.constant 0 : i32
    %c0_i32_0 = arith.constant 0 : i32
    %c0_i32_1 = arith.constant 0 : i32
    return %c0_i32, %c0_i32_0 : i32, i32
  }
  func.func @transform_2(%arg0: i32) -> (i32, i32) {
    %c0_i32 = arith.constant 0 : i32
    %c0_i32_0 = arith.constant 0 : i32
    %c0_i32_1 = arith.constant 0 : i32
    return %c0_i32, %c0_i32_0 : i32, i32
  }
  func.func @transform_3(%arg0: i32) -> (i32, i32) {
    %c0_i32 = arith.constant 0 : i32
    %c0_i32_0 = arith.constant 0 : i32
    return %arg0, %c0_i32 : i32, i32
  }
}

module attributes {stable_mosaic.version = 11 : i64} {
  func.func @_gemm_bias_act_kernel(%arg0: i32, %arg1: memref<32x1152xbf16, #tpu.memory_space<vmem>>, %arg2: memref<1152x128xbf16, #tpu.memory_space<vmem>>, %arg3: memref<1x128xf32, #tpu.memory_space<vmem>>, %arg4: memref<32x128xf32, #tpu.memory_space<vmem>>) attributes {dimension_semantics = [#tpu.dimension_semantics<parallel>], iteration_bounds = array<i64: 1>, scalar_prefetch = 0 : i64, scratch_operands = 0 : i64, tpu.core_type = #tpu.core_type<tc>, window_params = [{transform_indices = @transform_0, window_bounds = array<i64: 32, 1152>}, {pipeline_mode = #tpu.pipeline_mode<synchronous>, transform_indices = @transform_1, window_bounds = array<i64: 1152, 128>}, {pipeline_mode = #tpu.pipeline_mode<synchronous>, transform_indices = @transform_2, window_bounds = array<i64: 1, 128>}, {transform_indices = @transform_3, window_bounds = array<i64: 32, 128>}]} {
    %c0 = arith.constant 0 : index
    %c0_0 = arith.constant 0 : index
    %0 = vector.load %arg1[%c0, %c0_0] : memref<32x1152xbf16, #tpu.memory_space<vmem>>, vector<32x1152xbf16>
    %c0_1 = arith.constant 0 : index
    %c0_2 = arith.constant 0 : index
    %1 = vector.load %arg2[%c0_1, %c0_2] : memref<1152x128xbf16, #tpu.memory_space<vmem>>, vector<1152x128xbf16>
    %cst = arith.constant dense<0.000000e+00> : vector<32x128xf32>
    %2 = tpu.matmul %0, %1, %cst {dimension_numbers = #tpu.dot_dimension_numbers<[1], [0], [0], [1], [0, 0, 1, 1], [], []>} : vector<32x1152xbf16>, vector<1152x128xbf16>, vector<32x128xf32> -> vector<32x128xf32>
    %c0_3 = arith.constant 0 : index
    %c0_4 = arith.constant 0 : index
    %3 = vector.load %arg3[%c0_3, %c0_4] : memref<1x128xf32, #tpu.memory_space<vmem>>, vector<1x128xf32>
    %4 = vector.broadcast %3 : vector<1x128xf32> to vector<32x128xf32>
    %5 = arith.addf %2, %4 : vector<32x128xf32>
    %cst_5 = arith.constant 0.000000e+00 : f32
    %6 = vector.broadcast %cst_5 : f32 to vector<32x128xf32>
    %7 = arith.cmpf ogt, %5, %6 : vector<32x128xf32>
    %cst_6 = arith.constant 0.00999999977 : f32
    %8 = vector.broadcast %cst_6 : f32 to vector<32x128xf32>
    %9 = arith.mulf %5, %8 : vector<32x128xf32>
    %10 = arith.select %7, %5, %9 : vector<32x128xi1>, vector<32x128xf32>
    %c0_7 = arith.constant 0 : index
    %c0_8 = arith.constant 0 : index
    %11 = vector.load %arg4[%c0_7, %c0_8] : memref<32x128xf32, #tpu.memory_space<vmem>>, vector<32x128xf32>
    tpu.vector_store %arg4[%c0_7, %c0_8], %10 {strides = array<i32>} : memref<32x128xf32, #tpu.memory_space<vmem>>, vector<32x128xf32>,
    return
  }
  func.func @transform_0(%arg0: i32) -> (i32, i32) {
    %c0_i32 = arith.constant 0 : i32
    %c0_i32_0 = arith.constant 0 : i32
    return %arg0, %c0_i32 : i32, i32
  }
  func.func @transform_1(%arg0: i32) -> (i32, i32) {
    %c0_i32 = arith.constant 0 : i32
    %c0_i32_0 = arith.constant 0 : i32
    %c0_i32_1 = arith.constant 0 : i32
    return %c0_i32, %c0_i32_0 : i32, i32
  }
  func.func @transform_2(%arg0: i32) -> (i32, i32) {
    %c0_i32 = arith.constant 0 : i32
    %c0_i32_0 = arith.constant 0 : i32
    %c0_i32_1 = arith.constant 0 : i32
    return %c0_i32, %c0_i32_0 : i32, i32
  }
  func.func @transform_3(%arg0: i32) -> (i32, i32) {
    %c0_i32 = arith.constant 0 : i32
    %c0_i32_0 = arith.constant 0 : i32
    return %arg0, %c0_i32 : i32, i32
  }
}

module attributes {stable_mosaic.version = 11 : i64} {
  func.func @_gemm_bias_act_kernel(%arg0: i32, %arg1: memref<16x2304xbf16, #tpu.memory_space<vmem>>, %arg2: memref<2304x128xbf16, #tpu.memory_space<vmem>>, %arg3: memref<1x128xf32, #tpu.memory_space<vmem>>, %arg4: memref<16x128xf32, #tpu.memory_space<vmem>>) attributes {dimension_semantics = [#tpu.dimension_semantics<parallel>], iteration_bounds = array<i64: 1>, scalar_prefetch = 0 : i64, scratch_operands = 0 : i64, tpu.core_type = #tpu.core_type<tc>, window_params = [{transform_indices = @transform_0, window_bounds = array<i64: 16, 2304>}, {pipeline_mode = #tpu.pipeline_mode<synchronous>, transform_indices = @transform_1, window_bounds = array<i64: 2304, 128>}, {pipeline_mode = #tpu.pipeline_mode<synchronous>, transform_indices = @transform_2, window_bounds = array<i64: 1, 128>}, {transform_indices = @transform_3, window_bounds = array<i64: 16, 128>}]} {
    %c0 = arith.constant 0 : index
    %c0_0 = arith.constant 0 : index
    %0 = vector.load %arg1[%c0, %c0_0] : memref<16x2304xbf16, #tpu.memory_space<vmem>>, vector<16x2304xbf16>
    %c0_1 = arith.constant 0 : index
    %c0_2 = arith.constant 0 : index
    %1 = vector.load %arg2[%c0_1, %c0_2] : memref<2304x128xbf16, #tpu.memory_space<vmem>>, vector<2304x128xbf16>
    %cst = arith.constant dense<0.000000e+00> : vector<16x128xf32>
    %2 = tpu.matmul %0, %1, %cst {dimension_numbers = #tpu.dot_dimension_numbers<[1], [0], [0], [1], [0, 0, 1, 1], [], []>} : vector<16x2304xbf16>, vector<2304x128xbf16>, vector<16x128xf32> -> vector<16x128xf32>
    %c0_3 = arith.constant 0 : index
    %c0_4 = arith.constant 0 : index
    %3 = vector.load %arg3[%c0_3, %c0_4] : memref<1x128xf32, #tpu.memory_space<vmem>>, vector<1x128xf32>
    %4 = vector.broadcast %3 : vector<1x128xf32> to vector<16x128xf32>
    %5 = arith.addf %2, %4 : vector<16x128xf32>
    %cst_5 = arith.constant 0.000000e+00 : f32
    %6 = vector.broadcast %cst_5 : f32 to vector<16x128xf32>
    %7 = arith.cmpf ogt, %5, %6 : vector<16x128xf32>
    %cst_6 = arith.constant 0.00999999977 : f32
    %8 = vector.broadcast %cst_6 : f32 to vector<16x128xf32>
    %9 = arith.mulf %5, %8 : vector<16x128xf32>
    %10 = arith.select %7, %5, %9 : vector<16x128xi1>, vector<16x128xf32>
    %c0_7 = arith.constant 0 : index
    %c0_8 = arith.constant 0 : index
    %11 = vector.load %arg4[%c0_7, %c0_8] : memref<16x128xf32, #tpu.memory_space<vmem>>, vector<16x128xf32>
    tpu.vector_store %arg4[%c0_7, %c0_8], %10 {strides = array<i32>} : memref<16x128xf32, #tpu.memory_space<vmem>>, vector<16x128xf32>,
    return
  }
  func.func @transform_0(%arg0: i32) -> (i32, i32) {
    %c0_i32 = arith.constant 0 : i32
    %c0_i32_0 = arith.constant 0 : i32
    return %arg0, %c0_i32 : i32, i32
  }
  func.func @transform_1(%arg0: i32) -> (i32, i32) {
    %c0_i32 = arith.constant 0 : i32
    %c0_i32_0 = arith.constant 0 : i32
    %c0_i32_1 = arith.constant 0 : i32
    return %c0_i32, %c0_i32_0 : i32, i32
  }
  func.func @transform_2(%arg0: i32) -> (i32, i32) {
    %c0_i32 = arith.constant 0 : i32
    %c0_i32_0 = arith.constant 0 : i32
    %c0_i32_1 = arith.constant 0 : i32
    return %c0_i32, %c0_i32_0 : i32, i32
  }
  func.func @transform_3(%arg0: i32) -> (i32, i32) {
    %c0_i32 = arith.constant 0 : i32
    %c0_i32_0 = arith.constant 0 : i32
    return %arg0, %c0_i32 : i32, i32
  }
}

module attributes {stable_mosaic.version = 11 : i64} {
  func.func @_gemm_bias_act_kernel(%arg0: i32, %arg1: memref<16x512xbf16, #tpu.memory_space<vmem>>, %arg2: memref<512x64xbf16, #tpu.memory_space<vmem>>, %arg3: memref<1x64xf32, #tpu.memory_space<vmem>>, %arg4: memref<16x64xf32, #tpu.memory_space<vmem>>) attributes {dimension_semantics = [#tpu.dimension_semantics<parallel>], iteration_bounds = array<i64: 1>, scalar_prefetch = 0 : i64, scratch_operands = 0 : i64, tpu.core_type = #tpu.core_type<tc>, window_params = [{transform_indices = @transform_0, window_bounds = array<i64: 16, 512>}, {pipeline_mode = #tpu.pipeline_mode<synchronous>, transform_indices = @transform_1, window_bounds = array<i64: 512, 64>}, {pipeline_mode = #tpu.pipeline_mode<synchronous>, transform_indices = @transform_2, window_bounds = array<i64: 1, 64>}, {transform_indices = @transform_3, window_bounds = array<i64: 16, 64>}]} {
    %c0 = arith.constant 0 : index
    %c0_0 = arith.constant 0 : index
    %0 = vector.load %arg1[%c0, %c0_0] : memref<16x512xbf16, #tpu.memory_space<vmem>>, vector<16x512xbf16>
    %c0_1 = arith.constant 0 : index
    %c0_2 = arith.constant 0 : index
    %1 = vector.load %arg2[%c0_1, %c0_2] : memref<512x64xbf16, #tpu.memory_space<vmem>>, vector<512x64xbf16>
    %cst = arith.constant dense<0.000000e+00> : vector<16x64xf32>
    %2 = tpu.matmul %0, %1, %cst {dimension_numbers = #tpu.dot_dimension_numbers<[1], [0], [0], [1], [0, 0, 1, 1], [], []>} : vector<16x512xbf16>, vector<512x64xbf16>, vector<16x64xf32> -> vector<16x64xf32>
    %c0_3 = arith.constant 0 : index
    %c0_4 = arith.constant 0 : index
    %3 = vector.load %arg3[%c0_3, %c0_4] : memref<1x64xf32, #tpu.memory_space<vmem>>, vector<1x64xf32>
    %4 = vector.broadcast %3 : vector<1x64xf32> to vector<16x64xf32>
    %5 = arith.addf %2, %4 : vector<16x64xf32>
    %cst_5 = arith.constant 0.000000e+00 : f32
    %6 = vector.broadcast %cst_5 : f32 to vector<16x64xf32>
    %7 = arith.cmpf ogt, %5, %6 : vector<16x64xf32>
    %cst_6 = arith.constant 0.00999999977 : f32
    %8 = vector.broadcast %cst_6 : f32 to vector<16x64xf32>
    %9 = arith.mulf %5, %8 : vector<16x64xf32>
    %10 = arith.select %7, %5, %9 : vector<16x64xi1>, vector<16x64xf32>
    %c0_7 = arith.constant 0 : index
    %c0_8 = arith.constant 0 : index
    %11 = vector.load %arg4[%c0_7, %c0_8] : memref<16x64xf32, #tpu.memory_space<vmem>>, vector<16x64xf32>
    tpu.vector_store %arg4[%c0_7, %c0_8], %10 {strides = array<i32>} : memref<16x64xf32, #tpu.memory_space<vmem>>, vector<16x64xf32>,
    return
  }
  func.func @transform_0(%arg0: i32) -> (i32, i32) {
    %c0_i32 = arith.constant 0 : i32
    %c0_i32_0 = arith.constant 0 : i32
    return %arg0, %c0_i32 : i32, i32
  }
  func.func @transform_1(%arg0: i32) -> (i32, i32) {
    %c0_i32 = arith.constant 0 : i32
    %c0_i32_0 = arith.constant 0 : i32
    %c0_i32_1 = arith.constant 0 : i32
    return %c0_i32, %c0_i32_0 : i32, i32
  }
  func.func @transform_2(%arg0: i32) -> (i32, i32) {
    %c0_i32 = arith.constant 0 : i32
    %c0_i32_0 = arith.constant 0 : i32
    %c0_i32_1 = arith.constant 0 : i32
    return %c0_i32, %c0_i32_0 : i32, i32
  }
  func.func @transform_3(%arg0: i32) -> (i32, i32) {
    %c0_i32 = arith.constant 0 : i32
    %c0_i32_0 = arith.constant 0 : i32
    return %arg0, %c0_i32 : i32, i32
  }
}

module attributes {stable_mosaic.version = 11 : i64} {
  func.func @_head_kernel(%arg0: memref<2x64xf32, #tpu.memory_space<vmem>>, %arg1: memref<64x10xf32, #tpu.memory_space<vmem>>, %arg2: memref<1x10xf32, #tpu.memory_space<vmem>>, %arg3: memref<10x10xf32, #tpu.memory_space<vmem>>, %arg4: memref<10x64xf32, #tpu.memory_space<vmem>>, %arg5: memref<1x64xf32, #tpu.memory_space<vmem>>, %arg6: memref<2x10xf32, #tpu.memory_space<vmem>>, %arg7: memref<2x10xf32, #tpu.memory_space<vmem>>, %arg8: memref<2x64xf32, #tpu.memory_space<vmem>>) attributes {dimension_semantics = [], scalar_prefetch = 0 : i64, scratch_operands = 0 : i64, tpu.core_type = #tpu.core_type<tc>} {
    %c0 = arith.constant 0 : index
    %c0_0 = arith.constant 0 : index
    %0 = vector.load %arg0[%c0, %c0_0] : memref<2x64xf32, #tpu.memory_space<vmem>>, vector<2x64xf32>
    %c0_1 = arith.constant 0 : index
    %c0_2 = arith.constant 0 : index
    %1 = vector.load %arg1[%c0_1, %c0_2] : memref<64x10xf32, #tpu.memory_space<vmem>>, vector<64x10xf32>
    %cst = arith.constant dense<0.000000e+00> : vector<2x10xf32>
    %2 = tpu.matmul %0, %1, %cst {dimension_numbers = #tpu.dot_dimension_numbers<[1], [0], [0], [1], [0, 0, 1, 1], [], []>} : vector<2x64xf32>, vector<64x10xf32>, vector<2x10xf32> -> vector<2x10xf32>
    %c0_3 = arith.constant 0 : index
    %c0_4 = arith.constant 0 : index
    %3 = vector.load %arg2[%c0_3, %c0_4] : memref<1x10xf32, #tpu.memory_space<vmem>>, vector<1x10xf32>
    %4 = vector.broadcast %3 : vector<1x10xf32> to vector<2x10xf32>
    %5 = arith.addf %2, %4 : vector<2x10xf32>
    %c0_5 = arith.constant 0 : index
    %c0_6 = arith.constant 0 : index
    %6 = vector.load %arg6[%c0_5, %c0_6] : memref<2x10xf32, #tpu.memory_space<vmem>>, vector<2x10xf32>
    tpu.vector_store %arg6[%c0_5, %c0_6], %5 {strides = array<i32>} : memref<2x10xf32, #tpu.memory_space<vmem>>, vector<2x10xf32>,
    %c0_7 = arith.constant 0 : index
    %c0_8 = arith.constant 0 : index
    %7 = vector.load %arg3[%c0_7, %c0_8] : memref<10x10xf32, #tpu.memory_space<vmem>>, vector<10x10xf32>
    %8 = arith.mulf %5, %5 : vector<2x10xf32>
    %cst_9 = arith.constant dense<0.000000e+00> : vector<2xf32>
    %9 = vector.multi_reduction <add>, %8, %cst_9 [1] : vector<2x10xf32> to vector<2xf32>
    %10 = vector.shape_cast %9 : vector<2xf32> to vector<2x1xf32>
    %11 = arith.mulf %7, %7 : vector<10x10xf32>
    %cst_10 = arith.constant dense<0.000000e+00> : vector<10xf32>
    %12 = vector.multi_reduction <add>, %11, %cst_10 [0] : vector<10x10xf32> to vector<10xf32>
    %13 = vector.shape_cast %12 : vector<10xf32> to vector<1x10xf32>
    %cst_11 = arith.constant dense<0.000000e+00> : vector<2x10xf32>
    %14 = tpu.matmul %5, %7, %cst_11 {dimension_numbers = #tpu.dot_dimension_numbers<[1], [0], [0], [1], [0, 0, 1, 1], [], []>} : vector<2x10xf32>, vector<10x10xf32>, vector<2x10xf32> -> vector<2x10xf32>
    %15 = vector.broadcast %10 : vector<2x1xf32> to vector<2x10xf32>
    %16 = vector.broadcast %13 : vector<1x10xf32> to vector<2x10xf32>
    %17 = arith.addf %15, %16 : vector<2x10xf32>
    %cst_12 = arith.constant 2.000000e+00 : f32
    %18 = vector.broadcast %cst_12 : f32 to vector<2x10xf32>
    %19 = arith.mulf %18, %14 : vector<2x10xf32>
    %20 = arith.subf %17, %19 : vector<2x10xf32>
    %cst_13 = arith.constant 0.000000e+00 : f32
    %21 = vector.broadcast %cst_13 : f32 to vector<2x10xf32>
    %22 = arith.maximumf %20, %21 : vector<2x10xf32>
    %cst_14 = arith.constant 1.000000e+00 : f32
    %23 = vector.broadcast %cst_14 : f32 to vector<2x10xf32>
    %24 = arith.divf %22, %23 : vector<2x10xf32>
    %cst_15 = arith.constant 1.000000e+00 : f32
    %25 = vector.broadcast %cst_15 : f32 to vector<2x10xf32>
    %26 = arith.addf %25, %24 : vector<2x10xf32>
    %27 = tpu.reciprocal %26 {approx = true} : vector<2x10xf32> -> vector<2x10xf32>
    %cst_16 = arith.constant dense<0.000000e+00> : vector<2xf32>
    %28 = vector.multi_reduction <add>, %27, %cst_16 [1] : vector<2x10xf32> to vector<2xf32>
    %29 = vector.shape_cast %28 : vector<2xf32> to vector<2x1xf32>
    %30 = vector.broadcast %29 : vector<2x1xf32> to vector<2x10xf32>
    %31 = arith.divf %27, %30 : vector<2x10xf32>
    %c0_17 = arith.constant 0 : index
    %c0_18 = arith.constant 0 : index
    %32 = vector.load %arg7[%c0_17, %c0_18] : memref<2x10xf32, #tpu.memory_space<vmem>>, vector<2x10xf32>
    tpu.vector_store %arg7[%c0_17, %c0_18], %31 {strides = array<i32>} : memref<2x10xf32, #tpu.memory_space<vmem>>, vector<2x10xf32>,
    %c0_19 = arith.constant 0 : index
    %c0_20 = arith.constant 0 : index
    %33 = vector.load %arg4[%c0_19, %c0_20] : memref<10x64xf32, #tpu.memory_space<vmem>>, vector<10x64xf32>
    %cst_21 = arith.constant dense<0.000000e+00> : vector<2x64xf32>
    %34 = tpu.matmul %5, %33, %cst_21 {dimension_numbers = #tpu.dot_dimension_numbers<[1], [0], [0], [1], [0, 0, 1, 1], [], []>} : vector<2x10xf32>, vector<10x64xf32>, vector<2x64xf32> -> vector<2x64xf32>
    %c0_22 = arith.constant 0 : index
    %c0_23 = arith.constant 0 : index
    %35 = vector.load %arg5[%c0_22, %c0_23] : memref<1x64xf32, #tpu.memory_space<vmem>>, vector<1x64xf32>
    %36 = vector.broadcast %35 : vector<1x64xf32> to vector<2x64xf32>
    %37 = arith.addf %34, %36 : vector<2x64xf32>
    %cst_24 = arith.constant 0.000000e+00 : f32
    %38 = vector.broadcast %cst_24 : f32 to vector<2x64xf32>
    %39 = arith.cmpf ogt, %37, %38 : vector<2x64xf32>
    %cst_25 = arith.constant 0.00999999977 : f32
    %40 = vector.broadcast %cst_25 : f32 to vector<2x64xf32>
    %41 = arith.mulf %37, %40 : vector<2x64xf32>
    %42 = arith.select %39, %37, %41 : vector<2x64xi1>, vector<2x64xf32>
    %c0_26 = arith.constant 0 : index
    %c0_27 = arith.constant 0 : index
    %43 = vector.load %arg8[%c0_26, %c0_27] : memref<2x64xf32, #tpu.memory_space<vmem>>, vector<2x64xf32>
    tpu.vector_store %arg8[%c0_26, %c0_27], %42 {strides = array<i32>} : memref<2x64xf32, #tpu.memory_space<vmem>>, vector<2x64xf32>,
    return
  }
}

module attributes {stable_mosaic.version = 11 : i64} {
  func.func @_gemm_bias_act_kernel(%arg0: i32, %arg1: memref<16x256xbf16, #tpu.memory_space<vmem>>, %arg2: memref<256x128xbf16, #tpu.memory_space<vmem>>, %arg3: memref<1x128xf32, #tpu.memory_space<vmem>>, %arg4: memref<16x128xf32, #tpu.memory_space<vmem>>) attributes {dimension_semantics = [#tpu.dimension_semantics<parallel>], iteration_bounds = array<i64: 1>, scalar_prefetch = 0 : i64, scratch_operands = 0 : i64, tpu.core_type = #tpu.core_type<tc>, window_params = [{transform_indices = @transform_0, window_bounds = array<i64: 16, 256>}, {pipeline_mode = #tpu.pipeline_mode<synchronous>, transform_indices = @transform_1, window_bounds = array<i64: 256, 128>}, {pipeline_mode = #tpu.pipeline_mode<synchronous>, transform_indices = @transform_2, window_bounds = array<i64: 1, 128>}, {transform_indices = @transform_3, window_bounds = array<i64: 16, 128>}]} {
    %c0 = arith.constant 0 : index
    %c0_0 = arith.constant 0 : index
    %0 = vector.load %arg1[%c0, %c0_0] : memref<16x256xbf16, #tpu.memory_space<vmem>>, vector<16x256xbf16>
    %c0_1 = arith.constant 0 : index
    %c0_2 = arith.constant 0 : index
    %1 = vector.load %arg2[%c0_1, %c0_2] : memref<256x128xbf16, #tpu.memory_space<vmem>>, vector<256x128xbf16>
    %cst = arith.constant dense<0.000000e+00> : vector<16x128xf32>
    %2 = tpu.matmul %0, %1, %cst {dimension_numbers = #tpu.dot_dimension_numbers<[1], [0], [0], [1], [0, 0, 1, 1], [], []>} : vector<16x256xbf16>, vector<256x128xbf16>, vector<16x128xf32> -> vector<16x128xf32>
    %c0_3 = arith.constant 0 : index
    %c0_4 = arith.constant 0 : index
    %3 = vector.load %arg3[%c0_3, %c0_4] : memref<1x128xf32, #tpu.memory_space<vmem>>, vector<1x128xf32>
    %4 = vector.broadcast %3 : vector<1x128xf32> to vector<16x128xf32>
    %5 = arith.addf %2, %4 : vector<16x128xf32>
    %cst_5 = arith.constant 0.000000e+00 : f32
    %6 = vector.broadcast %cst_5 : f32 to vector<16x128xf32>
    %7 = arith.cmpf ogt, %5, %6 : vector<16x128xf32>
    %cst_6 = arith.constant 0.00999999977 : f32
    %8 = vector.broadcast %cst_6 : f32 to vector<16x128xf32>
    %9 = arith.mulf %5, %8 : vector<16x128xf32>
    %10 = arith.select %7, %5, %9 : vector<16x128xi1>, vector<16x128xf32>
    %c0_7 = arith.constant 0 : index
    %c0_8 = arith.constant 0 : index
    %11 = vector.load %arg4[%c0_7, %c0_8] : memref<16x128xf32, #tpu.memory_space<vmem>>, vector<16x128xf32>
    tpu.vector_store %arg4[%c0_7, %c0_8], %10 {strides = array<i32>} : memref<16x128xf32, #tpu.memory_space<vmem>>, vector<16x128xf32>,
    return
  }
  func.func @transform_0(%arg0: i32) -> (i32, i32) {
    %c0_i32 = arith.constant 0 : i32
    %c0_i32_0 = arith.constant 0 : i32
    return %arg0, %c0_i32 : i32, i32
  }
  func.func @transform_1(%arg0: i32) -> (i32, i32) {
    %c0_i32 = arith.constant 0 : i32
    %c0_i32_0 = arith.constant 0 : i32
    %c0_i32_1 = arith.constant 0 : i32
    return %c0_i32, %c0_i32_0 : i32, i32
  }
  func.func @transform_2(%arg0: i32) -> (i32, i32) {
    %c0_i32 = arith.constant 0 : i32
    %c0_i32_0 = arith.constant 0 : i32
    %c0_i32_1 = arith.constant 0 : i32
    return %c0_i32, %c0_i32_0 : i32, i32
  }
  func.func @transform_3(%arg0: i32) -> (i32, i32) {
    %c0_i32 = arith.constant 0 : i32
    %c0_i32_0 = arith.constant 0 : i32
    return %arg0, %c0_i32 : i32, i32
  }
}

module attributes {stable_mosaic.version = 11 : i64} {
  func.func @_gemm_bias_act_kernel(%arg0: i32, %arg1: memref<64x288xbf16, #tpu.memory_space<vmem>>, %arg2: memref<288x128xbf16, #tpu.memory_space<vmem>>, %arg3: memref<1x128xf32, #tpu.memory_space<vmem>>, %arg4: memref<64x128xf32, #tpu.memory_space<vmem>>) attributes {dimension_semantics = [#tpu.dimension_semantics<parallel>], iteration_bounds = array<i64: 1>, scalar_prefetch = 0 : i64, scratch_operands = 0 : i64, tpu.core_type = #tpu.core_type<tc>, window_params = [{transform_indices = @transform_0, window_bounds = array<i64: 64, 288>}, {pipeline_mode = #tpu.pipeline_mode<synchronous>, transform_indices = @transform_1, window_bounds = array<i64: 288, 128>}, {pipeline_mode = #tpu.pipeline_mode<synchronous>, transform_indices = @transform_2, window_bounds = array<i64: 1, 128>}, {transform_indices = @transform_3, window_bounds = array<i64: 64, 128>}]} {
    %c0 = arith.constant 0 : index
    %c0_0 = arith.constant 0 : index
    %0 = vector.load %arg1[%c0, %c0_0] : memref<64x288xbf16, #tpu.memory_space<vmem>>, vector<64x288xbf16>
    %c0_1 = arith.constant 0 : index
    %c0_2 = arith.constant 0 : index
    %1 = vector.load %arg2[%c0_1, %c0_2] : memref<288x128xbf16, #tpu.memory_space<vmem>>, vector<288x128xbf16>
    %cst = arith.constant dense<0.000000e+00> : vector<64x128xf32>
    %2 = tpu.matmul %0, %1, %cst {dimension_numbers = #tpu.dot_dimension_numbers<[1], [0], [0], [1], [0, 0, 1, 1], [], []>} : vector<64x288xbf16>, vector<288x128xbf16>, vector<64x128xf32> -> vector<64x128xf32>
    %c0_3 = arith.constant 0 : index
    %c0_4 = arith.constant 0 : index
    %3 = vector.load %arg3[%c0_3, %c0_4] : memref<1x128xf32, #tpu.memory_space<vmem>>, vector<1x128xf32>
    %4 = vector.broadcast %3 : vector<1x128xf32> to vector<64x128xf32>
    %5 = arith.addf %2, %4 : vector<64x128xf32>
    %cst_5 = arith.constant 0.000000e+00 : f32
    %6 = vector.broadcast %cst_5 : f32 to vector<64x128xf32>
    %7 = arith.cmpf ogt, %5, %6 : vector<64x128xf32>
    %cst_6 = arith.constant 0.00999999977 : f32
    %8 = vector.broadcast %cst_6 : f32 to vector<64x128xf32>
    %9 = arith.mulf %5, %8 : vector<64x128xf32>
    %10 = arith.select %7, %5, %9 : vector<64x128xi1>, vector<64x128xf32>
    %c0_7 = arith.constant 0 : index
    %c0_8 = arith.constant 0 : index
    %11 = vector.load %arg4[%c0_7, %c0_8] : memref<64x128xf32, #tpu.memory_space<vmem>>, vector<64x128xf32>
    tpu.vector_store %arg4[%c0_7, %c0_8], %10 {strides = array<i32>} : memref<64x128xf32, #tpu.memory_space<vmem>>, vector<64x128xf32>,
    return
  }
  func.func @transform_0(%arg0: i32) -> (i32, i32) {
    %c0_i32 = arith.constant 0 : i32
    %c0_i32_0 = arith.constant 0 : i32
    return %arg0, %c0_i32 : i32, i32
  }
  func.func @transform_1(%arg0: i32) -> (i32, i32) {
    %c0_i32 = arith.constant 0 : i32
    %c0_i32_0 = arith.constant 0 : i32
    %c0_i32_1 = arith.constant 0 : i32
    return %c0_i32, %c0_i32_0 : i32, i32
  }
  func.func @transform_2(%arg0: i32) -> (i32, i32) {
    %c0_i32 = arith.constant 0 : i32
    %c0_i32_0 = arith.constant 0 : i32
    %c0_i32_1 = arith.constant 0 : i32
    return %c0_i32, %c0_i32_0 : i32, i32
  }
  func.func @transform_3(%arg0: i32) -> (i32, i32) {
    %c0_i32 = arith.constant 0 : i32
    %c0_i32_0 = arith.constant 0 : i32
    return %arg0, %c0_i32 : i32, i32
  }
}

module attributes {stable_mosaic.version = 11 : i64} {
  func.func @_gemm_bias_act_kernel(%arg0: i32, %arg1: memref<96x384xbf16, #tpu.memory_space<vmem>>, %arg2: memref<384x128xbf16, #tpu.memory_space<vmem>>, %arg3: memref<1x128xf32, #tpu.memory_space<vmem>>, %arg4: memref<96x128xf32, #tpu.memory_space<vmem>>) attributes {dimension_semantics = [#tpu.dimension_semantics<parallel>], iteration_bounds = array<i64: 1>, scalar_prefetch = 0 : i64, scratch_operands = 0 : i64, tpu.core_type = #tpu.core_type<tc>, window_params = [{transform_indices = @transform_0, window_bounds = array<i64: 96, 384>}, {pipeline_mode = #tpu.pipeline_mode<synchronous>, transform_indices = @transform_1, window_bounds = array<i64: 384, 128>}, {pipeline_mode = #tpu.pipeline_mode<synchronous>, transform_indices = @transform_2, window_bounds = array<i64: 1, 128>}, {transform_indices = @transform_3, window_bounds = array<i64: 96, 128>}]} {
    %c0 = arith.constant 0 : index
    %c0_0 = arith.constant 0 : index
    %0 = vector.load %arg1[%c0, %c0_0] : memref<96x384xbf16, #tpu.memory_space<vmem>>, vector<96x384xbf16>
    %c0_1 = arith.constant 0 : index
    %c0_2 = arith.constant 0 : index
    %1 = vector.load %arg2[%c0_1, %c0_2] : memref<384x128xbf16, #tpu.memory_space<vmem>>, vector<384x128xbf16>
    %cst = arith.constant dense<0.000000e+00> : vector<96x128xf32>
    %2 = tpu.matmul %0, %1, %cst {dimension_numbers = #tpu.dot_dimension_numbers<[1], [0], [0], [1], [0, 0, 1, 1], [], []>} : vector<96x384xbf16>, vector<384x128xbf16>, vector<96x128xf32> -> vector<96x128xf32>
    %c0_3 = arith.constant 0 : index
    %c0_4 = arith.constant 0 : index
    %3 = vector.load %arg3[%c0_3, %c0_4] : memref<1x128xf32, #tpu.memory_space<vmem>>, vector<1x128xf32>
    %4 = vector.broadcast %3 : vector<1x128xf32> to vector<96x128xf32>
    %5 = arith.addf %2, %4 : vector<96x128xf32>
    %cst_5 = arith.constant 0.000000e+00 : f32
    %6 = vector.broadcast %cst_5 : f32 to vector<96x128xf32>
    %7 = arith.cmpf ogt, %5, %6 : vector<96x128xf32>
    %cst_6 = arith.constant 0.00999999977 : f32
    %8 = vector.broadcast %cst_6 : f32 to vector<96x128xf32>
    %9 = arith.mulf %5, %8 : vector<96x128xf32>
    %10 = arith.select %7, %5, %9 : vector<96x128xi1>, vector<96x128xf32>
    %c0_7 = arith.constant 0 : index
    %c0_8 = arith.constant 0 : index
    %11 = vector.load %arg4[%c0_7, %c0_8] : memref<96x128xf32, #tpu.memory_space<vmem>>, vector<96x128xf32>
    tpu.vector_store %arg4[%c0_7, %c0_8], %10 {strides = array<i32>} : memref<96x128xf32, #tpu.memory_space<vmem>>, vector<96x128xf32>,
    return
  }
  func.func @transform_0(%arg0: i32) -> (i32, i32) {
    %c0_i32 = arith.constant 0 : i32
    %c0_i32_0 = arith.constant 0 : i32
    return %arg0, %c0_i32 : i32, i32
  }
  func.func @transform_1(%arg0: i32) -> (i32, i32) {
    %c0_i32 = arith.constant 0 : i32
    %c0_i32_0 = arith.constant 0 : i32
    %c0_i32_1 = arith.constant 0 : i32
    return %c0_i32, %c0_i32_0 : i32, i32
  }
  func.func @transform_2(%arg0: i32) -> (i32, i32) {
    %c0_i32 = arith.constant 0 : i32
    %c0_i32_0 = arith.constant 0 : i32
    %c0_i32_1 = arith.constant 0 : i32
    return %c0_i32, %c0_i32_0 : i32, i32
  }
  func.func @transform_3(%arg0: i32) -> (i32, i32) {
    %c0_i32 = arith.constant 0 : i32
    %c0_i32_0 = arith.constant 0 : i32
    return %arg0, %c0_i32 : i32, i32
  }
}

module attributes {stable_mosaic.version = 11 : i64} {
  func.func @_gemm_bias_act_kernel(%arg0: i32, %arg1: memref<176x288xbf16, #tpu.memory_space<vmem>>, %arg2: memref<288x128xbf16, #tpu.memory_space<vmem>>, %arg3: memref<1x128xf32, #tpu.memory_space<vmem>>, %arg4: memref<176x128xf32, #tpu.memory_space<vmem>>) attributes {dimension_semantics = [#tpu.dimension_semantics<parallel>], iteration_bounds = array<i64: 1>, scalar_prefetch = 0 : i64, scratch_operands = 0 : i64, tpu.core_type = #tpu.core_type<tc>, window_params = [{transform_indices = @transform_0, window_bounds = array<i64: 176, 288>}, {pipeline_mode = #tpu.pipeline_mode<synchronous>, transform_indices = @transform_1, window_bounds = array<i64: 288, 128>}, {pipeline_mode = #tpu.pipeline_mode<synchronous>, transform_indices = @transform_2, window_bounds = array<i64: 1, 128>}, {transform_indices = @transform_3, window_bounds = array<i64: 176, 128>}]} {
    %c0 = arith.constant 0 : index
    %c0_0 = arith.constant 0 : index
    %0 = vector.load %arg1[%c0, %c0_0] : memref<176x288xbf16, #tpu.memory_space<vmem>>, vector<176x288xbf16>
    %c0_1 = arith.constant 0 : index
    %c0_2 = arith.constant 0 : index
    %1 = vector.load %arg2[%c0_1, %c0_2] : memref<288x128xbf16, #tpu.memory_space<vmem>>, vector<288x128xbf16>
    %cst = arith.constant dense<0.000000e+00> : vector<176x128xf32>
    %2 = tpu.matmul %0, %1, %cst {dimension_numbers = #tpu.dot_dimension_numbers<[1], [0], [0], [1], [0, 0, 1, 1], [], []>} : vector<176x288xbf16>, vector<288x128xbf16>, vector<176x128xf32> -> vector<176x128xf32>
    %c0_3 = arith.constant 0 : index
    %c0_4 = arith.constant 0 : index
    %3 = vector.load %arg3[%c0_3, %c0_4] : memref<1x128xf32, #tpu.memory_space<vmem>>, vector<1x128xf32>
    %4 = vector.broadcast %3 : vector<1x128xf32> to vector<176x128xf32>
    %5 = arith.addf %2, %4 : vector<176x128xf32>
    %cst_5 = arith.constant 0.000000e+00 : f32
    %6 = vector.broadcast %cst_5 : f32 to vector<176x128xf32>
    %7 = arith.cmpf ogt, %5, %6 : vector<176x128xf32>
    %cst_6 = arith.constant 0.00999999977 : f32
    %8 = vector.broadcast %cst_6 : f32 to vector<176x128xf32>
    %9 = arith.mulf %5, %8 : vector<176x128xf32>
    %10 = arith.select %7, %5, %9 : vector<176x128xi1>, vector<176x128xf32>
    %c0_7 = arith.constant 0 : index
    %c0_8 = arith.constant 0 : index
    %11 = vector.load %arg4[%c0_7, %c0_8] : memref<176x128xf32, #tpu.memory_space<vmem>>, vector<176x128xf32>
    tpu.vector_store %arg4[%c0_7, %c0_8], %10 {strides = array<i32>} : memref<176x128xf32, #tpu.memory_space<vmem>>, vector<176x128xf32>,
    return
  }
  func.func @transform_0(%arg0: i32) -> (i32, i32) {
    %c0_i32 = arith.constant 0 : i32
    %c0_i32_0 = arith.constant 0 : i32
    return %arg0, %c0_i32 : i32, i32
  }
  func.func @transform_1(%arg0: i32) -> (i32, i32) {
    %c0_i32 = arith.constant 0 : i32
    %c0_i32_0 = arith.constant 0 : i32
    %c0_i32_1 = arith.constant 0 : i32
    return %c0_i32, %c0_i32_0 : i32, i32
  }
  func.func @transform_2(%arg0: i32) -> (i32, i32) {
    %c0_i32 = arith.constant 0 : i32
    %c0_i32_0 = arith.constant 0 : i32
    %c0_i32_1 = arith.constant 0 : i32
    return %c0_i32, %c0_i32_0 : i32, i32
  }
  func.func @transform_3(%arg0: i32) -> (i32, i32) {
    %c0_i32 = arith.constant 0 : i32
    %c0_i32_0 = arith.constant 0 : i32
    return %arg0, %c0_i32 : i32, i32
  }
}

module attributes {stable_mosaic.version = 11 : i64} {
  func.func @_gemm_bias_act_kernel(%arg0: i32, %arg1: memref<144x288xbf16, #tpu.memory_space<vmem>>, %arg2: memref<288x120xbf16, #tpu.memory_space<vmem>>, %arg3: memref<1x120xf32, #tpu.memory_space<vmem>>, %arg4: memref<144x120xf32, #tpu.memory_space<vmem>>) attributes {dimension_semantics = [#tpu.dimension_semantics<parallel>], iteration_bounds = array<i64: 2>, scalar_prefetch = 0 : i64, scratch_operands = 0 : i64, tpu.core_type = #tpu.core_type<tc>, window_params = [{transform_indices = @transform_0, window_bounds = array<i64: 144, 288>}, {pipeline_mode = #tpu.pipeline_mode<synchronous>, transform_indices = @transform_1, window_bounds = array<i64: 288, 120>}, {pipeline_mode = #tpu.pipeline_mode<synchronous>, transform_indices = @transform_2, window_bounds = array<i64: 1, 120>}, {transform_indices = @transform_3, window_bounds = array<i64: 144, 120>}]} {
    %c0 = arith.constant 0 : index
    %c0_0 = arith.constant 0 : index
    %0 = vector.load %arg1[%c0, %c0_0] : memref<144x288xbf16, #tpu.memory_space<vmem>>, vector<144x288xbf16>
    %c0_1 = arith.constant 0 : index
    %c0_2 = arith.constant 0 : index
    %1 = vector.load %arg2[%c0_1, %c0_2] : memref<288x120xbf16, #tpu.memory_space<vmem>>, vector<288x120xbf16>
    %cst = arith.constant dense<0.000000e+00> : vector<144x120xf32>
    %2 = tpu.matmul %0, %1, %cst {dimension_numbers = #tpu.dot_dimension_numbers<[1], [0], [0], [1], [0, 0, 1, 1], [], []>} : vector<144x288xbf16>, vector<288x120xbf16>, vector<144x120xf32> -> vector<144x120xf32>
    %c0_3 = arith.constant 0 : index
    %c0_4 = arith.constant 0 : index
    %3 = vector.load %arg3[%c0_3, %c0_4] : memref<1x120xf32, #tpu.memory_space<vmem>>, vector<1x120xf32>
    %4 = vector.broadcast %3 : vector<1x120xf32> to vector<144x120xf32>
    %5 = arith.addf %2, %4 : vector<144x120xf32>
    %c0_5 = arith.constant 0 : index
    %c0_6 = arith.constant 0 : index
    %6 = vector.load %arg4[%c0_5, %c0_6] : memref<144x120xf32, #tpu.memory_space<vmem>>, vector<144x120xf32>
    tpu.vector_store %arg4[%c0_5, %c0_6], %5 {strides = array<i32>} : memref<144x120xf32, #tpu.memory_space<vmem>>, vector<144x120xf32>,
    return
  }
  func.func @transform_0(%arg0: i32) -> (i32, i32) {
    %c0_i32 = arith.constant 0 : i32
    %c0_i32_0 = arith.constant 0 : i32
    return %arg0, %c0_i32 : i32, i32
  }
  func.func @transform_1(%arg0: i32) -> (i32, i32) {
    %c0_i32 = arith.constant 0 : i32
    %c0_i32_0 = arith.constant 0 : i32
    %c0_i32_1 = arith.constant 0 : i32
    return %c0_i32, %c0_i32_0 : i32, i32
  }
  func.func @transform_2(%arg0: i32) -> (i32, i32) {
    %c0_i32 = arith.constant 0 : i32
    %c0_i32_0 = arith.constant 0 : i32
    %c0_i32_1 = arith.constant 0 : i32
    return %c0_i32, %c0_i32_0 : i32, i32
  }
  func.func @transform_3(%arg0: i32) -> (i32, i32) {
    %c0_i32 = arith.constant 0 : i32
    %c0_i32_0 = arith.constant 0 : i32
    return %arg0, %c0_i32 : i32, i32
  }
}

</mosaic_0001>

<bundles_post_ra>
// kernel: tile.61
= control target key start
LH: loop header
LB: loop body
LE: loop exit
PB: predicated region body
PF: predicated region fallthrough
CT: control target
= control target key end

     0   :  { %s28_s0 = inlined_call_operand.vmem [shape: f32[8], index: 0, kind: input, shape index: {}]   ;;  %s29_s1 = inlined_call_operand.vmem [shape: f32[16,8], index: 1, kind: output, shape index: {}]  }
   0x1   :  { %v4_v0 = vld [vmem:[%s28_s0] ss:$0 sm:$0xff] }
   0x2   :  { %5 = vst [vmem:[%s29_s1] sm:$0xff] %v4_v0  ;;  %8 = vst [vmem:[%s29_s1 + $0x8] sm:$0xff] %v4_v0 }

// kernel: tile.62
= control target key start
LH: loop header
LB: loop body
LE: loop exit
PB: predicated region body
PF: predicated region fallthrough
CT: control target
= control target key end

     0   :  { %s131_s10 = smov 120   ;;  %s132_s11 = smov 104   ;;  %vm3_vm0 = vcmask 64512   ;;  %vm9_vm1 = vcmask 1048512   ;;  %vm15_vm2 = vcmask 982912   ;;  %vm21_vm3 = vcmask 917312   ;;  %s207_s0 = inlined_call_operand.vmem [shape: f32[16,8], index: 0, kind: input, shape index: {}]   ;;  %s208_s1 = inlined_call_operand.vmem [shape: f32[1,128], index: 1, kind: output, shape index: {}]  }
   0x1   :  { %v101_v0 = vld [vmem:[%s207_s0 + $0xf] sm:$0x1]   ;;  %v103_v1 = vld [vmem:[%s207_s0 + $0xd] sm:$0x1]   ;;  %v102_v2 = vld [vmem:[%s207_s0 + $0xe] sm:$0x1]  }
   0x2   :  { %7 = vrot.lane.b32.xlu0 %v101_v0, %s131_s10  ;;  %19 = vrot.lane.b32.xlu1 %v103_v1, %s132_s11  ;;  %v104_v3 = vld [vmem:[%s207_s0 + $0xc] sm:$0x1]   ;;  %s133_s16 = smov 112   ;;  %s134_s17 = smov 96   ;;  %v105_v4 = vld [vmem:[%s207_s0 + $0xb] sm:$0x1]  }
   0x3   :  { %v106_v5 = vld [vmem:[%s207_s0 + $0xa] sm:$0x1]   ;;  %v2_v6 = vld [vmem:[%s207_s0] sm:$0x1]   ;;  %s135_s24 = smov 88   ;;  %s136_s25 = smov 80  }
   0x4   :  { %4 = vst.msk [vmem:[#allocation0] sm:$0x1] %vm3_vm0, %v2_v6   ;;  %v107_v7 = vld [vmem:[%s207_s0 + $0x9] sm:$0x1]   ;;  %v108_v8 = vld [vmem:[%s207_s0 + $0x8] sm:$0x1]  }
   0x5   :  { %s137_s30 = smov 72   ;;  %s138_s2 = smov 64   ;;  %v109_v9 = vld [vmem:[%s207_s0 + $0x7] sm:$0x1]   ;;  %v110_v10 = vld [vmem:[%s207_s0 + $0x6] sm:$0x1]  }
   0x6   :  { %13 = vrot.lane.b32.xlu0 %v102_v2, %s133_s16  ;;  %25 = vrot.lane.b32.xlu1 %v104_v3, %s134_s17  ;;  %s139_s7 = smov 56   ;;  %s140_s8 = smov 48   ;;  %v111_v11 = vld [vmem:[%s207_s0 + $0x5] sm:$0x1]   ;;  %v112_v12 = vld [vmem:[%s207_s0 + $0x4] sm:$0x1]  }
   0x7   :  { %s141_s13 = smov 40   ;;  %s142_s14 = smov 32   ;;  %v113_v13 = vld [vmem:[%s207_s0 + $0x3] sm:$0x1]   ;;  %v114_v14 = vld [vmem:[%s207_s0 + $0x2] sm:$0x1]  }
   0x8   :  { %s143_s19 = smov 24   ;;  %s144_s20 = smov 16   ;;  %v115_v15 = vld [vmem:[%s207_s0 + $0x1] sm:$0x1]   ;;  %vm27_vm4 = vcmask 851712   ;;  %vm33_vm5 = vcmask 786112  }
   0x9   :  { %s145_s0 = smov 8   ;;  %vm39_vm6 = vcmask 720512   ;;  %vm45_vm7 = vcmask 654912   ;;  %vm51_vm8 = vcmask 589312   ;;  %vm57_vm9 = vcmask 523712  }
   0xa   :  { %31 = vrot.lane.b32.xlu0 %v105_v4, %s135_s24  ;;  %37 = vrot.lane.b32.xlu1 %v106_v5, %s136_s25  ;;  %vm63_vm10 = vcmask 458112   ;;  %vm69_vm11 = vcmask 392512   ;;  %vm75_vm12 = vcmask 326912   ;;  %vm81_vm13 = vcmask 261312  }
   0xb   :  { %vm87_vm14 = vcmask 195712   ;;  %vm93_vm15 = vcmask 130112  }
   0xe   :  { %43 = vrot.lane.b32.xlu0 %v107_v7, %s137_s30  ;;  %49 = vrot.lane.b32.xlu1 %v108_v8, %s138_s2 }
  0x12   :  { %55 = vrot.lane.b32.xlu0 %v109_v9, %s139_s7  ;;  %61 = vrot.lane.b32.xlu1 %v110_v10, %s140_s8 }
  0x16   :  { %67 = vrot.lane.b32.xlu0 %v111_v11, %s141_s13  ;;  %73 = vrot.lane.b32.xlu1 %v112_v12, %s142_s14 }
  0x1a   :  { %79 = vrot.lane.b32.xlu0 %v113_v13, %s143_s19  ;;  %85 = vrot.lane.b32.xlu1 %v114_v14, %s144_s20 }
  0x1e   :  { %91 = vrot.lane.b32.xlu0 %v115_v15, %s145_s0 }
  0x74   :  { %v8_v16 = vpop.permute.xlu0 %7   ;;  %v20_v17 = vpop.permute.xlu1 %19  }
  0x75   :  { %10 = vst.msk [vmem:[#allocation0] sm:$0x1] %vm9_vm1, %v8_v16  }
  0x78   :  { %v14_v18 = vpop.permute.xlu0 %13   ;;  %v26_v19 = vpop.permute.xlu1 %25  }
  0x79   :  { %16 = vst.msk [vmem:[#allocation0] sm:$0x1] %vm15_vm2, %v14_v18  }
  0x7a   :  { %22 = vst.msk [vmem:[#allocation0] sm:$0x1] %vm21_vm3, %v20_v17  }
  0x7b   :  { %28 = vst.msk [vmem:[#allocation0] sm:$0x1] %vm27_vm4, %v26_v19  }
  0x7c   :  { %v32_v20 = vpop.permute.xlu0 %31   ;;  %v38_v21 = vpop.permute.xlu1 %37  }
  0x7d   :  { %34 = vst.msk [vmem:[#allocation0] sm:$0x1] %vm33_vm5, %v32_v20  }
  0x7e   :  { %40 = vst.msk [vmem:[#allocation0] sm:$0x1] %vm39_vm6, %v38_v21  }
  0x80   :  { %v44_v22 = vpop.permute.xlu0 %43   ;;  %v50_v23 = vpop.permute.xlu1 %49  }
  0x81   :  { %46 = vst.msk [vmem:[#allocation0] sm:$0x1] %vm45_vm7, %v44_v22  }
  0x82   :  { %52 = vst.msk [vmem:[#allocation0] sm:$0x1] %vm51_vm8, %v50_v23  }
  0x84   :  { %v56_v24 = vpop.permute.xlu0 %55   ;;  %v62_v25 = vpop.permute.xlu1 %61  }
  0x85   :  { %58 = vst.msk [vmem:[#allocation0] sm:$0x1] %vm57_vm9, %v56_v24  }
  0x86   :  { %64 = vst.msk [vmem:[#allocation0] sm:$0x1] %vm63_vm10, %v62_v25  }
  0x88   :  { %v68_v26 = vpop.permute.xlu0 %67   ;;  %v74_v27 = vpop.permute.xlu1 %73  }
  0x89   :  { %70 = vst.msk [vmem:[#allocation0] sm:$0x1] %vm69_vm11, %v68_v26  }
  0x8a   :  { %76 = vst.msk [vmem:[#allocation0] sm:$0x1] %vm75_vm12, %v74_v27  }
  0x8c   :  { %v80_v28 = vpop.permute.xlu0 %79   ;;  %v86_v29 = vpop.permute.xlu1 %85  }
  0x8d   :  { %82 = vst.msk [vmem:[#allocation0] sm:$0x1] %vm81_vm13, %v80_v28  }
  0x8e   :  { %88 = vst.msk [vmem:[#allocation0] sm:$0x1] %vm87_vm14, %v86_v29  }
  0x90   :  { %v92_v30 = vpop.permute.xlu0 %91  }
  0x91   :  { %94 = vst.msk [vmem:[#allocation0] sm:$0x1] %vm93_vm15, %v92_v30  }
  0x98   :  { %v98_v31 = vld [vmem:[#allocation0] sm:$0x1] }
  0x99   :  { %100 = vst [vmem:[%s208_s1] sm:$0x1] %v98_v31 }

// kernel: cae5_forward.11
= control target key start
LH: loop header
LB: loop body
LE: loop exit
PB: predicated region body
PF: predicated region fallthrough
CT: control target
= control target key end

     0   :  { %v1372_v34 = vmov 0   ;;  %vm651_vm0 = vcmask 1043456   ;;  %vm626_vm1 = vcmask 64512   ;;  %s1800_s1 = inlined_call_operand.vmem [shape: bf16[648,128], index: 1, kind: input, shape index: {}]   ;;  %s1801_s0 = inlined_call_operand.vmem [shape: bf16[128,648], index: 0, kind: input, shape index: {}]   ;;  %s1802_s2 = inlined_call_operand.vmem [shape: f32[1,128], index: 2, kind: input, shape index: {}]   ;;  %s1803_s3 = inlined_call_operand.vmem [shape: f32[128,128], index: 3, kind: output, shape index: {}]  }
   0x1   :  { %v1259_v0 = vld [vmem:[%s1800_s1 + $0x40] sm:$0xff]   ;;  %v1263_v4 = vld [vmem:[%s1800_s1 + $0x48] sm:$0xff]   ;;  %v1267_v8 = vld [vmem:[%s1800_s1 + $0x50] sm:$0xff]  }
   0x2   :  { %v1260_v1 = vld [vmem:[%s1800_s1 + $0xc0] sm:$0xff]   ;;  %1112 = vmatprep.subr.bf16.mxu0 %v1259_v0  ;;  %v1264_v5 = vld [vmem:[%s1800_s1 + $0xc8] sm:$0xff]   ;;  %v1268_v9 = vld [vmem:[%s1800_s1 + $0xd0] sm:$0xff]  }
   0x3   :  { %v1261_v2 = vld [vmem:[%s1800_s1] sm:$0xff]   ;;  %1176 = vmatprep.subr.bf16.mxu1 %v1260_v1  ;;  %v1265_v6 = vld [vmem:[%s1800_s1 + $0x8] sm:$0xff]   ;;  %v1269_v10 = vld [vmem:[%s1800_s1 + $0x10] sm:$0xff]  }
   0x4   :  { %v1262_v3 = vld [vmem:[%s1800_s1 + $0x80] sm:$0xff]   ;;  %1113 = vmatpush3.bf16.msra.mxu0 %v1261_v2  ;;  %v1266_v7 = vld [vmem:[%s1800_s1 + $0x88] sm:$0xff]   ;;  %v1270_v11 = vld [vmem:[%s1800_s1 + $0x90] sm:$0xff]  }
   0x5   :  { %1177 = vmatpush3.bf16.msra.mxu1 %v1262_v3  ;;  %1114 = vmatprep.subr.bf16.mxu0 %v1263_v4  ;;  %v1271_v12 = vld [vmem:[%s1800_s1 + $0x58] sm:$0xff]   ;;  %v1275_v16 = vld [vmem:[%s1800_s1 + $0x60] sm:$0xff]   ;;  %v1279_v20 = vld [vmem:[%s1800_s1 + $0x68] sm:$0xff]  }
   0x6   :  { %1178 = vmatprep.subr.bf16.mxu1 %v1264_v5  ;;  %v1272_v13 = vld [vmem:[%s1800_s1 + $0xd8] sm:$0xff]   ;;  %v1276_v17 = vld [vmem:[%s1800_s1 + $0xe0] sm:$0xff]   ;;  %v1280_v21 = vld [vmem:[%s1800_s1 + $0xe8] sm:$0xff]  }
   0x7   :  { %v1273_v14 = vld [vmem:[%s1800_s1 + $0x18] sm:$0xff]   ;;  %v1277_v18 = vld [vmem:[%s1800_s1 + $0x20] sm:$0xff]   ;;  %v1281_v22 = vld [vmem:[%s1800_s1 + $0x28] sm:$0xff]  }
   0x8   :  { %1115 = vmatpush3.bf16.msra.mxu0 %v1265_v6  ;;  %v1274_v15 = vld [vmem:[%s1800_s1 + $0x98] sm:$0xff]   ;;  %v1278_v19 = vld [vmem:[%s1800_s1 + $0xa0] sm:$0xff]   ;;  %v1282_v23 = vld [vmem:[%s1800_s1 + $0xa8] sm:$0xff]  }
   0x9   :  { %1179 = vmatpush3.bf16.msra.mxu1 %v1266_v7  ;;  %1116 = vmatprep.subr.bf16.mxu0 %v1267_v8  ;;  %v1283_v24 = vld [vmem:[%s1800_s1 + $0x70] sm:$0xff]   ;;  %v1287_v28 = vld [vmem:[%s1800_s1 + $0x78] sm:$0xff]   ;;  %v1294_v35 = vld [vmem:[%s1801_s0 + $0x8] ss:$24 sps:$4 sm:$0xff]  }
   0xa   :  { %1180 = vmatprep.subr.bf16.mxu1 %v1268_v9  ;;  %v1284_v25 = vld [vmem:[%s1800_s1 + $0xf0] sm:$0xff]   ;;  %v1288_v29 = vld [vmem:[%s1800_s1 + $0xf8] sm:$0xff]   ;;  %v1296_v36 = vld [vmem:[%s1801_s0 + $0xc] ss:$24 sps:$4 sm:$0xff]  }
   0xb   :  { %v1285_v26 = vld [vmem:[%s1800_s1 + $0x30] sm:$0xff]   ;;  %v1289_v30 = vld [vmem:[%s1800_s1 + $0x38] sm:$0xff]   ;;  %v1297_v37 = vld [vmem:[%s1800_s1 + $0x100] sm:$0xff]   ;;  %784 = vmatprep.mubr.bf16.mxu1 %v1296_v36 }
   0xc   :  { %1117 = vmatpush3.bf16.msra.mxu0 %v1269_v10  ;;  %v1286_v27 = vld [vmem:[%s1800_s1 + $0xb0] sm:$0xff]   ;;  %v1290_v31 = vld [vmem:[%s1800_s1 + $0xb8] sm:$0xff]   ;;  %v1304_v40 = vld [vmem:[%s1800_s1 + $0x108] sm:$0xff]  }
   0xd   :  { %1181 = vmatpush3.bf16.msra.mxu1 %v1270_v11  ;;  %1118 = vmatprep.subr.bf16.mxu0 %v1271_v12  ;;  %v1291_v32 = vld [vmem:[%s1801_s0] ss:$24 sps:$4 sm:$0xff]   ;;  %v1293_v33 = vld [vmem:[%s1801_s0 + $0x4] ss:$24 sps:$4 sm:$0xff]   ;;  %v1298_v38 = vld [vmem:[%s1801_s0 + $0x34] ss:$24 sps:$4 sm:$0xff]  }
   0xe   :  { %1182 = vmatprep.subr.bf16.mxu1 %v1272_v13  ;;  %687 = vmatprep.mubr.bf16.mxu0 %v1293_v33  ;;  %v1300_v39 = vld [vmem:[%s1801_s0 + $0x3c] ss:$24 sps:$4 sm:$0xff]   ;;  %v1302_v41 = vld [vmem:[%s1801_s0 + $0x30] ss:$24 sps:$4 sm:$0xff]   ;;  %v1307_v44 = vld [vmem:[%s1801_s0 + $0x6c] ss:$24 sps:$4 sm:$0xff]  }
   0xf   :  { %v1303_v42 = vld [vmem:[%s1801_s0 + $0x38] ss:$24 sps:$4 sm:$0xff]   ;;  %v1305_v43 = vld [vmem:[%s1801_s0 + $0x64] ss:$24 sps:$4 sm:$0xff]   ;;  %v1310_v48 = vld [vmem:[%s1801_s0 + $0x68] ss:$24 sps:$4 sm:$0xff]  }
  0x10   :  { %1119 = vmatpush3.bf16.msra.mxu0 %v1273_v14  ;;  %v1311_v45 = vld [vmem:[%s1800_s1 + $0x110] sm:$0xff]   ;;  %v1316_v46 = vld [vmem:[%s1800_s1 + $0x118] sm:$0xff]   ;;  %v1319_v51 = vld [vmem:[%s1800_s1 + $0x120] sm:$0xff]  }
  0x11   :  { %1183 = vmatpush3.bf16.msra.mxu1 %v1274_v15  ;;  %1120 = vmatprep.subr.bf16.mxu0 %v1275_v16  ;;  %v1309_v47 = vld [vmem:[%s1801_s0 + $0x60] ss:$24 sps:$4 sm:$0xff]   ;;  %v1312_v49 = vld [vmem:[%s1801_s0 + $0x94] ss:$24 sps:$4 sm:$0xff]   ;;  %v1317_v53 = vld [vmem:[%s1801_s0 + $0x90] ss:$24 sps:$4 sm:$0xff]  }
  0x12   :  { %1184 = vmatprep.subr.bf16.mxu1 %v1276_v17  ;;  %v1314_v50 = vld [vmem:[%s1801_s0 + $0x9c] ss:$24 sps:$4 sm:$0xff]   ;;  %v1326_v52 = vld [vmem:[%s1800_s1 + $0x128] sm:$0xff]   ;;  %v1318_v54 = vld [vmem:[%s1801_s0 + $0x98] ss:$24 sps:$4 sm:$0xff]  }
  0x13   :  { %v1320_v55 = vld [vmem:[%s1801_s0 + $0xc4] ss:$24 sps:$4 sm:$0xff]   ;;  %v1333_v57 = vld [vmem:[%s1800_s1 + $0x130] sm:$0xff]   ;;  %v1347_v59 = vld [vmem:[%s1800_s1 + $0x140] ss:$0 sps:$4 sm:$0xff]  }
  0x14   :  { %1121 = vmatpush3.bf16.msra.mxu0 %v1277_v18  ;;  %v1322_v56 = vld [vmem:[%s1801_s0 + $0xcc] ss:$24 sps:$4 sm:$0xff]   ;;  %v1340_v58 = vld [vmem:[%s1800_s1 + $0x138] sm:$0xff]   ;;  %v1325_v61 = vld [vmem:[%s1801_s0 + $0xc8] ss:$24 sps:$4 sm:$0xff]   ;;  %v653_v0 = vsel %vm651_vm0, %v1347_v59, 0 }
  0x15   :  { %1185 = vmatpush3.bf16.msra.mxu1 %v1278_v19  ;;  %1122 = vmatprep.subr.bf16.mxu0 %v1279_v20  ;;  %v1324_v60 = vld [vmem:[%s1801_s0 + $0xc0] ss:$24 sps:$4 sm:$0xff]   ;;  %v1327_v62 = vld [vmem:[%s1801_s0 + $0xf4] ss:$24 sps:$4 sm:$0xff]   ;;  %v1331_v1 = vld [vmem:[%s1801_s0 + $0xf0] ss:$24 sps:$4 sm:$0xff]  }
  0x16   :  { %1186 = vmatprep.subr.bf16.mxu1 %v1280_v21  ;;  %v1329_v63 = vld [vmem:[%s1801_s0 + $0xfc] ss:$24 sps:$4 sm:$0xff]   ;;  %v1332_v2 = vld [vmem:[%s1801_s0 + $0xf8] ss:$24 sps:$4 sm:$0xff]   ;;  %v1336_v4 = vld [vmem:[%s1801_s0 + $0x12c] ss:$24 sps:$4 sm:$0xff]  }
  0x17   :  { %v1334_v3 = vld [vmem:[%s1801_s0 + $0x124] ss:$24 sps:$4 sm:$0xff]   ;;  %v1338_v5 = vld [vmem:[%s1801_s0 + $0x120] ss:$24 sps:$4 sm:$0xff]   ;;  %v1341_v7 = vld [vmem:[%s1801_s0 + $0x154] ss:$24 sps:$4 sm:$0xff]  }
  0x18   :  { %1123 = vmatpush3.bf16.msra.mxu0 %v1281_v22  ;;  %v1339_v6 = vld [vmem:[%s1801_s0 + $0x128] ss:$24 sps:$4 sm:$0xff]   ;;  %v1343_v8 = vld [vmem:[%s1801_s0 + $0x15c] ss:$24 sps:$4 sm:$0xff]   ;;  %v1346_v10 = vld [vmem:[%s1801_s0 + $0x158] ss:$24 sps:$4 sm:$0xff]  }
  0x19   :  { %1187 = vmatpush3.bf16.msra.mxu1 %v1282_v23  ;;  %1124 = vmatprep.subr.bf16.mxu0 %v1283_v24  ;;  %v1345_v9 = vld [vmem:[%s1801_s0 + $0x150] ss:$24 sps:$4 sm:$0xff]   ;;  %v1350_v11 = vld [vmem:[%s1801_s0 + $0x14] ss:$24 sps:$4 sm:$0xff]   ;;  %v1354_v15 = vld [vmem:[%s1801_s0 + $0x44] ss:$24 sps:$4 sm:$0xff]  }
  0x1a   :  { %1188 = vmatprep.subr.bf16.mxu1 %v1284_v25  ;;  %v1353_v12 = vld [vmem:[%s1801_s0 + $0xd4] ss:$24 sps:$4 sm:$0xff]   ;;  %v1348_v13 = vld [vmem:[%s1801_s0 + $0x10] ss:$24 sps:$4 sm:$0xff]   ;;  %v1356_v16 = vld [vmem:[%s1801_s0 + $0x104] ss:$24 sps:$4 sm:$0xff]  }
  0x1b   :  { %v1351_v14 = vld [vmem:[%s1801_s0 + $0xd0] ss:$24 sps:$4 sm:$0xff]   ;;  %v1358_v17 = vld [vmem:[%s1801_s0 + $0x40] ss:$24 sps:$4 sm:$0xff]   ;;  %v1360_v19 = vld [vmem:[%s1801_s0 + $0x74] ss:$24 sps:$4 sm:$0xff]  }
  0x1c   :  { %1125 = vmatpush3.bf16.msra.mxu0 %v1285_v26  ;;  %v1359_v18 = vld [vmem:[%s1801_s0 + $0x100] ss:$24 sps:$4 sm:$0xff]   ;;  %v1362_v20 = vld [vmem:[%s1801_s0 + $0x134] ss:$24 sps:$4 sm:$0xff]   ;;  %v1364_v21 = vld [vmem:[%s1801_s0 + $0x70] ss:$24 sps:$4 sm:$0xff]  }
  0x1d   :  { %1189 = vmatpush3.bf16.msra.mxu1 %v1286_v27  ;;  %1126 = vmatprep.subr.bf16.mxu0 %v1287_v28  ;;  %v1365_v22 = vld [vmem:[%s1801_s0 + $0x130] ss:$24 sps:$4 sm:$0xff]   ;;  %v1366_v23 = vld [vmem:[%s1801_s0 + $0xa4] ss:$24 sps:$4 sm:$0xff]   ;;  %v1370_v25 = vld [vmem:[%s1801_s0 + $0xa0] ss:$24 sps:$4 sm:$0xff]  }
  0x1e   :  { %1190 = vmatprep.subr.bf16.mxu1 %v1288_v29  ;;  %v1368_v24 = vld [vmem:[%s1801_s0 + $0x164] ss:$24 sps:$4 sm:$0xff]   ;;  %v1371_v26 = vld [vmem:[%s1801_s0 + $0x160] ss:$24 sps:$4 sm:$0xff]  }
  0x1f   :  { %v1689_v29 = vld [vmem:[%s1802_s2] ss:$0 sm:$0xff] }
  0x20   :  { %1127 = vmatpush3.bf16.msra.mxu0 %v1289_v30 }
  0x21   :  { %1191 = vmatpush3.bf16.msra.mxu1 %v1290_v31  ;;  %849 = vmatprep.subr.bf16.mxu0 %v1372_v34 }
  0x22   :  { %1240 = vmatprep.subr.bf16.mxu1 %v1372_v34 }
  0x23   :  { %688 = vmatmul.mubr.bf16.vlgmr.msra.gmra.mrb[0].mxu0 %v1291_v32 }
  0x24   :  { %785 = vmatmul.mubr.bf16.vlgmr.msra.gmra.mrb[0].mxu1 %v1294_v35  ;;  %850 = vmatpush1.bf16.msra.mxu0 %v1297_v37 }
  0x25   :  { %1249 = vmatpush1.bf16.msra.mxu1 %v1297_v37  ;;  %695 = vmatprep.mubr.bf16.mxu0 %v1298_v38 }
  0x26   :  { %792 = vmatprep.mubr.bf16.mxu1 %v1300_v39  ;;  %851 = vmatprep.subr.bf16.mxu0 %v1372_v34 }
  0x27   :  { %1241 = vmatprep.subr.bf16.mxu1 %v1372_v34 }
  0x28   :  { %852 = vmatpush1.bf16.msra.mxu0 %v1304_v40 }
  0x29   :  { %1250 = vmatpush1.bf16.msra.mxu1 %v1304_v40  ;;  %853 = vmatprep.subr.bf16.mxu0 %v1372_v34 }
  0x2a   :  { %1242 = vmatprep.subr.bf16.mxu1 %v1372_v34 }
  0x2b   :  { %696 = vmatmul.mubr.bf16.gmra.mrb[4].mxu0 %v1302_v41 }
  0x2c   :  { %793 = vmatmul.mubr.bf16.gmra.mrb[4].mxu1 %v1303_v42  ;;  %703 = vmatprep.mubr.bf16.mxu0 %v1305_v43 }
  0x2d   :  { %800 = vmatprep.mubr.bf16.mxu1 %v1307_v44  ;;  %854 = vmatpush1.bf16.msra.mxu0 %v1311_v45 }
  0x2e   :  { %1251 = vmatpush1.bf16.msra.mxu1 %v1311_v45  ;;  %855 = vmatprep.subr.bf16.mxu0 %v1372_v34 }
  0x2f   :  { %1243 = vmatprep.subr.bf16.mxu1 %v1372_v34 }
  0x31   :  { %856 = vmatpush1.bf16.msra.mxu0 %v1316_v46 }
  0x32   :  { %1252 = vmatpush1.bf16.msra.mxu1 %v1316_v46  ;;  %857 = vmatprep.subr.bf16.mxu0 %v1372_v34 }
  0x33   :  { %704 = vmatmul.mubr.bf16.gmra.mrb[8].mxu0 %v1309_v47  ;;  %1244 = vmatprep.subr.bf16.mxu1 %v1372_v34 }
  0x34   :  { %801 = vmatmul.mubr.bf16.gmra.mrb[8].mxu1 %v1310_v48  ;;  %711 = vmatprep.mubr.bf16.mxu0 %v1312_v49 }
  0x35   :  { %808 = vmatprep.mubr.bf16.mxu1 %v1314_v50  ;;  %858 = vmatpush1.bf16.msra.mxu0 %v1319_v51 }
  0x36   :  { %1253 = vmatpush1.bf16.msra.mxu1 %v1319_v51  ;;  %859 = vmatprep.subr.bf16.mxu0 %v1372_v34 }
  0x37   :  { %1245 = vmatprep.subr.bf16.mxu1 %v1372_v34 }
  0x39   :  { %860 = vmatpush1.bf16.msra.mxu0 %v1326_v52 }
  0x3a   :  { %1254 = vmatpush1.bf16.msra.mxu1 %v1326_v52  ;;  %861 = vmatprep.subr.bf16.mxu0 %v1372_v34 }
  0x3b   :  { %712 = vmatmul.mubr.bf16.gmra.mrb[12].mxu0 %v1317_v53  ;;  %1246 = vmatprep.subr.bf16.mxu1 %v1372_v34 }
  0x3c   :  { %809 = vmatmul.mubr.bf16.gmra.mrb[12].mxu1 %v1318_v54  ;;  %719 = vmatprep.mubr.bf16.mxu0 %v1320_v55 }
  0x3d   :  { %816 = vmatprep.mubr.bf16.mxu1 %v1322_v56  ;;  %862 = vmatpush1.bf16.msra.mxu0 %v1333_v57 }
  0x3e   :  { %1255 = vmatpush1.bf16.msra.mxu1 %v1333_v57  ;;  %863 = vmatprep.subr.bf16.mxu0 %v1372_v34 }
  0x3f   :  { %1247 = vmatprep.subr.bf16.mxu1 %v1372_v34 }
  0x41   :  { %864 = vmatpush1.bf16.msra.mxu0 %v1340_v58 }
  0x42   :  { %1256 = vmatpush1.bf16.msra.mxu1 %v1340_v58  ;;  %865 = vmatprep.subr.bf16.mxu0 %v1372_v34 }
  0x43   :  { %720 = vmatmul.mubr.bf16.gmra.mrb[16].mxu0 %v1324_v60  ;;  %1248 = vmatprep.subr.bf16.mxu1 %v1372_v34 }
  0x44   :  { %817 = vmatmul.mubr.bf16.gmra.mrb[16].mxu1 %v1325_v61  ;;  %727 = vmatprep.mubr.bf16.mxu0 %v1327_v62 }
  0x45   :  { %824 = vmatprep.mubr.bf16.mxu1 %v1329_v63  ;;  %866 = vmatpush1.bf16.msra.mxu0 %v653_v0 }
  0x46   :  { %1257 = vmatpush1.bf16.msra.mxu1 %v653_v0 }
  0x4b   :  { %728 = vmatmul.mubr.bf16.gmra.mrb[20].mxu0 %v1331_v1 }
  0x4c   :  { %825 = vmatmul.mubr.bf16.gmra.mrb[20].mxu1 %v1332_v2  ;;  %735 = vmatprep.mubr.bf16.mxu0 %v1334_v3 }
  0x4d   :  { %832 = vmatprep.mubr.bf16.mxu1 %v1336_v4 }
  0x53   :  { %736 = vmatmul.mubr.bf16.gmra.mrb[24].mxu0 %v1338_v5 }
  0x54   :  { %833 = vmatmul.mubr.bf16.gmra.mrb[24].mxu1 %v1339_v6  ;;  %743 = vmatprep.mubr.bf16.mxu0 %v1341_v7 }
  0x55   :  { %840 = vmatprep.mubr.bf16.mxu1 %v1343_v8 }
  0x5b   :  { %744 = vmatmul.mubr.bf16.gmra.mrb[28].mxu0 %v1345_v9 }
  0x5c   :  { %841 = vmatmul.mubr.bf16.gmra.mrb[28].mxu1 %v1346_v10  ;;  %1104 = vmatprep.mubr.msk.bf16.mxu0 %vm626_vm1, %v1350_v11 }
  0x5d   :  { %1108 = vmatprep.mubr.msk.bf16.mxu1 %vm626_vm1, %v1353_v12 }
  0x63   :  { %882 = vmatmul.mubr.bf16.vlgmr.msra.gmra.mrb[32].mxu0 %v1348_v13 }
  0x64   :  { %914 = vmatmul.mubr.bf16.vlgmr.msra.gmra.mrb[32].mxu1 %v1351_v14  ;;  %1105 = vmatprep.mubr.msk.bf16.mxu0 %vm626_vm1, %v1354_v15 }
  0x65   :  { %1109 = vmatprep.mubr.msk.bf16.mxu1 %vm626_vm1, %v1356_v16 }
  0x6b   :  { %890 = vmatmul.mubr.bf16.gmra.mrb[36].mxu0 %v1358_v17 }
  0x6c   :  { %922 = vmatmul.mubr.bf16.gmra.mrb[36].mxu1 %v1359_v18  ;;  %1106 = vmatprep.mubr.msk.bf16.mxu0 %vm626_vm1, %v1360_v19 }
  0x6d   :  { %1110 = vmatprep.mubr.msk.bf16.mxu1 %vm626_vm1, %v1362_v20 }
  0x73   :  { %898 = vmatmul.mubr.bf16.gmra.mrb[40].mxu0 %v1364_v21 }
  0x74   :  { %930 = vmatmul.mubr.bf16.gmra.mrb[40].mxu1 %v1365_v22  ;;  %1107 = vmatprep.mubr.msk.bf16.mxu0 %vm626_vm1, %v1366_v23 }
  0x75   :  { %1111 = vmatprep.mubr.msk.bf16.mxu1 %vm626_vm1, %v1368_v24 }
  0x7b   :  { %906 = vmatmul.mubr.bf16.gmra.mrb[44].mxu0 %v1370_v25 }
  0x7c   :  { %938 = vmatmul.mubr.bf16.gmra.mrb[44].mxu1 %v1371_v26 }
  0xf6   :  { %v1128_v27 = vpop.f32.mrb[0].mxu0 }
  0xf7   :  { %v1192_v28 = vpop.f32.mrb[0].mxu1  ;;  %v1129_v30 = vpop.f32.mrb[1].mxu0 }
  0xf8   :  { %v1130_v31 = vadd.f32 %v1129_v30, %v1128_v27  ;;  %v1193_v32 = vpop.f32.mrb[1].mxu1  ;;  %v1131_v33 = vpop.f32.mrb[2].mxu0 }
  0xf9   :  { %v1194_v34 = vadd.f32 %v1193_v32, %v1192_v28  ;;  %v1195_v35 = vpop.f32.mrb[2].mxu1  ;;  %v1132_v36 = vpop.f32.mrb[3].mxu0 }
  0xfa   :  { %v690_v37 = vadd.f32 %v1130_v31, %v1689_v29  ;;  %v1133_v38 = vadd.f32 %v1132_v36, %v1131_v33  ;;  %v1196_v39 = vpop.f32.mrb[3].mxu1 }
  0xfb   :  { %v1197_v40 = vadd.f32 %v1196_v39, %v1195_v35 }
  0xfc   :  { %v693_v41 = vadd.f32 %v1133_v38, %v1689_v29  ;;  %v1693_v42 = vadd.f32 %v1194_v34, %v690_v37 }
  0xfe   :  { %v1134_v43 = vpop.f32.mrb[4].mxu0  ;;  %v1695_v44 = vadd.f32 %v1197_v40, %v693_v41 }
  0xff   :  { %v1198_v45 = vpop.f32.mrb[4].mxu1  ;;  %v1135_v46 = vpop.f32.mrb[5].mxu0 }
 0x100   :  { %v1136_v47 = vadd.f32 %v1135_v46, %v1134_v43  ;;  %v1199_v48 = vpop.f32.mrb[5].mxu1  ;;  %v1137_v49 = vpop.f32.mrb[6].mxu0 }
 0x101   :  { %v1200_v50 = vadd.f32 %v1199_v48, %v1198_v45  ;;  %v1201_v51 = vpop.f32.mrb[6].mxu1  ;;  %v1138_v52 = vpop.f32.mrb[7].mxu0 }
 0x102   :  { %v698_v53 = vadd.f32 %v1136_v47, %v1689_v29  ;;  %v1139_v54 = vadd.f32 %v1138_v52, %v1137_v49  ;;  %v1202_v55 = vpop.f32.mrb[7].mxu1 }
 0x103   :  { %v1203_v56 = vadd.f32 %v1202_v55, %v1201_v51 }
 0x104   :  { %v701_v57 = vadd.f32 %v1139_v54, %v1689_v29  ;;  %v1699_v58 = vadd.f32 %v1200_v50, %v698_v53 }
 0x106   :  { %v1140_v59 = vpop.f32.mrb[8].mxu0  ;;  %v1701_v60 = vadd.f32 %v1203_v56, %v701_v57 }
 0x107   :  { %v1204_v61 = vpop.f32.mrb[8].mxu1  ;;  %v1141_v62 = vpop.f32.mrb[9].mxu0 }
 0x108   :  { %v1142_v63 = vadd.f32 %v1141_v62, %v1140_v59  ;;  %v1205_v0 = vpop.f32.mrb[9].mxu1  ;;  %v1143_v1 = vpop.f32.mrb[10].mxu0 }
 0x109   :  { %v1206_v2 = vadd.f32 %v1205_v0, %v1204_v61  ;;  %v1207_v3 = vpop.f32.mrb[10].mxu1  ;;  %v1144_v4 = vpop.f32.mrb[11].mxu0 }
 0x10a   :  { %v706_v5 = vadd.f32 %v1142_v63, %v1689_v29  ;;  %v1145_v6 = vadd.f32 %v1144_v4, %v1143_v1  ;;  %v1208_v7 = vpop.f32.mrb[11].mxu1 }
 0x10b   :  { %v1209_v8 = vadd.f32 %v1208_v7, %v1207_v3 }
 0x10c   :  { %v709_v9 = vadd.f32 %v1145_v6, %v1689_v29  ;;  %v1705_v10 = vadd.f32 %v1206_v2, %v706_v5 }
 0x10e   :  { %v1146_v11 = vpop.f32.mrb[12].mxu0  ;;  %v1707_v12 = vadd.f32 %v1209_v8, %v709_v9 }
 0x10f   :  { %v1210_v13 = vpop.f32.mrb[12].mxu1  ;;  %v1147_v14 = vpop.f32.mrb[13].mxu0 }
 0x110   :  { %v1148_v15 = vadd.f32 %v1147_v14, %v1146_v11  ;;  %v1211_v16 = vpop.f32.mrb[13].mxu1  ;;  %v1149_v17 = vpop.f32.mrb[14].mxu0 }
 0x111   :  { %v1212_v18 = vadd.f32 %v1211_v16, %v1210_v13  ;;  %v1213_v19 = vpop.f32.mrb[14].mxu1  ;;  %v1150_v20 = vpop.f32.mrb[15].mxu0 }
 0x112   :  { %v714_v21 = vadd.f32 %v1148_v15, %v1689_v29  ;;  %v1151_v22 = vadd.f32 %v1150_v20, %v1149_v17  ;;  %v1214_v23 = vpop.f32.mrb[15].mxu1 }
 0x113   :  { %v1215_v24 = vadd.f32 %v1214_v23, %v1213_v19 }
 0x114   :  { %v717_v25 = vadd.f32 %v1151_v22, %v1689_v29  ;;  %v1711_v26 = vadd.f32 %v1212_v18, %v714_v21 }
 0x116   :  { %v1152_v27 = vpop.f32.mrb[16].mxu0  ;;  %v1713_v28 = vadd.f32 %v1215_v24, %v717_v25 }
 0x117   :  { %v1216_v30 = vpop.f32.mrb[16].mxu1  ;;  %v1153_v31 = vpop.f32.mrb[17].mxu0 }
 0x118   :  { %v1154_v32 = vadd.f32 %v1153_v31, %v1152_v27  ;;  %v1217_v33 = vpop.f32.mrb[17].mxu1  ;;  %v1155_v34 = vpop.f32.mrb[18].mxu0 }
 0x119   :  { %v1218_v35 = vadd.f32 %v1217_v33, %v1216_v30  ;;  %v1219_v36 = vpop.f32.mrb[18].mxu1  ;;  %v1156_v37 = vpop.f32.mrb[19].mxu0 }
 0x11a   :  { %v722_v38 = vadd.f32 %v1154_v32, %v1689_v29  ;;  %v1157_v39 = vadd.f32 %v1156_v37, %v1155_v34  ;;  %v1220_v40 = vpop.f32.mrb[19].mxu1 }
 0x11b   :  { %v1221_v41 = vadd.f32 %v1220_v40, %v1219_v36 }
 0x11c   :  { %v725_v43 = vadd.f32 %v1157_v39, %v1689_v29  ;;  %v819_v45 = vadd.f32 %v1218_v35, %v722_v38 }
 0x11e   :  { %v1158_v46 = vpop.f32.mrb[20].mxu0  ;;  %v1717_v47 = vadd.f32 %v1221_v41, %v725_v43 }
 0x11f   :  { %v1222_v48 = vpop.f32.mrb[20].mxu1  ;;  %v1159_v49 = vpop.f32.mrb[21].mxu0 }
 0x120   :  { %v1160_v50 = vadd.f32 %v1159_v49, %v1158_v46  ;;  %v1223_v51 = vpop.f32.mrb[21].mxu1  ;;  %v1161_v52 = vpop.f32.mrb[22].mxu0 }
 0x121   :  { %v1224_v53 = vadd.f32 %v1223_v51, %v1222_v48  ;;  %v1225_v54 = vpop.f32.mrb[22].mxu1  ;;  %v1162_v55 = vpop.f32.mrb[23].mxu0 }
 0x122   :  { %v730_v56 = vadd.f32 %v1160_v50, %v1689_v29  ;;  %v1163_v57 = vadd.f32 %v1162_v55, %v1161_v52  ;;  %v1226_v59 = vpop.f32.mrb[23].mxu1 }
 0x123   :  { %v1227_v61 = vadd.f32 %v1226_v59, %v1225_v54 }
 0x124   :  { %v733_v62 = vadd.f32 %v1163_v57, %v1689_v29  ;;  %v1721_v63 = vadd.f32 %v1224_v53, %v730_v56 }
 0x126   :  { %v1164_v0 = vpop.f32.mrb[24].mxu0  ;;  %v1723_v1 = vadd.f32 %v1227_v61, %v733_v62 }
 0x127   :  { %v1228_v2 = vpop.f32.mrb[24].mxu1  ;;  %v1165_v3 = vpop.f32.mrb[25].mxu0 }
 0x128   :  { %v1166_v4 = vadd.f32 %v1165_v3, %v1164_v0  ;;  %v1229_v5 = vpop.f32.mrb[25].mxu1  ;;  %v1167_v6 = vpop.f32.mrb[26].mxu0 }
 0x129   :  { %v1230_v7 = vadd.f32 %v1229_v5, %v1228_v2  ;;  %v1231_v8 = vpop.f32.mrb[26].mxu1  ;;  %v1168_v9 = vpop.f32.mrb[27].mxu0 }
 0x12a   :  { %v738_v11 = vadd.f32 %v1166_v4, %v1689_v29  ;;  %v1169_v13 = vadd.f32 %v1168_v9, %v1167_v6  ;;  %v1232_v14 = vpop.f32.mrb[27].mxu1 }
 0x12b   :  { %v1233_v15 = vadd.f32 %v1232_v14, %v1231_v8 }
 0x12c   :  { %v741_v16 = vadd.f32 %v1169_v13, %v1689_v29  ;;  %v1727_v17 = vadd.f32 %v1230_v7, %v738_v11 }
 0x12e   :  { %v1170_v18 = vpop.f32.mrb[28].mxu0  ;;  %v1729_v19 = vadd.f32 %v1233_v15, %v741_v16 }
 0x12f   :  { %v1234_v20 = vpop.f32.mrb[28].mxu1  ;;  %v1171_v21 = vpop.f32.mrb[29].mxu0 }
 0x130   :  { %v1172_v22 = vadd.f32 %v1171_v21, %v1170_v18  ;;  %v1235_v23 = vpop.f32.mrb[29].mxu1  ;;  %v1173_v24 = vpop.f32.mrb[30].mxu0 }
 0x131   :  { %v1236_v25 = vadd.f32 %v1235_v23, %v1234_v20  ;;  %v1237_v27 = vpop.f32.mrb[30].mxu1  ;;  %v1174_v30 = vpop.f32.mrb[31].mxu0 }
 0x132   :  { %v746_v31 = vadd.f32 %v1172_v22, %v1689_v29  ;;  %v1175_v32 = vadd.f32 %v1174_v30, %v1173_v24  ;;  %v1238_v33 = vpop.f32.mrb[31].mxu1 }
 0x133   :  { %v1239_v34 = vadd.f32 %v1238_v33, %v1237_v27 }
 0x134   :  { %v749_v35 = vadd.f32 %v1175_v32, %v1689_v29  ;;  %v1733_v36 = vadd.f32 %v1236_v25, %v746_v31 }
 0x136   :  { %v883_v37 = vpop.f32.mrb[32].mxu0  ;;  %v1735_v38 = vadd.f32 %v1239_v34, %v749_v35 }
 0x137   :  { %v884_v39 = vadd.f32 %v883_v37, %v1693_v42  ;;  %v915_v40 = vpop.f32.mrb[32].mxu1  ;;  %v885_v41 = vpop.f32.mrb[33].mxu0 }
 0x138   :  { %v916_v43 = vadd.f32 %v915_v40, %v819_v45  ;;  %v917_v46 = vpop.f32.mrb[33].mxu1  ;;  %v886_v48 = vpop.f32.mrb[34].mxu0 }
 0x139   :  { %vm946_vm2 = vcmp.gt.f32.partialorder %v884_v39, 0.0  ;;  %v962_v49 = vmul.f32 0.01, %v884_v39  ;;  %v887_v50 = vadd.f32 %v886_v48, %v1695_v44  ;;  %v918_v51 = vpop.f32.mrb[34].mxu1  ;;  %v888_v52 = vpop.f32.mrb[35].mxu0 }
 0x13a   :  { %vm954_vm3 = vcmp.gt.f32.partialorder %v916_v43, 0.0  ;;  %v970_v29 = vmul.f32 0.01, %v916_v43  ;;  %v919_v53 = vadd.f32 %v918_v51, %v1717_v47  ;;  %v920_v54 = vpop.f32.mrb[35].mxu1 }
 0x13b   :  { %v978_v55 = vsel %vm946_vm2, %v884_v39, %v962_v49  ;;  %vm947_vm4 = vcmp.gt.f32.partialorder %v887_v50, 0.0  ;;  %v963_v56 = vmul.f32 0.01, %v887_v50 }
 0x13c   :  { %994 = vst [vmem:[%s1803_s3] sm:$0xff] %v978_v55  ;;  %v986_v42 = vsel %vm954_vm3, %v916_v43, %v970_v29  ;;  %vm955_vm5 = vcmp.gt.f32.partialorder %v919_v53, 0.0  ;;  %v971_v45 = vmul.f32 0.01, %v919_v53 }
 0x13d   :  { %1002 = vst [vmem:[%s1803_s3 + $0x40] sm:$0xff] %v986_v42  ;;  %v979_v44 = vsel %vm947_vm4, %v887_v50, %v963_v56 }
 0x13e   :  { %995 = vst [vmem:[%s1803_s3 + $0x8] sm:$0xff] %v979_v44  ;;  %v987_v47 = vsel %vm955_vm5, %v919_v53, %v971_v45  ;;  %v891_v57 = vpop.f32.mrb[36].mxu0 }
 0x13f   :  { %1003 = vst [vmem:[%s1803_s3 + $0x48] sm:$0xff] %v987_v47  ;;  %v892_v59 = vadd.f32 %v891_v57, %v1699_v58  ;;  %v923_v61 = vpop.f32.mrb[36].mxu1  ;;  %v893_v62 = vpop.f32.mrb[37].mxu0 }
 0x140   :  { %v924_v0 = vadd.f32 %v923_v61, %v1721_v63  ;;  %v925_v2 = vpop.f32.mrb[37].mxu1  ;;  %v894_v3 = vpop.f32.mrb[38].mxu0 }
 0x141   :  { %vm948_vm6 = vcmp.gt.f32.partialorder %v892_v59, 0.0  ;;  %v964_v4 = vmul.f32 0.01, %v892_v59  ;;  %v895_v5 = vadd.f32 %v894_v3, %v1701_v60  ;;  %v926_v6 = vpop.f32.mrb[38].mxu1  ;;  %v896_v7 = vpop.f32.mrb[39].mxu0 }
 0x142   :  { %vm956_vm7 = vcmp.gt.f32.partialorder %v924_v0, 0.0  ;;  %v972_v8 = vmul.f32 0.01, %v924_v0  ;;  %v927_v9 = vadd.f32 %v926_v6, %v1723_v1  ;;  %v928_v11 = vpop.f32.mrb[39].mxu1 }
 0x143   :  { %v980_v13 = vsel %vm948_vm6, %v892_v59, %v964_v4  ;;  %vm949_vm8 = vcmp.gt.f32.partialorder %v895_v5, 0.0  ;;  %v965_v58 = vmul.f32 0.01, %v895_v5 }
 0x144   :  { %996 = vst [vmem:[%s1803_s3 + $0x10] sm:$0xff] %v980_v13  ;;  %v988_v63 = vsel %vm956_vm7, %v924_v0, %v972_v8  ;;  %vm957_vm9 = vcmp.gt.f32.partialorder %v927_v9, 0.0  ;;  %v973_v14 = vmul.f32 0.01, %v927_v9 }
 0x145   :  { %1004 = vst [vmem:[%s1803_s3 + $0x50] sm:$0xff] %v988_v63  ;;  %v981_v60 = vsel %vm949_vm8, %v895_v5, %v965_v58 }
 0x146   :  { %997 = vst [vmem:[%s1803_s3 + $0x18] sm:$0xff] %v981_v60  ;;  %v989_v1 = vsel %vm957_vm9, %v927_v9, %v973_v14  ;;  %v899_v15 = vpop.f32.mrb[40].mxu0 }
 0x147   :  { %1005 = vst [vmem:[%s1803_s3 + $0x58] sm:$0xff] %v989_v1  ;;  %v900_v16 = vadd.f32 %v899_v15, %v1705_v10  ;;  %v931_v18 = vpop.f32.mrb[40].mxu1  ;;  %v901_v20 = vpop.f32.mrb[41].mxu0 }
 0x148   :  { %v932_v21 = vadd.f32 %v931_v18, %v1727_v17  ;;  %v933_v22 = vpop.f32.mrb[41].mxu1  ;;  %v902_v23 = vpop.f32.mrb[42].mxu0 }
 0x149   :  { %vm950_vm10 = vcmp.gt.f32.partialorder %v900_v16, 0.0  ;;  %v966_v24 = vmul.f32 0.01, %v900_v16  ;;  %v903_v25 = vadd.f32 %v902_v23, %v1707_v12  ;;  %v934_v27 = vpop.f32.mrb[42].mxu1  ;;  %v904_v30 = vpop.f32.mrb[43].mxu0 }
 0x14a   :  { %vm958_vm11 = vcmp.gt.f32.partialorder %v932_v21, 0.0  ;;  %v974_v31 = vmul.f32 0.01, %v932_v21  ;;  %v935_v32 = vadd.f32 %v934_v27, %v1729_v19  ;;  %v936_v33 = vpop.f32.mrb[43].mxu1 }
 0x14b   :  { %v982_v34 = vsel %vm950_vm10, %v900_v16, %v966_v24  ;;  %vm951_vm12 = vcmp.gt.f32.partialorder %v903_v25, 0.0  ;;  %v967_v10 = vmul.f32 0.01, %v903_v25 }
 0x14c   :  { %998 = vst [vmem:[%s1803_s3 + $0x20] sm:$0xff] %v982_v34  ;;  %v990_v17 = vsel %vm958_vm11, %v932_v21, %v974_v31  ;;  %vm959_vm13 = vcmp.gt.f32.partialorder %v935_v32, 0.0  ;;  %v975_v35 = vmul.f32 0.01, %v935_v32 }
 0x14d   :  { %1006 = vst [vmem:[%s1803_s3 + $0x60] sm:$0xff] %v990_v17  ;;  %v983_v12 = vsel %vm951_vm12, %v903_v25, %v967_v10 }
 0x14e   :  { %999 = vst [vmem:[%s1803_s3 + $0x28] sm:$0xff] %v983_v12  ;;  %v991_v19 = vsel %vm959_vm13, %v935_v32, %v975_v35  ;;  %v907_v37 = vpop.f32.mrb[44].mxu0 }
 0x14f   :  { %1007 = vst [vmem:[%s1803_s3 + $0x68] sm:$0xff] %v991_v19  ;;  %v908_v39 = vadd.f32 %v907_v37, %v1711_v26  ;;  %v939_v40 = vpop.f32.mrb[44].mxu1  ;;  %v909_v41 = vpop.f32.mrb[45].mxu0 }
 0x150   :  { %v940_v43 = vadd.f32 %v939_v40, %v1733_v36  ;;  %v941_v46 = vpop.f32.mrb[45].mxu1  ;;  %v910_v48 = vpop.f32.mrb[46].mxu0 }
 0x151   :  { %vm952_vm14 = vcmp.gt.f32.partialorder %v908_v39, 0.0  ;;  %v968_v49 = vmul.f32 0.01, %v908_v39  ;;  %v911_v50 = vadd.f32 %v910_v48, %v1713_v28  ;;  %v942_v51 = vpop.f32.mrb[46].mxu1  ;;  %v912_v52 = vpop.f32.mrb[47].mxu0 }
 0x152   :  { %vm960_vm15 = vcmp.gt.f32.partialorder %v940_v43, 0.0  ;;  %v976_v29 = vmul.f32 0.01, %v940_v43  ;;  %v943_v53 = vadd.f32 %v942_v51, %v1735_v38  ;;  %v944_v54 = vpop.f32.mrb[47].mxu1 }
 0x153   :  { %v984_v55 = vsel %vm952_vm14, %v908_v39, %v968_v49  ;;  %vm953_vm0 = vcmp.gt.f32.partialorder %v911_v50, 0.0  ;;  %v969_v26 = vmul.f32 0.01, %v911_v50 }
 0x154   :  { %1000 = vst [vmem:[%s1803_s3 + $0x30] sm:$0xff] %v984_v55  ;;  %v992_v36 = vsel %vm960_vm15, %v940_v43, %v976_v29  ;;  %vm961_vm1 = vcmp.gt.f32.partialorder %v943_v53, 0.0  ;;  %v977_v56 = vmul.f32 0.01, %v943_v53 }
 0x155   :  { %1008 = vst [vmem:[%s1803_s3 + $0x70] sm:$0xff] %v992_v36  ;;  %v985_v28 = vsel %vm953_vm0, %v911_v50, %v969_v26 }
 0x156   :  { %1001 = vst [vmem:[%s1803_s3 + $0x38] sm:$0xff] %v985_v28  ;;  %v993_v38 = vsel %vm961_vm1, %v943_v53, %v977_v56 }
 0x157   :  { %1009 = vst [vmem:[%s1803_s3 + $0x78] sm:$0xff] %v993_v38 }

// kernel: tile.66
= control target key start
LH: loop header
LB: loop body
LE: loop exit
PB: predicated region body
PF: predicated region fallthrough
CT: control target
= control target key end

     0   :  { %s22_s0 = inlined_call_operand.vmem [shape: f32[16], index: 0, kind: input, shape index: {}]   ;;  %s23_s1 = inlined_call_operand.vmem [shape: f32[8,16], index: 1, kind: output, shape index: {}]  }
   0x1   :  { %v4_v0 = vld [vmem:[%s22_s0] ss:$0 sm:$0xff] }
   0x2   :  { %5 = vst [vmem:[%s23_s1] sm:$0xff] %v4_v0 }

// kernel: tile.67
= control target key start
LH: loop header
LB: loop body
LE: loop exit
PB: predicated region body
PF: predicated region fallthrough
CT: control target
= control target key end

     0   :  { %s67_s10 = smov 112   ;;  %s68_s11 = smov 80   ;;  %vm3_vm0 = vcmask 130048   ;;  %vm9_vm1 = vcmask 1048448   ;;  %vm15_vm2 = vcmask 917248   ;;  %vm21_vm3 = vcmask 786048   ;;  %s111_s0 = inlined_call_operand.vmem [shape: f32[8,16], index: 0, kind: input, shape index: {}]   ;;  %s112_s1 = inlined_call_operand.vmem [shape: f32[1,128], index: 1, kind: output, shape index: {}]  }
   0x1   :  { %v53_v0 = vld [vmem:[%s111_s0 + $0x7] sm:$0x1]   ;;  %v55_v1 = vld [vmem:[%s111_s0 + $0x5] sm:$0x1]   ;;  %v54_v2 = vld [vmem:[%s111_s0 + $0x6] sm:$0x1]  }
   0x2   :  { %7 = vrot.lane.b32.xlu0 %v53_v0, %s67_s10  ;;  %19 = vrot.lane.b32.xlu1 %v55_v1, %s68_s11  ;;  %v56_v3 = vld [vmem:[%s111_s0 + $0x4] sm:$0x1]   ;;  %v2_v4 = vld [vmem:[%s111_s0] sm:$0x1]   ;;  %s69_s18 = smov 96   ;;  %s70_s19 = smov 64  }
   0x3   :  { %4 = vst.msk [vmem:[#allocation0] sm:$0x1] %vm3_vm0, %v2_v4   ;;  %v57_v5 = vld [vmem:[%s111_s0 + $0x3] sm:$0x1]   ;;  %v58_v6 = vld [vmem:[%s111_s0 + $0x2] sm:$0x1]  }
   0x4   :  { %s71_s24 = smov 48   ;;  %s72_s25 = smov 32   ;;  %v59_v7 = vld [vmem:[%s111_s0 + $0x1] sm:$0x1]   ;;  %vm27_vm4 = vcmask 654848   ;;  %vm33_vm5 = vcmask 523648  }
   0x5   :  { %s73_s0 = smov 16   ;;  %vm39_vm6 = vcmask 392448   ;;  %vm45_vm7 = vcmask 261248  }
   0x6   :  { %13 = vrot.lane.b32.xlu0 %v54_v2, %s69_s18  ;;  %25 = vrot.lane.b32.xlu1 %v56_v3, %s70_s19 }
   0xa   :  { %31 = vrot.lane.b32.xlu0 %v57_v5, %s71_s24  ;;  %37 = vrot.lane.b32.xlu1 %v58_v6, %s72_s25 }
   0xe   :  { %43 = vrot.lane.b32.xlu0 %v59_v7, %s73_s0 }
  0x74   :  { %v8_v8 = vpop.permute.xlu0 %7   ;;  %v20_v9 = vpop.permute.xlu1 %19  }
  0x75   :  { %10 = vst.msk [vmem:[#allocation0] sm:$0x1] %vm9_vm1, %v8_v8  }
  0x78   :  { %v14_v10 = vpop.permute.xlu0 %13   ;;  %v26_v11 = vpop.permute.xlu1 %25  }
  0x79   :  { %16 = vst.msk [vmem:[#allocation0] sm:$0x1] %vm15_vm2, %v14_v10  }
  0x7a   :  { %22 = vst.msk [vmem:[#allocation0] sm:$0x1] %vm21_vm3, %v20_v9  }
  0x7b   :  { %28 = vst.msk [vmem:[#allocation0] sm:$0x1] %vm27_vm4, %v26_v11  }
  0x7c   :  { %v32_v12 = vpop.permute.xlu0 %31   ;;  %v38_v13 = vpop.permute.xlu1 %37  }
  0x7d   :  { %34 = vst.msk [vmem:[#allocation0] sm:$0x1] %vm33_vm5, %v32_v12  }
  0x7e   :  { %40 = vst.msk [vmem:[#allocation0] sm:$0x1] %vm39_vm6, %v38_v13  }
  0x80   :  { %v44_v14 = vpop.permute.xlu0 %43  }
  0x81   :  { %46 = vst.msk [vmem:[#allocation0] sm:$0x1] %vm45_vm7, %v44_v14  }
  0x88   :  { %v50_v15 = vld [vmem:[#allocation0] sm:$0x1] }
  0x89   :  { %52 = vst [vmem:[%s112_s1] sm:$0x1] %v50_v15 }

// kernel: cae5_forward.12
= control target key start
LH: loop header
LB: loop body
LE: loop exit
PB: predicated region body
PF: predicated region fallthrough
CT: control target
= control target key end

     0   :  { %v1277_v41 = vmov 0   ;;  %vm690_vm0 = vcmask 523264   ;;  %s1617_s1 = inlined_call_operand.vmem [shape: bf16[960,128], index: 1, kind: input, shape index: {}]   ;;  %s1618_s0 = inlined_call_operand.vmem [shape: bf16[64,960], index: 0, kind: input, shape index: {}]   ;;  %s1619_s2 = inlined_call_operand.vmem [shape: f32[1,128], index: 2, kind: input, shape index: {}]   ;;  %s1620_s3 = inlined_call_operand.vmem [shape: f32[64,128], index: 3, kind: output, shape index: {}]  }
   0x1   :  { %v1217_v0 = vld [vmem:[%s1617_s1 + $0x40] sm:$0xff]   ;;  %v1221_v4 = vld [vmem:[%s1617_s1 + $0x48] sm:$0xff]   ;;  %v1225_v8 = vld [vmem:[%s1617_s1 + $0x50] sm:$0xff]  }
   0x2   :  { %v1218_v1 = vld [vmem:[%s1617_s1 + $0xc0] sm:$0xff]   ;;  %1096 = vmatprep.subr.bf16.mxu0 %v1217_v0  ;;  %v1222_v5 = vld [vmem:[%s1617_s1 + $0xc8] sm:$0xff]   ;;  %v1226_v9 = vld [vmem:[%s1617_s1 + $0xd0] sm:$0xff]  }
   0x3   :  { %v1219_v2 = vld [vmem:[%s1617_s1] sm:$0xff]   ;;  %1136 = vmatprep.subr.bf16.mxu1 %v1218_v1  ;;  %v1223_v6 = vld [vmem:[%s1617_s1 + $0x8] sm:$0xff]   ;;  %v1227_v10 = vld [vmem:[%s1617_s1 + $0x10] sm:$0xff]  }
   0x4   :  { %v1220_v3 = vld [vmem:[%s1617_s1 + $0x80] sm:$0xff]   ;;  %1097 = vmatpush3.bf16.msra.mxu0 %v1219_v2  ;;  %v1224_v7 = vld [vmem:[%s1617_s1 + $0x88] sm:$0xff]   ;;  %v1228_v11 = vld [vmem:[%s1617_s1 + $0x90] sm:$0xff]  }
   0x5   :  { %1137 = vmatpush3.bf16.msra.mxu1 %v1220_v3  ;;  %1098 = vmatprep.subr.bf16.mxu0 %v1221_v4  ;;  %v1229_v12 = vld [vmem:[%s1617_s1 + $0x58] sm:$0xff]   ;;  %v1233_v16 = vld [vmem:[%s1617_s1 + $0x60] sm:$0xff]   ;;  %v1237_v20 = vld [vmem:[%s1617_s1 + $0x68] sm:$0xff]  }
   0x6   :  { %1138 = vmatprep.subr.bf16.mxu1 %v1222_v5  ;;  %v1230_v13 = vld [vmem:[%s1617_s1 + $0xd8] sm:$0xff]   ;;  %v1234_v17 = vld [vmem:[%s1617_s1 + $0xe0] sm:$0xff]   ;;  %v1238_v21 = vld [vmem:[%s1617_s1 + $0xe8] sm:$0xff]  }
   0x7   :  { %v1231_v14 = vld [vmem:[%s1617_s1 + $0x18] sm:$0xff]   ;;  %v1235_v18 = vld [vmem:[%s1617_s1 + $0x20] sm:$0xff]   ;;  %v1239_v22 = vld [vmem:[%s1617_s1 + $0x28] sm:$0xff]  }
   0x8   :  { %1099 = vmatpush3.bf16.msra.mxu0 %v1223_v6  ;;  %v1232_v15 = vld [vmem:[%s1617_s1 + $0x98] sm:$0xff]   ;;  %v1236_v19 = vld [vmem:[%s1617_s1 + $0xa0] sm:$0xff]   ;;  %v1240_v23 = vld [vmem:[%s1617_s1 + $0xa8] sm:$0xff]  }
   0x9   :  { %1139 = vmatpush3.bf16.msra.mxu1 %v1224_v7  ;;  %1100 = vmatprep.subr.bf16.mxu0 %v1225_v8  ;;  %v1241_v24 = vld [vmem:[%s1617_s1 + $0x70] sm:$0xff]   ;;  %v1245_v28 = vld [vmem:[%s1617_s1 + $0x78] sm:$0xff]   ;;  %v15_v32 = vld [vmem:[%s1618_s0] sm:$0xff] }
   0xa   :  { %1140 = vmatprep.subr.bf16.mxu1 %v1226_v9  ;;  %v1242_v25 = vld [vmem:[%s1617_s1 + $0xf0] sm:$0xff]   ;;  %v1246_v29 = vld [vmem:[%s1617_s1 + $0xf8] sm:$0xff]   ;;  %v19_v33 = vld [vmem:[%s1618_s0 + $0x20] sm:$0xff] }
   0xb   :  { %v1243_v26 = vld [vmem:[%s1617_s1 + $0x30] sm:$0xff]   ;;  %v1247_v30 = vld [vmem:[%s1617_s1 + $0x38] sm:$0xff]   ;;  %v16_v34 = vld [vmem:[%s1618_s0 + $0x8] sm:$0xff]  ;;  %v1000_v35 = vcombine.low %v15_v32, %v19_v33  ;;  %v1001_v36 = vcombine.high %v15_v32, %v19_v33 }
   0xc   :  { %1101 = vmatpush3.bf16.msra.mxu0 %v1227_v10  ;;  %v1244_v27 = vld [vmem:[%s1617_s1 + $0xb0] sm:$0xff]   ;;  %v1248_v31 = vld [vmem:[%s1617_s1 + $0xb8] sm:$0xff]   ;;  %v20_v37 = vld [vmem:[%s1618_s0 + $0x28] sm:$0xff] }
   0xd   :  { %1141 = vmatpush3.bf16.msra.mxu1 %v1228_v11  ;;  %1102 = vmatprep.subr.bf16.mxu0 %v1229_v12  ;;  %v1002_v38 = vcombine.low %v16_v34, %v20_v37  ;;  %v1003_v39 = vcombine.high %v16_v34, %v20_v37  ;;  %v1249_v40 = vld [vmem:[%s1617_s1 + $0x140] sm:$0xff]   ;;  %v1252_v44 = vld [vmem:[%s1617_s1 + $0x148] sm:$0xff]   ;;  %v1255_v51 = vld [vmem:[%s1617_s1 + $0x150] sm:$0xff]  }
   0xe   :  { %1142 = vmatprep.subr.bf16.mxu1 %v1230_v13  ;;  %735 = vmatprep.mubr.bf16.mxu0 %v1001_v36  ;;  %v1250_v42 = vld [vmem:[%s1617_s1 + $0x100] sm:$0xff]   ;;  %v1253_v45 = vld [vmem:[%s1617_s1 + $0x108] sm:$0xff]   ;;  %v1256_v52 = vld [vmem:[%s1617_s1 + $0x110] sm:$0xff]  }
   0xf   :  { %800 = vmatprep.mubr.bf16.mxu1 %v1003_v39  ;;  %v1251_v43 = vld [vmem:[%s1617_s1 + $0x180] sm:$0xff]   ;;  %v1254_v46 = vld [vmem:[%s1617_s1 + $0x188] sm:$0xff]   ;;  %v1257_v53 = vld [vmem:[%s1617_s1 + $0x190] sm:$0xff]  }
  0x10   :  { %1103 = vmatpush3.bf16.msra.mxu0 %v1231_v14  ;;  %v23_v47 = vld [vmem:[%s1618_s0 + $0x40] sm:$0xff]  ;;  %v1258_v54 = vld [vmem:[%s1617_s1 + $0x158] sm:$0xff]   ;;  %v24_v61 = vld [vmem:[%s1618_s0 + $0x48] sm:$0xff] }
  0x11   :  { %1143 = vmatpush3.bf16.msra.mxu1 %v1232_v15  ;;  %1104 = vmatprep.subr.bf16.mxu0 %v1233_v16  ;;  %v27_v48 = vld [vmem:[%s1618_s0 + $0x60] sm:$0xff]  ;;  %v1259_v55 = vld [vmem:[%s1617_s1 + $0x118] sm:$0xff]   ;;  %v28_v63 = vld [vmem:[%s1618_s0 + $0x68] sm:$0xff] }
  0x12   :  { %1144 = vmatprep.subr.bf16.mxu1 %v1234_v17  ;;  %v1009_v49 = vcombine.high %v23_v47, %v27_v48  ;;  %v1008_v50 = vcombine.low %v23_v47, %v27_v48  ;;  %v1260_v56 = vld [vmem:[%s1617_s1 + $0x198] sm:$0xff]   ;;  %v31_v57 = vld [vmem:[%s1618_s0 + $0x80] sm:$0xff]  ;;  %v1011_v0 = vcombine.high %v24_v61, %v28_v63  ;;  %v1010_v2 = vcombine.low %v24_v61, %v28_v63  ;;  %v1264_v4 = vld [vmem:[%s1617_s1 + $0x168] sm:$0xff]  }
  0x13   :  { %v35_v58 = vld [vmem:[%s1618_s0 + $0xa0] sm:$0xff]  ;;  %v1265_v5 = vld [vmem:[%s1617_s1 + $0x128] sm:$0xff]   ;;  %v1267_v10 = vld [vmem:[%s1617_s1 + $0x170] sm:$0xff]  }
  0x14   :  { %1105 = vmatpush3.bf16.msra.mxu0 %v1235_v18  ;;  %v1017_v59 = vcombine.high %v31_v57, %v35_v58  ;;  %v1261_v60 = vld [vmem:[%s1617_s1 + $0x160] sm:$0xff]   ;;  %v1016_v62 = vcombine.low %v31_v57, %v35_v58  ;;  %v1266_v6 = vld [vmem:[%s1617_s1 + $0x1a8] sm:$0xff]   ;;  %v1268_v15 = vld [vmem:[%s1617_s1 + $0x130] sm:$0xff]  }
  0x15   :  { %1145 = vmatpush3.bf16.msra.mxu1 %v1236_v19  ;;  %1106 = vmatprep.subr.bf16.mxu0 %v1237_v20  ;;  %v1262_v1 = vld [vmem:[%s1617_s1 + $0x120] sm:$0xff]   ;;  %v32_v11 = vld [vmem:[%s1618_s0 + $0x88] sm:$0xff]  ;;  %v1269_v17 = vld [vmem:[%s1617_s1 + $0x1b0] sm:$0xff]  }
  0x16   :  { %1146 = vmatprep.subr.bf16.mxu1 %v1238_v21  ;;  %v1263_v3 = vld [vmem:[%s1617_s1 + $0x1a0] sm:$0xff]   ;;  %v36_v12 = vld [vmem:[%s1618_s0 + $0xa8] sm:$0xff]  ;;  %v1270_v18 = vld [vmem:[%s1617_s1 + $0x178] sm:$0xff]  }
  0x17   :  { %v39_v7 = vld [vmem:[%s1618_s0 + $0xc0] sm:$0xff]  ;;  %v1019_v14 = vcombine.high %v32_v11, %v36_v12  ;;  %v1018_v16 = vcombine.low %v32_v11, %v36_v12  ;;  %v1271_v19 = vld [vmem:[%s1617_s1 + $0x138] sm:$0xff]   ;;  %v17_v20 = vld [vmem:[%s1618_s0 + $0x10] sm:$0xff] }
  0x18   :  { %1107 = vmatpush3.bf16.msra.mxu0 %v1239_v22  ;;  %v43_v8 = vld [vmem:[%s1618_s0 + $0xe0] sm:$0xff]  ;;  %v21_v21 = vld [vmem:[%s1618_s0 + $0x30] sm:$0xff]  ;;  %v40_v22 = vld [vmem:[%s1618_s0 + $0xc8] sm:$0xff] }
  0x19   :  { %1147 = vmatpush3.bf16.msra.mxu1 %v1240_v23  ;;  %1108 = vmatprep.subr.bf16.mxu0 %v1241_v24  ;;  %v1025_v9 = vcombine.high %v39_v7, %v43_v8  ;;  %v1024_v13 = vcombine.low %v39_v7, %v43_v8  ;;  %v44_v23 = vld [vmem:[%s1618_s0 + $0xe8] sm:$0xff]  ;;  %v1272_v24 = vld [vmem:[%s1617_s1 + $0x1b8] sm:$0xff]   ;;  %v33_v37 = vld [vmem:[%s1618_s0 + $0x90] sm:$0xff] }
  0x1a   :  { %1148 = vmatprep.subr.bf16.mxu1 %v1242_v25  ;;  %v1005_v25 = vcombine.high %v17_v20, %v21_v21  ;;  %v18_v33 = vld [vmem:[%s1618_s0 + $0x18] sm:$0xff]  ;;  %v1274_v36 = vld [vmem:[%s1617_s1 + $0x1c8] sm:$0xff]   ;;  %v999_v63 = vld [vmem:[%s1619_s2] ss:$0 sm:$0xff] }
  0x1b   :  { %v22_v34 = vld [vmem:[%s1618_s0 + $0x38] sm:$0xff] }
  0x1c   :  { %1109 = vmatpush3.bf16.msra.mxu0 %v1243_v26  ;;  %v1027_v26 = vcombine.high %v40_v22, %v44_v23  ;;  %v30_v47 = vld [vmem:[%s1618_s0 + $0x78] sm:$0xff]  ;;  %v1006_v48 = vcombine.low %v18_v33, %v22_v34 }
  0x1d   :  { %1149 = vmatpush3.bf16.msra.mxu1 %v1244_v27  ;;  %1110 = vmatprep.subr.bf16.mxu0 %v1245_v28  ;;  %v25_v27 = vld [vmem:[%s1618_s0 + $0x50] sm:$0xff]  ;;  %v46_v57 = vld [vmem:[%s1618_s0 + $0xf8] sm:$0xff] }
  0x1e   :  { %1150 = vmatprep.subr.bf16.mxu1 %v1246_v29  ;;  %v29_v28 = vld [vmem:[%s1618_s0 + $0x70] sm:$0xff]  ;;  %v1004_v29 = vcombine.low %v17_v20, %v21_v21 }
  0x1f   :  { %v1013_v32 = vcombine.high %v25_v27, %v29_v28  ;;  %v1012_v39 = vcombine.low %v25_v27, %v29_v28 }
  0x20   :  { %1111 = vmatpush3.bf16.msra.mxu0 %v1247_v30  ;;  %v1026_v30 = vcombine.low %v40_v22, %v44_v23 }
  0x21   :  { %1151 = vmatpush3.bf16.msra.mxu1 %v1248_v31  ;;  %1176 = vmatprep.subr.bf16.mxu0 %v1249_v40  ;;  %v1273_v31 = vld [vmem:[%s1617_s1 + $0x1c0] sm:$0xff]   ;;  %v1275_v40 = vld [vmem:[%s1617_s1 + $0x1d0] sm:$0xff]  }
  0x22   :  { %898 = vmatprep.subr.bf16.mxu1 %v1277_v41 }
  0x23   :  { %736 = vmatmul.mubr.bf16.vlgmr.msra.gmra.mrb[0].mxu0 %v1000_v35  ;;  %v1007_v35 = vcombine.high %v18_v33, %v22_v34 }
  0x24   :  { %801 = vmatmul.mubr.bf16.vlgmr.msra.gmra.mrb[0].mxu1 %v1002_v38  ;;  %1177 = vmatpush3.bf16.msra.mxu0 %v1250_v42  ;;  %v37_v38 = vld [vmem:[%s1618_s0 + $0xb0] sm:$0xff] }
  0x25   :  { %899 = vmatpush1.bf16.msra.mxu1 %v1251_v43  ;;  %1178 = vmatprep.subr.bf16.mxu0 %v1252_v44  ;;  %v1021_v42 = vcombine.high %v33_v37, %v37_v38  ;;  %v1276_v43 = vld [vmem:[%s1617_s1 + $0x1d8] sm:$0xff]   ;;  %v41_v44 = vld [vmem:[%s1618_s0 + $0xd0] sm:$0xff] }
  0x26   :  { %900 = vmatprep.subr.bf16.mxu1 %v1277_v41  ;;  %743 = vmatprep.mubr.bf16.mxu0 %v1009_v49  ;;  %v1020_v49 = vcombine.low %v33_v37, %v37_v38 }
  0x27   :  { %808 = vmatprep.mubr.bf16.mxu1 %v1011_v0 }
  0x28   :  { %1179 = vmatpush3.bf16.msra.mxu0 %v1253_v45  ;;  %v45_v45 = vld [vmem:[%s1618_s0 + $0xf0] sm:$0xff] }
  0x29   :  { %901 = vmatpush1.bf16.msra.mxu1 %v1254_v46  ;;  %1180 = vmatprep.subr.bf16.mxu0 %v1255_v51  ;;  %v26_v46 = vld [vmem:[%s1618_s0 + $0x58] sm:$0xff] }
  0x2a   :  { %902 = vmatprep.subr.bf16.mxu1 %v1277_v41  ;;  %v1015_v51 = vcombine.high %v26_v46, %v30_v47 }
  0x2b   :  { %744 = vmatmul.mubr.bf16.gmra.mrb[4].mxu0 %v1008_v50  ;;  %v1029_v50 = vcombine.high %v41_v44, %v45_v45 }
  0x2c   :  { %1181 = vmatpush3.bf16.msra.mxu0 %v1256_v52  ;;  %751 = vmatprep.mubr.bf16.mxu0 %v1017_v59  ;;  %v38_v52 = vld [vmem:[%s1618_s0 + $0xb8] sm:$0xff] }
  0x2d   :  { %903 = vmatpush1.bf16.msra.mxu1 %v1257_v53  ;;  %1182 = vmatprep.subr.bf16.mxu0 %v1258_v54  ;;  %v1028_v53 = vcombine.low %v41_v44, %v45_v45  ;;  %v1014_v54 = vcombine.low %v26_v46, %v30_v47 }
  0x2e   :  { %904 = vmatprep.subr.bf16.mxu1 %v1277_v41  ;;  %809 = vmatmul.mubr.bf16.gmra.mrb[4].mxu1 %v1010_v2 }
  0x2f   :  { %816 = vmatprep.mubr.bf16.mxu1 %v1019_v14 }
  0x30   :  { %1183 = vmatpush3.bf16.msra.mxu0 %v1259_v55 }
  0x31   :  { %905 = vmatpush1.bf16.msra.mxu1 %v1260_v56  ;;  %1184 = vmatprep.subr.bf16.mxu0 %v1261_v60  ;;  %v42_v56 = vld [vmem:[%s1618_s0 + $0xd8] sm:$0xff] }
  0x32   :  { %906 = vmatprep.subr.bf16.mxu1 %v1277_v41  ;;  %v1031_v59 = vcombine.high %v42_v56, %v46_v57  ;;  %v1030_v60 = vcombine.low %v42_v56, %v46_v57 }
  0x33   :  { %752 = vmatmul.mubr.bf16.gmra.mrb[8].mxu0 %v1016_v62 }
  0x34   :  { %1185 = vmatpush3.bf16.msra.mxu0 %v1262_v1  ;;  %759 = vmatprep.mubr.bf16.mxu0 %v1025_v9 }
  0x35   :  { %907 = vmatpush1.bf16.msra.mxu1 %v1263_v3  ;;  %1186 = vmatprep.subr.bf16.mxu0 %v1264_v4 }
  0x36   :  { %908 = vmatprep.subr.bf16.mxu1 %v1277_v41  ;;  %817 = vmatmul.mubr.bf16.gmra.mrb[8].mxu1 %v1018_v16 }
  0x37   :  { %824 = vmatprep.mubr.bf16.mxu1 %v1027_v26 }
  0x38   :  { %1187 = vmatpush3.bf16.msra.mxu0 %v1265_v5 }
  0x39   :  { %909 = vmatpush1.bf16.msra.mxu1 %v1266_v6  ;;  %1188 = vmatprep.subr.bf16.mxu0 %v1267_v10 }
  0x3a   :  { %910 = vmatprep.subr.bf16.mxu1 %v1277_v41 }
  0x3b   :  { %760 = vmatmul.mubr.bf16.gmra.mrb[12].mxu0 %v1024_v13 }
  0x3c   :  { %1189 = vmatpush3.bf16.msra.mxu0 %v1268_v15  ;;  %865 = vmatprep.mubr.bf16.mxu0 %v1005_v25 }
  0x3d   :  { %911 = vmatpush1.bf16.msra.mxu1 %v1269_v17  ;;  %1190 = vmatprep.subr.bf16.mxu0 %v1270_v18 }
  0x3e   :  { %912 = vmatprep.subr.bf16.mxu1 %v1277_v41  ;;  %825 = vmatmul.mubr.bf16.gmra.mrb[12].mxu1 %v1026_v30 }
  0x3f   :  { %1092 = vmatprep.mubr.msk.bf16.mxu1 %vm690_vm0, %v1007_v35 }
  0x40   :  { %1191 = vmatpush3.bf16.msra.mxu0 %v1271_v19 }
  0x41   :  { %913 = vmatpush1.bf16.msra.mxu1 %v1272_v24 }
  0x42   :  { %914 = vmatprep.subr.bf16.mxu1 %v1277_v41 }
  0x43   :  { %866 = vmatmul.mubr.bf16.vlgmr.msra.gmra.mrb[16].mxu0 %v1004_v29 }
  0x44   :  { %873 = vmatprep.mubr.bf16.mxu0 %v1013_v32 }
  0x45   :  { %915 = vmatpush1.bf16.msra.mxu1 %v1273_v31 }
  0x46   :  { %916 = vmatprep.subr.bf16.mxu1 %v1277_v41 }
  0x49   :  { %917 = vmatpush1.bf16.msra.mxu1 %v1274_v36 }
  0x4a   :  { %918 = vmatprep.subr.bf16.mxu1 %v1277_v41 }
  0x4b   :  { %874 = vmatmul.mubr.bf16.gmra.mrb[20].mxu0 %v1012_v39 }
  0x4c   :  { %881 = vmatprep.mubr.bf16.mxu0 %v1021_v42 }
  0x4d   :  { %919 = vmatpush1.bf16.msra.mxu1 %v1275_v40 }
  0x4e   :  { %920 = vmatprep.subr.bf16.mxu1 %v1277_v41  ;;  %v34_v41 = vld [vmem:[%s1618_s0 + $0x98] sm:$0xff] }
  0x4f   :  { %v1023_v55 = vcombine.high %v34_v41, %v38_v52  ;;  %v1022_v58 = vcombine.low %v34_v41, %v38_v52 }
  0x51   :  { %921 = vmatpush1.bf16.msra.mxu1 %v1276_v43 }
  0x53   :  { %882 = vmatmul.mubr.bf16.gmra.mrb[24].mxu0 %v1020_v49 }
  0x54   :  { %931 = vmatmul.mubr.bf16.vlgmr.msra.gmra.mrb[16].mxu1 %v1006_v48  ;;  %889 = vmatprep.mubr.bf16.mxu0 %v1029_v50 }
  0x55   :  { %1093 = vmatprep.mubr.msk.bf16.mxu1 %vm690_vm0, %v1015_v51 }
  0x5b   :  { %890 = vmatmul.mubr.bf16.gmra.mrb[28].mxu0 %v1028_v53 }
  0x5c   :  { %939 = vmatmul.mubr.bf16.gmra.mrb[20].mxu1 %v1014_v54 }
  0x5d   :  { %1094 = vmatprep.mubr.msk.bf16.mxu1 %vm690_vm0, %v1023_v55 }
  0x64   :  { %947 = vmatmul.mubr.bf16.gmra.mrb[24].mxu1 %v1022_v58 }
  0x65   :  { %1095 = vmatprep.mubr.msk.bf16.mxu1 %vm690_vm0, %v1031_v59 }
  0x6c   :  { %955 = vmatmul.mubr.bf16.gmra.mrb[28].mxu1 %v1030_v60 }
  0xf6   :  { %v1112_v61 = vpop.f32.mrb[0].mxu0 }
  0xf7   :  { %v1152_v62 = vpop.f32.mrb[0].mxu1  ;;  %v1113_v0 = vpop.f32.mrb[1].mxu0 }
  0xf8   :  { %v1114_v1 = vadd.f32 %v1113_v0, %v1112_v61  ;;  %v1153_v2 = vpop.f32.mrb[1].mxu1  ;;  %v1115_v3 = vpop.f32.mrb[2].mxu0 }
  0xf9   :  { %v1154_v4 = vadd.f32 %v1153_v2, %v1152_v62  ;;  %v1155_v5 = vpop.f32.mrb[2].mxu1  ;;  %v1116_v6 = vpop.f32.mrb[3].mxu0 }
  0xfa   :  { %v738_v7 = vadd.f32 %v1114_v1, %v999_v63  ;;  %v1117_v8 = vadd.f32 %v1116_v6, %v1115_v3  ;;  %v1156_v9 = vpop.f32.mrb[3].mxu1 }
  0xfb   :  { %v1157_v10 = vadd.f32 %v1156_v9, %v1155_v5 }
  0xfc   :  { %v803_v11 = vadd.f32 %v1154_v4, %v738_v7  ;;  %v741_v12 = vadd.f32 %v1117_v8, %v999_v63 }
  0xfe   :  { %v806_v13 = vadd.f32 %v1157_v10, %v741_v12  ;;  %v1118_v14 = vpop.f32.mrb[4].mxu0 }
  0xff   :  { %v1119_v15 = vpop.f32.mrb[5].mxu0 }
 0x100   :  { %v1120_v16 = vadd.f32 %v1119_v15, %v1118_v14  ;;  %v1121_v17 = vpop.f32.mrb[6].mxu0 }
 0x101   :  { %v1122_v18 = vpop.f32.mrb[7].mxu0  ;;  %v1158_v22 = vpop.f32.mrb[4].mxu1 }
 0x102   :  { %v1123_v19 = vadd.f32 %v1122_v18, %v1121_v17  ;;  %v746_v21 = vadd.f32 %v1120_v16, %v999_v63  ;;  %v1159_v24 = vpop.f32.mrb[5].mxu1 }
 0x103   :  { %v1160_v28 = vadd.f32 %v1159_v24, %v1158_v22  ;;  %v1161_v29 = vpop.f32.mrb[6].mxu1 }
 0x104   :  { %v749_v27 = vadd.f32 %v1123_v19, %v999_v63  ;;  %v1162_v31 = vpop.f32.mrb[7].mxu1 }
 0x105   :  { %v811_v33 = vadd.f32 %v1160_v28, %v746_v21  ;;  %v1163_v34 = vadd.f32 %v1162_v31, %v1161_v29 }
 0x106   :  { %v1124_v20 = vpop.f32.mrb[8].mxu0 }
 0x107   :  { %v1125_v23 = vpop.f32.mrb[9].mxu0  ;;  %v814_v35 = vadd.f32 %v1163_v34, %v749_v27 }
 0x108   :  { %v1126_v25 = vadd.f32 %v1125_v23, %v1124_v20  ;;  %v1127_v26 = vpop.f32.mrb[10].mxu0 }
 0x109   :  { %v1128_v30 = vpop.f32.mrb[11].mxu0  ;;  %v1164_v38 = vpop.f32.mrb[8].mxu1 }
 0x10a   :  { %v1129_v32 = vadd.f32 %v1128_v30, %v1127_v26  ;;  %v754_v37 = vadd.f32 %v1126_v25, %v999_v63  ;;  %v1165_v40 = vpop.f32.mrb[9].mxu1 }
 0x10b   :  { %v1166_v45 = vadd.f32 %v1165_v40, %v1164_v38  ;;  %v1167_v46 = vpop.f32.mrb[10].mxu1 }
 0x10c   :  { %v757_v44 = vadd.f32 %v1129_v32, %v999_v63  ;;  %v1168_v48 = vpop.f32.mrb[11].mxu1 }
 0x10d   :  { %v819_v50 = vadd.f32 %v1166_v45, %v754_v37  ;;  %v1169_v51 = vadd.f32 %v1168_v48, %v1167_v46 }
 0x10e   :  { %v1130_v36 = vpop.f32.mrb[12].mxu0 }
 0x10f   :  { %v1131_v39 = vpop.f32.mrb[13].mxu0  ;;  %v822_v41 = vadd.f32 %v1169_v51, %v757_v44 }
 0x110   :  { %v1132_v42 = vadd.f32 %v1131_v39, %v1130_v36  ;;  %v1133_v43 = vpop.f32.mrb[14].mxu0 }
 0x111   :  { %v1134_v47 = vpop.f32.mrb[15].mxu0  ;;  %v1170_v54 = vpop.f32.mrb[12].mxu1 }
 0x112   :  { %v1135_v49 = vadd.f32 %v1134_v47, %v1133_v43  ;;  %v762_v52 = vadd.f32 %v1132_v42, %v999_v63  ;;  %v1171_v56 = vpop.f32.mrb[13].mxu1 }
 0x113   :  { %v1172_v60 = vadd.f32 %v1171_v56, %v1170_v54  ;;  %v1173_v61 = vpop.f32.mrb[14].mxu1 }
 0x114   :  { %v765_v57 = vadd.f32 %v1135_v49, %v999_v63  ;;  %v1174_v0 = vpop.f32.mrb[15].mxu1 }
 0x115   :  { %v827_v1 = vadd.f32 %v1172_v60, %v762_v52  ;;  %v1175_v3 = vadd.f32 %v1174_v0, %v1173_v61 }
 0x116   :  { %v1192_v53 = vpop.f32.mrb[16].mxu0 }
 0x117   :  { %v1193_v55 = vpop.f32.mrb[17].mxu0  ;;  %v830_v5 = vadd.f32 %v1175_v3, %v765_v57 }
 0x118   :  { %v1194_v58 = vadd.f32 %v1193_v55, %v1192_v53  ;;  %v1195_v59 = vpop.f32.mrb[18].mxu0 }
 0x119   :  { %v1196_v62 = vpop.f32.mrb[19].mxu0 }
 0x11a   :  { %v1197_v2 = vadd.f32 %v1196_v62, %v1195_v59  ;;  %v868_v4 = vadd.f32 %v1194_v58, %v803_v11 }
 0x11c   :  { %v871_v6 = vadd.f32 %v1197_v2, %v806_v13 }
 0x11e   :  { %v1198_v7 = vpop.f32.mrb[20].mxu0 }
 0x11f   :  { %v1199_v8 = vpop.f32.mrb[21].mxu0 }
 0x120   :  { %v1200_v9 = vadd.f32 %v1199_v8, %v1198_v7  ;;  %v1201_v10 = vpop.f32.mrb[22].mxu0 }
 0x121   :  { %v1202_v12 = vpop.f32.mrb[23].mxu0 }
 0x122   :  { %v1203_v14 = vadd.f32 %v1202_v12, %v1201_v10  ;;  %v876_v15 = vadd.f32 %v1200_v9, %v811_v33 }
 0x124   :  { %v879_v63 = vadd.f32 %v1203_v14, %v814_v35 }
 0x126   :  { %v1204_v16 = vpop.f32.mrb[24].mxu0 }
 0x127   :  { %v932_v17 = vpop.f32.mrb[16].mxu1  ;;  %v1205_v19 = vpop.f32.mrb[25].mxu0 }
 0x128   :  { %v933_v18 = vadd.f32 %v932_v17, %v868_v4  ;;  %v934_v20 = vpop.f32.mrb[17].mxu1  ;;  %v1206_v21 = vadd.f32 %v1205_v19, %v1204_v16  ;;  %v1207_v22 = vpop.f32.mrb[26].mxu0 }
 0x129   :  { %v935_v23 = vpop.f32.mrb[18].mxu1  ;;  %v1208_v13 = vpop.f32.mrb[27].mxu0 }
 0x12a   :  { %vm963_vm1 = vcmp.gt.f32.partialorder %v933_v18, 0.0  ;;  %v971_v11 = vmul.f32 0.01, %v933_v18  ;;  %v936_v24 = vadd.f32 %v935_v23, %v871_v6  ;;  %v937_v25 = vpop.f32.mrb[19].mxu1  ;;  %v1209_v26 = vadd.f32 %v1208_v13, %v1207_v22 }
 0x12b   :  { %v884_v27 = vadd.f32 %v1206_v21, %v819_v50 }
 0x12c   :  { %v979_v28 = vsel %vm963_vm1, %v933_v18, %v971_v11  ;;  %vm964_vm2 = vcmp.gt.f32.partialorder %v936_v24, 0.0  ;;  %v972_v29 = vmul.f32 0.01, %v936_v24  ;;  %v887_v30 = vadd.f32 %v1209_v26, %v822_v41 }
 0x12d   :  { %987 = vst [vmem:[%s1620_s3] sm:$0xff] %v979_v28 }
 0x12e   :  { %v980_v31 = vsel %vm964_vm2, %v936_v24, %v972_v29  ;;  %v1210_v32 = vpop.f32.mrb[28].mxu0 }
 0x12f   :  { %988 = vst [vmem:[%s1620_s3 + $0x8] sm:$0xff] %v980_v31  ;;  %v940_v33 = vpop.f32.mrb[20].mxu1  ;;  %v1211_v35 = vpop.f32.mrb[29].mxu0 }
 0x130   :  { %v941_v34 = vadd.f32 %v940_v33, %v876_v15  ;;  %v942_v36 = vpop.f32.mrb[21].mxu1  ;;  %v1212_v37 = vadd.f32 %v1211_v35, %v1210_v32  ;;  %v1213_v38 = vpop.f32.mrb[30].mxu0 }
 0x131   :  { %v943_v39 = vpop.f32.mrb[22].mxu1  ;;  %v1214_v43 = vpop.f32.mrb[31].mxu0 }
 0x132   :  { %vm965_vm3 = vcmp.gt.f32.partialorder %v941_v34, 0.0  ;;  %v973_v40 = vmul.f32 0.01, %v941_v34  ;;  %v944_v42 = vadd.f32 %v943_v39, %v879_v63  ;;  %v945_v44 = vpop.f32.mrb[23].mxu1  ;;  %v1215_v45 = vadd.f32 %v1214_v43, %v1213_v38 }
 0x133   :  { %v892_v46 = vadd.f32 %v1212_v37, %v827_v1 }
 0x134   :  { %v981_v47 = vsel %vm965_vm3, %v941_v34, %v973_v40  ;;  %vm966_vm4 = vcmp.gt.f32.partialorder %v944_v42, 0.0  ;;  %v974_v48 = vmul.f32 0.01, %v944_v42  ;;  %v895_v49 = vadd.f32 %v1215_v45, %v830_v5 }
 0x135   :  { %989 = vst [vmem:[%s1620_s3 + $0x10] sm:$0xff] %v981_v47 }
 0x136   :  { %v982_v50 = vsel %vm966_vm4, %v944_v42, %v974_v48 }
 0x137   :  { %990 = vst [vmem:[%s1620_s3 + $0x18] sm:$0xff] %v982_v50  ;;  %v948_v51 = vpop.f32.mrb[24].mxu1 }
 0x138   :  { %v949_v41 = vadd.f32 %v948_v51, %v884_v27  ;;  %v950_v52 = vpop.f32.mrb[25].mxu1 }
 0x139   :  { %v951_v53 = vpop.f32.mrb[26].mxu1 }
 0x13a   :  { %vm967_vm5 = vcmp.gt.f32.partialorder %v949_v41, 0.0  ;;  %v975_v54 = vmul.f32 0.01, %v949_v41  ;;  %v952_v55 = vadd.f32 %v951_v53, %v887_v30  ;;  %v953_v56 = vpop.f32.mrb[27].mxu1 }
 0x13c   :  { %v983_v57 = vsel %vm967_vm5, %v949_v41, %v975_v54  ;;  %vm968_vm6 = vcmp.gt.f32.partialorder %v952_v55, 0.0  ;;  %v976_v58 = vmul.f32 0.01, %v952_v55 }
 0x13d   :  { %991 = vst [vmem:[%s1620_s3 + $0x20] sm:$0xff] %v983_v57 }
 0x13e   :  { %v984_v59 = vsel %vm968_vm6, %v952_v55, %v976_v58 }
 0x13f   :  { %992 = vst [vmem:[%s1620_s3 + $0x28] sm:$0xff] %v984_v59  ;;  %v956_v60 = vpop.f32.mrb[28].mxu1 }
 0x140   :  { %v957_v61 = vadd.f32 %v956_v60, %v892_v46  ;;  %v958_v62 = vpop.f32.mrb[29].mxu1 }
 0x141   :  { %v959_v0 = vpop.f32.mrb[30].mxu1 }
 0x142   :  { %vm969_vm7 = vcmp.gt.f32.partialorder %v957_v61, 0.0  ;;  %v977_v1 = vmul.f32 0.01, %v957_v61  ;;  %v960_v2 = vadd.f32 %v959_v0, %v895_v49  ;;  %v961_v3 = vpop.f32.mrb[31].mxu1 }
 0x144   :  { %v985_v4 = vsel %vm969_vm7, %v957_v61, %v977_v1  ;;  %vm970_vm8 = vcmp.gt.f32.partialorder %v960_v2, 0.0  ;;  %v978_v5 = vmul.f32 0.01, %v960_v2 }
 0x145   :  { %993 = vst [vmem:[%s1620_s3 + $0x30] sm:$0xff] %v985_v4 }
 0x146   :  { %v986_v6 = vsel %vm970_vm8, %v960_v2, %v978_v5 }
 0x147   :  { %994 = vst [vmem:[%s1620_s3 + $0x38] sm:$0xff] %v986_v6 }

// kernel: tile.71
= control target key start
LH: loop header
LB: loop body
LE: loop exit
PB: predicated region body
PF: predicated region fallthrough
CT: control target
= control target key end

     0   :  { %s22_s0 = inlined_call_operand.vmem [shape: f32[32], index: 0, kind: input, shape index: {}]   ;;  %s23_s1 = inlined_call_operand.vmem [shape: f32[4,32], index: 1, kind: output, shape index: {}]  }
   0x1   :  { %v4_v0 = vld [vmem:[%s22_s0] ss:$0 sm:$0xff] }
   0x2   :  { %5 = vst [vmem:[%s23_s1] sm:$0xf] %v4_v0 }

// kernel: tile.72
= control target key start
LH: loop header
LB: loop body
LE: loop exit
PB: predicated region body
PF: predicated region fallthrough
CT: control target
= control target key end

     0   :  { %vm7_vm0 = vcmask 261120   ;;  %s37_s8 = smov 32   ;;  %s38_s9 = smov 64   ;;  %vm13_vm1 = vcmask 1048320   ;;  %vm19_vm2 = vcmask 785920   ;;  %vm25_vm3 = vcmask 523520   ;;  %s55_s0 = inlined_call_operand.vmem [shape: f32[4,32], index: 0, kind: input, shape index: {}]   ;;  %s56_s1 = inlined_call_operand.vmem [shape: f32[1,128], index: 1, kind: output, shape index: {}]  }
   0x1   :  { %v4_v0 = vld [vmem:[%s55_s0] sm:$0xf]  ;;  %s36_s0 = smov 96  }
   0x2   :  { %5 = vst [vmem:[#allocation1] sm:$0xf] %v4_v0 }
   0x9   :  { %v10_v1 = vld [vmem:[#allocation1 + $0x3] sm:$0x1]   ;;  %v22_v2 = vld [vmem:[#allocation1 + $0x1] sm:$0x1]   ;;  %v6_v3 = vld [vmem:[#allocation1] sm:$0x1]  }
   0xa   :  { %11 = vrot.lane.b32.xlu0 %v10_v1, %s36_s0  ;;  %23 = vrot.lane.b32.xlu1 %v22_v2, %s37_s8  ;;  %v16_v4 = vld [vmem:[#allocation1 + $0x2] sm:$0x1]   ;;  %8 = vst.msk [vmem:[#allocation0] sm:$0x1] %vm7_vm0, %v6_v3  }
   0xe   :  { %17 = vrot.lane.b32.xlu0 %v16_v4, %s38_s9 }
  0x7c   :  { %v12_v5 = vpop.permute.xlu0 %11   ;;  %v24_v6 = vpop.permute.xlu1 %23  }
  0x7d   :  { %14 = vst.msk [vmem:[#allocation0] sm:$0x1] %vm13_vm1, %v12_v5  }
  0x80   :  { %v18_v7 = vpop.permute.xlu0 %17  }
  0x81   :  { %20 = vst.msk [vmem:[#allocation0] sm:$0x1] %vm19_vm2, %v18_v7  }
  0x82   :  { %26 = vst.msk [vmem:[#allocation0] sm:$0x1] %vm25_vm3, %v24_v6  }
  0x89   :  { %v30_v8 = vld [vmem:[#allocation0] sm:$0x1] }
  0x8a   :  { %32 = vst [vmem:[%s56_s1] sm:$0x1] %v30_v8 }

// kernel: cae5_forward.13
= control target key start
LH: loop header
LB: loop body
LE: loop exit
PB: predicated region body
PF: predicated region fallthrough
CT: control target
= control target key end

     0   :  { %s1611_s1 = inlined_call_operand.vmem [shape: bf16[1152,128], index: 1, kind: input, shape index: {}]   ;;  %s1612_s0 = inlined_call_operand.vmem [shape: bf16[32,1152], index: 0, kind: input, shape index: {}]   ;;  %s1613_s2 = inlined_call_operand.vmem [shape: f32[1,128], index: 2, kind: input, shape index: {}]   ;;  %s1614_s3 = inlined_call_operand.vmem [shape: f32[32,128], index: 3, kind: output, shape index: {}]  }
   0x1   :  { %v1208_v0 = vld [vmem:[%s1611_s1 + $0x40] sm:$0xff]   ;;  %v1212_v4 = vld [vmem:[%s1611_s1 + $0x48] sm:$0xff]   ;;  %v1216_v8 = vld [vmem:[%s1611_s1 + $0x50] sm:$0xff]  }
   0x2   :  { %v1209_v1 = vld [vmem:[%s1611_s1] sm:$0xff]   ;;  %1066 = vmatprep.subr.bf16.mxu0 %v1208_v0  ;;  %v1213_v5 = vld [vmem:[%s1611_s1 + $0x8] sm:$0xff]   ;;  %v1217_v9 = vld [vmem:[%s1611_s1 + $0x10] sm:$0xff]  }
   0x3   :  { %v1210_v2 = vld [vmem:[%s1611_s1 + $0xc0] sm:$0xff]   ;;  %1067 = vmatpush3.bf16.msra.mxu0 %v1209_v1  ;;  %v1214_v6 = vld [vmem:[%s1611_s1 + $0xc8] sm:$0xff]   ;;  %v1218_v10 = vld [vmem:[%s1611_s1 + $0xd0] sm:$0xff]  }
   0x4   :  { %v1211_v3 = vld [vmem:[%s1611_s1 + $0x80] sm:$0xff]   ;;  %1094 = vmatprep.subr.bf16.mxu1 %v1210_v2  ;;  %1068 = vmatprep.subr.bf16.mxu0 %v1212_v4  ;;  %v1215_v7 = vld [vmem:[%s1611_s1 + $0x88] sm:$0xff]   ;;  %v1219_v11 = vld [vmem:[%s1611_s1 + $0x90] sm:$0xff]  }
   0x5   :  { %1095 = vmatpush3.bf16.msra.mxu1 %v1211_v3  ;;  %v1220_v12 = vld [vmem:[%s1611_s1 + $0x58] sm:$0xff]   ;;  %v1224_v16 = vld [vmem:[%s1611_s1 + $0x60] sm:$0xff]   ;;  %v1228_v20 = vld [vmem:[%s1611_s1 + $0x68] sm:$0xff]  }
   0x6   :  { %1096 = vmatprep.subr.bf16.mxu1 %v1214_v6  ;;  %v1221_v13 = vld [vmem:[%s1611_s1 + $0x18] sm:$0xff]   ;;  %v1225_v17 = vld [vmem:[%s1611_s1 + $0x20] sm:$0xff]   ;;  %v1229_v21 = vld [vmem:[%s1611_s1 + $0x28] sm:$0xff]  }
   0x7   :  { %1069 = vmatpush3.bf16.msra.mxu0 %v1213_v5  ;;  %v1222_v14 = vld [vmem:[%s1611_s1 + $0xd8] sm:$0xff]   ;;  %v1226_v18 = vld [vmem:[%s1611_s1 + $0xe0] sm:$0xff]   ;;  %v1230_v22 = vld [vmem:[%s1611_s1 + $0xe8] sm:$0xff]  }
   0x8   :  { %1070 = vmatprep.subr.bf16.mxu0 %v1216_v8  ;;  %v1223_v15 = vld [vmem:[%s1611_s1 + $0x98] sm:$0xff]   ;;  %v1227_v19 = vld [vmem:[%s1611_s1 + $0xa0] sm:$0xff]   ;;  %v1231_v23 = vld [vmem:[%s1611_s1 + $0xa8] sm:$0xff]  }
   0x9   :  { %1097 = vmatpush3.bf16.msra.mxu1 %v1215_v7  ;;  %v1232_v24 = vld [vmem:[%s1611_s1 + $0x70] sm:$0xff]   ;;  %v1236_v28 = vld [vmem:[%s1611_s1 + $0x78] sm:$0xff]   ;;  %v1239_v31 = vld [vmem:[%s1612_s0] ss:$36 sps:$4 sm:$0xff]  }
   0xa   :  { %1098 = vmatprep.subr.bf16.mxu1 %v1218_v10  ;;  %v1233_v25 = vld [vmem:[%s1611_s1 + $0x30] sm:$0xff]   ;;  %v1237_v29 = vld [vmem:[%s1611_s1 + $0x38] sm:$0xff]   ;;  %v1241_v32 = vld [vmem:[%s1612_s0 + $0x4] ss:$36 sps:$4 sm:$0xff]  }
   0xb   :  { %1071 = vmatpush3.bf16.msra.mxu0 %v1217_v9  ;;  %v1234_v26 = vld [vmem:[%s1611_s1 + $0xf0] sm:$0xff]   ;;  %v1238_v30 = vld [vmem:[%s1611_s1 + $0xf8] sm:$0xff]   ;;  %742 = vmatprep.mubr.bf16.mxu0 %v1241_v32  ;;  %v1243_v34 = vld [vmem:[%s1611_s1 + $0x140] sm:$0xff]  }
   0xc   :  { %1072 = vmatprep.subr.bf16.mxu0 %v1220_v12  ;;  %v1235_v27 = vld [vmem:[%s1611_s1 + $0xb0] sm:$0xff]   ;;  %v1242_v33 = vld [vmem:[%s1611_s1 + $0xb8] sm:$0xff]   ;;  %v1244_v35 = vld [vmem:[%s1612_s0 + $0x8] ss:$36 sps:$4 sm:$0xff]  }
   0xd   :  { %1099 = vmatpush3.bf16.msra.mxu1 %v1219_v11  ;;  %v1246_v36 = vld [vmem:[%s1612_s0 + $0xc] ss:$36 sps:$4 sm:$0xff]   ;;  %v1247_v37 = vld [vmem:[%s1611_s1 + $0x100] sm:$0xff]   ;;  %v1258_v48 = vld [vmem:[%s1611_s1 + $0x158] sm:$0xff]  }
   0xe   :  { %1100 = vmatprep.subr.bf16.mxu1 %v1222_v14  ;;  %791 = vmatprep.mubr.bf16.mxu1 %v1246_v36  ;;  %v1248_v38 = vld [vmem:[%s1611_s1 + $0x1c0] sm:$0xff]   ;;  %v1250_v40 = vld [vmem:[%s1611_s1 + $0x148] sm:$0xff]   ;;  %v1254_v44 = vld [vmem:[%s1611_s1 + $0x150] sm:$0xff]  }
   0xf   :  { %1073 = vmatpush3.bf16.msra.mxu0 %v1221_v13  ;;  %v1249_v39 = vld [vmem:[%s1611_s1 + $0x180] sm:$0xff]   ;;  %v1251_v41 = vld [vmem:[%s1611_s1 + $0x108] sm:$0xff]   ;;  %v1255_v45 = vld [vmem:[%s1611_s1 + $0x110] sm:$0xff]  }
  0x10   :  { %1074 = vmatprep.subr.bf16.mxu0 %v1224_v16  ;;  %v1252_v42 = vld [vmem:[%s1611_s1 + $0x1c8] sm:$0xff]   ;;  %v1256_v46 = vld [vmem:[%s1611_s1 + $0x1d0] sm:$0xff]   ;;  %v1259_v49 = vld [vmem:[%s1611_s1 + $0x118] sm:$0xff]  }
  0x11   :  { %1101 = vmatpush3.bf16.msra.mxu1 %v1223_v15  ;;  %v1253_v43 = vld [vmem:[%s1611_s1 + $0x188] sm:$0xff]   ;;  %v1257_v47 = vld [vmem:[%s1611_s1 + $0x190] sm:$0xff]   ;;  %v1260_v50 = vld [vmem:[%s1611_s1 + $0x1d8] sm:$0xff]  }
  0x12   :  { %1102 = vmatprep.subr.bf16.mxu1 %v1226_v18  ;;  %v1261_v51 = vld [vmem:[%s1611_s1 + $0x198] sm:$0xff]   ;;  %v1262_v52 = vld [vmem:[%s1611_s1 + $0x160] sm:$0xff]   ;;  %v1266_v56 = vld [vmem:[%s1611_s1 + $0x168] sm:$0xff]  }
  0x13   :  { %1075 = vmatpush3.bf16.msra.mxu0 %v1225_v17  ;;  %v1263_v53 = vld [vmem:[%s1611_s1 + $0x120] sm:$0xff]   ;;  %v1267_v57 = vld [vmem:[%s1612_s0 + $0x4c] ss:$36 sps:$4 sm:$0xff]   ;;  %v1272_v61 = vld [vmem:[%s1612_s0 + $0x54] ss:$36 sps:$4 sm:$0xff]  }
  0x14   :  { %1076 = vmatprep.subr.bf16.mxu0 %v1228_v20  ;;  %v1264_v54 = vld [vmem:[%s1611_s1 + $0x1e0] sm:$0xff]   ;;  %v1269_v58 = vld [vmem:[%s1611_s1 + $0x128] sm:$0xff]   ;;  %v1275_v63 = vld [vmem:[%s1612_s0 + $0x50] ss:$36 sps:$4 sm:$0xff]  }
  0x15   :  { %1103 = vmatpush3.bf16.msra.mxu1 %v1227_v19  ;;  %v1265_v55 = vld [vmem:[%s1611_s1 + $0x1a0] sm:$0xff]   ;;  %v1270_v59 = vld [vmem:[%s1612_s0 + $0x48] ss:$36 sps:$4 sm:$0xff]   ;;  %v1276_v0 = vld [vmem:[%s1611_s1 + $0x170] sm:$0xff]  }
  0x16   :  { %1104 = vmatprep.subr.bf16.mxu1 %v1230_v22  ;;  %v1271_v60 = vld [vmem:[%s1611_s1 + $0x1e8] sm:$0xff]   ;;  %v1277_v1 = vld [vmem:[%s1611_s1 + $0x130] sm:$0xff]   ;;  %v1280_v4 = vld [vmem:[%s1611_s1 + $0x178] sm:$0xff]  }
  0x17   :  { %1077 = vmatpush3.bf16.msra.mxu0 %v1229_v21  ;;  %v1274_v62 = vld [vmem:[%s1611_s1 + $0x1a8] sm:$0xff]   ;;  %v1278_v2 = vld [vmem:[%s1611_s1 + $0x1f0] sm:$0xff]   ;;  %v1281_v5 = vld [vmem:[%s1611_s1 + $0x138] sm:$0xff]  }
  0x18   :  { %1078 = vmatprep.subr.bf16.mxu0 %v1232_v24  ;;  %v1279_v3 = vld [vmem:[%s1611_s1 + $0x1b0] sm:$0xff]   ;;  %v1282_v6 = vld [vmem:[%s1611_s1 + $0x1f8] sm:$0xff]   ;;  %v1287_v10 = vld [vmem:[%s1611_s1 + $0x200] sm:$0xff]  }
  0x19   :  { %1105 = vmatpush3.bf16.msra.mxu1 %v1231_v23  ;;  %v1283_v7 = vld [vmem:[%s1612_s0 + $0x10] ss:$36 sps:$4 sm:$0xff]   ;;  %v1286_v9 = vld [vmem:[%s1611_s1 + $0x1b8] sm:$0xff]   ;;  %v1291_v13 = vld [vmem:[%s1611_s1 + $0x208] sm:$0xff]  }
  0x1a   :  { %1106 = vmatprep.subr.bf16.mxu1 %v1234_v26  ;;  %v1285_v8 = vld [vmem:[%s1612_s0 + $0x14] ss:$36 sps:$4 sm:$0xff]   ;;  %v1290_v12 = vld [vmem:[%s1612_s0 + $0x1c] ss:$36 sps:$4 sm:$0xff]   ;;  %v1296_v17 = vld [vmem:[%s1612_s0 + $0x64] ss:$36 sps:$4 sm:$0xff]  }
  0x1b   :  { %1079 = vmatpush3.bf16.msra.mxu0 %v1233_v25  ;;  %v1288_v11 = vld [vmem:[%s1612_s0 + $0x18] ss:$36 sps:$4 sm:$0xff]   ;;  %v1295_v16 = vld [vmem:[%s1611_s1 + $0x210] sm:$0xff]   ;;  %v1298_v18 = vld [vmem:[%s1612_s0 + $0x60] ss:$36 sps:$4 sm:$0xff]  }
  0x1c   :  { %1080 = vmatprep.subr.bf16.mxu0 %v1236_v28  ;;  %v1292_v14 = vld [vmem:[%s1612_s0 + $0x5c] ss:$36 sps:$4 sm:$0xff]   ;;  %v1301_v22 = vld [vmem:[%s1611_s1 + $0x228] sm:$0xff]   ;;  %v1302_v23 = vld [vmem:[%s1611_s1 + $0x230] sm:$0xff]  }
  0x1d   :  { %1107 = vmatpush3.bf16.msra.mxu1 %v1235_v27  ;;  %v1294_v15 = vld [vmem:[%s1612_s0 + $0x58] ss:$36 sps:$4 sm:$0xff]   ;;  %v1300_v20 = vld [vmem:[%s1611_s1 + $0x220] sm:$0xff]   ;;  %v1305_v25 = vld [vmem:[%s1612_s0 + $0x68] ss:$36 sps:$4 sm:$0xff]  }
  0x1e   :  { %1108 = vmatprep.subr.bf16.mxu1 %v1238_v30  ;;  %v1299_v19 = vld [vmem:[%s1611_s1 + $0x218] sm:$0xff]   ;;  %v1304_v21 = vld [vmem:[%s1612_s0 + $0x20] ss:$36 sps:$4 sm:$0xff]  }
  0x1f   :  { %1081 = vmatpush3.bf16.msra.mxu0 %v1237_v29  ;;  %v1303_v24 = vld [vmem:[%s1611_s1 + $0x238] sm:$0xff]   ;;  %v975_v27 = vld [vmem:[%s1613_s2] ss:$0 sm:$0xff] }
  0x20   :  { %1122 = vmatprep.subr.bf16.mxu0 %v1243_v34 }
  0x21   :  { %1109 = vmatpush3.bf16.msra.mxu1 %v1242_v33 }
  0x22   :  { %743 = vmatmul.mubr.bf16.vlgmr.msra.gmra.mrb[0].mxu0 %v1239_v31  ;;  %1150 = vmatprep.subr.bf16.mxu1 %v1248_v38 }
  0x23   :  { %1123 = vmatpush3.bf16.msra.mxu0 %v1247_v37  ;;  %750 = vmatprep.mubr.bf16.mxu0 %v1267_v57 }
  0x24   :  { %792 = vmatmul.mubr.bf16.vlgmr.msra.gmra.mrb[0].mxu1 %v1244_v35  ;;  %1124 = vmatprep.subr.bf16.mxu0 %v1250_v40 }
  0x25   :  { %1151 = vmatpush3.bf16.msra.mxu1 %v1249_v39  ;;  %799 = vmatprep.mubr.bf16.mxu1 %v1272_v61 }
  0x26   :  { %1152 = vmatprep.subr.bf16.mxu1 %v1252_v42 }
  0x27   :  { %1125 = vmatpush3.bf16.msra.mxu0 %v1251_v41 }
  0x28   :  { %1126 = vmatprep.subr.bf16.mxu0 %v1254_v44 }
  0x29   :  { %1153 = vmatpush3.bf16.msra.mxu1 %v1253_v43 }
  0x2a   :  { %1154 = vmatprep.subr.bf16.mxu1 %v1256_v46  ;;  %751 = vmatmul.mubr.bf16.gmra.mrb[4].mxu0 %v1270_v59 }
  0x2b   :  { %1127 = vmatpush3.bf16.msra.mxu0 %v1255_v45  ;;  %840 = vmatprep.mubr.bf16.mxu0 %v1285_v8 }
  0x2c   :  { %1128 = vmatprep.subr.bf16.mxu0 %v1258_v48  ;;  %800 = vmatmul.mubr.bf16.gmra.mrb[4].mxu1 %v1275_v63 }
  0x2d   :  { %1155 = vmatpush3.bf16.msra.mxu1 %v1257_v47  ;;  %889 = vmatprep.mubr.bf16.mxu1 %v1290_v12 }
  0x2e   :  { %1156 = vmatprep.subr.bf16.mxu1 %v1260_v50 }
  0x2f   :  { %1129 = vmatpush3.bf16.msra.mxu0 %v1259_v49 }
  0x30   :  { %1130 = vmatprep.subr.bf16.mxu0 %v1262_v52 }
  0x31   :  { %1157 = vmatpush3.bf16.msra.mxu1 %v1261_v51 }
  0x32   :  { %1158 = vmatprep.subr.bf16.mxu1 %v1264_v54 }
  0x33   :  { %1131 = vmatpush3.bf16.msra.mxu0 %v1263_v53 }
  0x34   :  { %1132 = vmatprep.subr.bf16.mxu0 %v1266_v56 }
  0x35   :  { %1159 = vmatpush3.bf16.msra.mxu1 %v1265_v55 }
  0x36   :  { %1160 = vmatprep.subr.bf16.mxu1 %v1271_v60 }
  0x37   :  { %1133 = vmatpush3.bf16.msra.mxu0 %v1269_v58 }
  0x38   :  { %1134 = vmatprep.subr.bf16.mxu0 %v1276_v0 }
  0x39   :  { %1161 = vmatpush3.bf16.msra.mxu1 %v1274_v62 }
  0x3a   :  { %1162 = vmatprep.subr.bf16.mxu1 %v1278_v2 }
  0x3b   :  { %1135 = vmatpush3.bf16.msra.mxu0 %v1277_v1 }
  0x3c   :  { %1136 = vmatprep.subr.bf16.mxu0 %v1280_v4 }
  0x3d   :  { %1163 = vmatpush3.bf16.msra.mxu1 %v1279_v3 }
  0x3e   :  { %1164 = vmatprep.subr.bf16.mxu1 %v1282_v6 }
  0x3f   :  { %1137 = vmatpush3.bf16.msra.mxu0 %v1281_v5 }
  0x40   :  { %1188 = vmatprep.subr.bf16.mxu0 %v1287_v10 }
  0x41   :  { %1165 = vmatpush3.bf16.msra.mxu1 %v1286_v9 }
  0x42   :  { %841 = vmatmul.mubr.bf16.vlgmr.msra.gmra.mrb[8].mxu0 %v1283_v7 }
  0x43   :  { %1189 = vmatpush3.bf16.msra.mxu0 %v1287_v10  ;;  %848 = vmatprep.mubr.bf16.mxu0 %v1292_v14 }
  0x44   :  { %890 = vmatmul.mubr.bf16.vlgmr.msra.gmra.mrb[8].mxu1 %v1288_v11  ;;  %1190 = vmatprep.subr.bf16.mxu0 %v1291_v13 }
  0x45   :  { %897 = vmatprep.mubr.bf16.mxu1 %v1296_v17 }
  0x47   :  { %1191 = vmatpush3.bf16.msra.mxu0 %v1291_v13 }
  0x48   :  { %1192 = vmatprep.subr.bf16.mxu0 %v1295_v16 }
  0x4a   :  { %849 = vmatmul.mubr.bf16.gmra.mrb[12].mxu0 %v1294_v15 }
  0x4b   :  { %1193 = vmatpush3.bf16.msra.mxu0 %v1295_v16  ;;  %1204 = vmatprep.mubr.bf16.mxu0 %v1304_v21 }
  0x4c   :  { %898 = vmatmul.mubr.bf16.gmra.mrb[12].mxu1 %v1298_v18  ;;  %1194 = vmatprep.subr.bf16.mxu0 %v1299_v19 }
  0x4f   :  { %1195 = vmatpush3.bf16.msra.mxu0 %v1299_v19 }
  0x50   :  { %1196 = vmatprep.subr.bf16.mxu0 %v1300_v20 }
  0x53   :  { %1197 = vmatpush3.bf16.msra.mxu0 %v1300_v20 }
  0x54   :  { %1198 = vmatprep.subr.bf16.mxu0 %v1301_v22 }
  0x57   :  { %1199 = vmatpush3.bf16.msra.mxu0 %v1301_v22 }
  0x58   :  { %1200 = vmatprep.subr.bf16.mxu0 %v1302_v23 }
  0x5b   :  { %1201 = vmatpush3.bf16.msra.mxu0 %v1302_v23 }
  0x5c   :  { %1202 = vmatprep.subr.bf16.mxu0 %v1303_v24 }
  0x5f   :  { %1203 = vmatpush3.bf16.msra.mxu0 %v1303_v24 }
  0x62   :  { %1205 = vmatmul.mubr.bf16.vlgmr.msra.gmra.mrb[16].mxu0 %v1305_v25 }
  0xf5   :  { %v1082_v26 = vpop.f32.mrb[0].mxu0 }
  0xf6   :  { %v1083_v28 = vpop.f32.mrb[1].mxu0 }
  0xf7   :  { %v1084_v29 = vadd.f32 %v1083_v28, %v1082_v26  ;;  %v1085_v30 = vpop.f32.mrb[2].mxu0  ;;  %v1110_v31 = vpop.f32.mrb[0].mxu1 }
  0xf8   :  { %v1086_v32 = vpop.f32.mrb[3].mxu0  ;;  %v1111_v35 = vpop.f32.mrb[1].mxu1 }
  0xf9   :  { %v745_v33 = vadd.f32 %v1084_v29, %v975_v27  ;;  %v1087_v34 = vadd.f32 %v1086_v32, %v1085_v30  ;;  %v1112_v36 = vadd.f32 %v1111_v35, %v1110_v31  ;;  %v1113_v37 = vpop.f32.mrb[2].mxu1 }
  0xfa   :  { %v1114_v39 = vpop.f32.mrb[3].mxu1 }
  0xfb   :  { %v748_v38 = vadd.f32 %v1087_v34, %v975_v27  ;;  %v794_v40 = vadd.f32 %v1112_v36, %v745_v33  ;;  %v1115_v41 = vadd.f32 %v1114_v39, %v1113_v37 }
  0xfd   :  { %v797_v42 = vadd.f32 %v1115_v41, %v748_v38  ;;  %v1088_v43 = vpop.f32.mrb[4].mxu0 }
  0xfe   :  { %v1089_v44 = vpop.f32.mrb[5].mxu0 }
  0xff   :  { %v1090_v45 = vadd.f32 %v1089_v44, %v1088_v43  ;;  %v1091_v46 = vpop.f32.mrb[6].mxu0  ;;  %v1116_v47 = vpop.f32.mrb[4].mxu1 }
 0x100   :  { %v1092_v48 = vpop.f32.mrb[7].mxu0  ;;  %v1117_v51 = vpop.f32.mrb[5].mxu1 }
 0x101   :  { %v753_v49 = vadd.f32 %v1090_v45, %v975_v27  ;;  %v1093_v50 = vadd.f32 %v1092_v48, %v1091_v46  ;;  %v1118_v52 = vadd.f32 %v1117_v51, %v1116_v47  ;;  %v1119_v53 = vpop.f32.mrb[6].mxu1 }
 0x102   :  { %v1120_v55 = vpop.f32.mrb[7].mxu1 }
 0x103   :  { %v756_v54 = vadd.f32 %v1093_v50, %v975_v27  ;;  %v802_v56 = vadd.f32 %v1118_v52, %v753_v49  ;;  %v1121_v57 = vadd.f32 %v1120_v55, %v1119_v53 }
 0x105   :  { %v805_v58 = vadd.f32 %v1121_v57, %v756_v54 }
 0x115   :  { %v1138_v59 = vpop.f32.mrb[8].mxu0 }
 0x116   :  { %v1139_v60 = vpop.f32.mrb[9].mxu0 }
 0x117   :  { %v1140_v61 = vadd.f32 %v1139_v60, %v1138_v59  ;;  %v1141_v62 = vpop.f32.mrb[10].mxu0  ;;  %v1166_v63 = vpop.f32.mrb[8].mxu1 }
 0x118   :  { %v1142_v0 = vpop.f32.mrb[11].mxu0  ;;  %v1167_v3 = vpop.f32.mrb[9].mxu1 }
 0x119   :  { %v843_v1 = vadd.f32 %v1140_v61, %v794_v40  ;;  %v1143_v2 = vadd.f32 %v1142_v0, %v1141_v62  ;;  %v1168_v4 = vadd.f32 %v1167_v3, %v1166_v63  ;;  %v1169_v5 = vpop.f32.mrb[10].mxu1 }
 0x11a   :  { %v1170_v7 = vpop.f32.mrb[11].mxu1 }
 0x11b   :  { %v846_v6 = vadd.f32 %v1143_v2, %v797_v42  ;;  %v1171_v8 = vadd.f32 %v1170_v7, %v1169_v5  ;;  %v892_v9 = vadd.f32 %v1168_v4, %v843_v1 }
 0x11d   :  { %v1144_v10 = vpop.f32.mrb[12].mxu0  ;;  %v895_v12 = vadd.f32 %v1171_v8, %v846_v6 }
 0x11e   :  { %v1145_v11 = vpop.f32.mrb[13].mxu0 }
 0x11f   :  { %v1146_v13 = vadd.f32 %v1145_v11, %v1144_v10  ;;  %v1147_v14 = vpop.f32.mrb[14].mxu0  ;;  %v1172_v15 = vpop.f32.mrb[12].mxu1 }
 0x120   :  { %v1148_v16 = vpop.f32.mrb[15].mxu0  ;;  %v1173_v19 = vpop.f32.mrb[13].mxu1 }
 0x121   :  { %v851_v17 = vadd.f32 %v1146_v13, %v802_v56  ;;  %v1149_v18 = vadd.f32 %v1148_v16, %v1147_v14  ;;  %v1174_v20 = vadd.f32 %v1173_v19, %v1172_v15  ;;  %v1175_v21 = vpop.f32.mrb[14].mxu1 }
 0x122   :  { %v1176_v23 = vpop.f32.mrb[15].mxu1 }
 0x123   :  { %v854_v22 = vadd.f32 %v1149_v18, %v805_v58  ;;  %v1177_v24 = vadd.f32 %v1176_v23, %v1175_v21  ;;  %v900_v25 = vadd.f32 %v1174_v20, %v851_v17 }
 0x125   :  { %v903_v26 = vadd.f32 %v1177_v24, %v854_v22 }
 0x135   :  { %v1206_v27 = vpop.f32.mrb[16].mxu0 }
 0x136   :  { %v949_v28 = vadd.f32 %v1206_v27, %v900_v25  ;;  %v940_v29 = vpop.f32.mrb[17].mxu0 }
 0x137   :  { %v941_v30 = vadd.f32 %v940_v29, %v892_v9  ;;  %v1207_v31 = vpop.f32.mrb[18].mxu0 }
 0x138   :  { %vm957_vm0 = vcmp.gt.f32.partialorder %v949_v28, 0.0  ;;  %v961_v32 = vmul.f32 0.01, %v949_v28  ;;  %v952_v33 = vadd.f32 %v1207_v31, %v903_v26  ;;  %v943_v34 = vpop.f32.mrb[19].mxu0 }
 0x139   :  { %vm955_vm1 = vcmp.gt.f32.partialorder %v941_v30, 0.0  ;;  %v959_v35 = vmul.f32 0.01, %v941_v30  ;;  %v944_v36 = vadd.f32 %v943_v34, %v895_v12 }
 0x13a   :  { %v965_v37 = vsel %vm957_vm0, %v949_v28, %v961_v32  ;;  %vm958_vm2 = vcmp.gt.f32.partialorder %v952_v33, 0.0  ;;  %v962_v38 = vmul.f32 0.01, %v952_v33 }
 0x13b   :  { %969 = vst [vmem:[%s1614_s3 + $0x10] sm:$0xff] %v965_v37  ;;  %v963_v39 = vsel %vm955_vm1, %v941_v30, %v959_v35  ;;  %vm956_vm3 = vcmp.gt.f32.partialorder %v944_v36, 0.0  ;;  %v960_v40 = vmul.f32 0.01, %v944_v36 }
 0x13c   :  { %967 = vst [vmem:[%s1614_s3] sm:$0xff] %v963_v39  ;;  %v966_v41 = vsel %vm958_vm2, %v952_v33, %v962_v38 }
 0x13d   :  { %970 = vst [vmem:[%s1614_s3 + $0x18] sm:$0xff] %v966_v41  ;;  %v964_v42 = vsel %vm956_vm3, %v944_v36, %v960_v40 }
 0x13e   :  { %968 = vst [vmem:[%s1614_s3 + $0x8] sm:$0xff] %v964_v42 }

// kernel: cae5_forward.14
= control target key start
LH: loop header
LB: loop body
LE: loop exit
PB: predicated region body
PF: predicated region fallthrough
CT: control target
= control target key end

     0   :  { %s2710_s1 = inlined_call_operand.vmem [shape: bf16[2304,128], index: 1, kind: input, shape index: {}]   ;;  %s2711_s0 = inlined_call_operand.vmem [shape: bf16[16,2304], index: 0, kind: input, shape index: {}]   ;;  %s2712_s2 = inlined_call_operand.vmem [shape: f32[1,128], index: 2, kind: input, shape index: {}]   ;;  %s2713_s3 = inlined_call_operand.vmem [shape: f32[16,128], index: 3, kind: output, shape index: {}]  }
   0x1   :  { %v2024_v0 = vld [vmem:[%s2710_s1 + $0x40] sm:$0xff]   ;;  %v2028_v4 = vld [vmem:[%s2710_s1 + $0x48] sm:$0xff]   ;;  %v2032_v8 = vld [vmem:[%s2710_s1 + $0x50] sm:$0xff]  }
   0x2   :  { %v2025_v1 = vld [vmem:[%s2710_s1] sm:$0xff]   ;;  %1826 = vmatprep.subr.bf16.mxu0 %v2024_v0  ;;  %v2029_v5 = vld [vmem:[%s2710_s1 + $0x8] sm:$0xff]   ;;  %v2033_v9 = vld [vmem:[%s2710_s1 + $0x10] sm:$0xff]  }
   0x3   :  { %v2026_v2 = vld [vmem:[%s2710_s1 + $0xc0] sm:$0xff]   ;;  %1827 = vmatpush3.bf16.msra.mxu0 %v2025_v1  ;;  %v2030_v6 = vld [vmem:[%s2710_s1 + $0xc8] sm:$0xff]   ;;  %v2034_v10 = vld [vmem:[%s2710_s1 + $0xd0] sm:$0xff]  }
   0x4   :  { %v2027_v3 = vld [vmem:[%s2710_s1 + $0x80] sm:$0xff]   ;;  %1848 = vmatprep.subr.bf16.mxu1 %v2026_v2  ;;  %1828 = vmatprep.subr.bf16.mxu0 %v2028_v4  ;;  %v2031_v7 = vld [vmem:[%s2710_s1 + $0x88] sm:$0xff]   ;;  %v2035_v11 = vld [vmem:[%s2710_s1 + $0x90] sm:$0xff]  }
   0x5   :  { %1849 = vmatpush3.bf16.msra.mxu1 %v2027_v3  ;;  %v2036_v12 = vld [vmem:[%s2710_s1 + $0x58] sm:$0xff]   ;;  %v2040_v16 = vld [vmem:[%s2710_s1 + $0x60] sm:$0xff]   ;;  %v2044_v20 = vld [vmem:[%s2710_s1 + $0x68] sm:$0xff]  }
   0x6   :  { %1850 = vmatprep.subr.bf16.mxu1 %v2030_v6  ;;  %v2037_v13 = vld [vmem:[%s2710_s1 + $0x18] sm:$0xff]   ;;  %v2041_v17 = vld [vmem:[%s2710_s1 + $0x20] sm:$0xff]   ;;  %v2045_v21 = vld [vmem:[%s2710_s1 + $0x28] sm:$0xff]  }
   0x7   :  { %1829 = vmatpush3.bf16.msra.mxu0 %v2029_v5  ;;  %v2038_v14 = vld [vmem:[%s2710_s1 + $0xd8] sm:$0xff]   ;;  %v2042_v18 = vld [vmem:[%s2710_s1 + $0xe0] sm:$0xff]   ;;  %v2046_v22 = vld [vmem:[%s2710_s1 + $0xe8] sm:$0xff]  }
   0x8   :  { %1830 = vmatprep.subr.bf16.mxu0 %v2032_v8  ;;  %v2039_v15 = vld [vmem:[%s2710_s1 + $0x98] sm:$0xff]   ;;  %v2043_v19 = vld [vmem:[%s2710_s1 + $0xa0] sm:$0xff]   ;;  %v2047_v23 = vld [vmem:[%s2710_s1 + $0xa8] sm:$0xff]  }
   0x9   :  { %1851 = vmatpush3.bf16.msra.mxu1 %v2031_v7  ;;  %v2048_v24 = vld [vmem:[%s2710_s1 + $0x70] sm:$0xff]   ;;  %v2052_v28 = vld [vmem:[%s2710_s1 + $0x78] sm:$0xff]   ;;  %v2055_v31 = vld [vmem:[%s2711_s0] ss:$72 sps:$4 sm:$0xff]  }
   0xa   :  { %1852 = vmatprep.subr.bf16.mxu1 %v2034_v10  ;;  %v2049_v25 = vld [vmem:[%s2710_s1 + $0x30] sm:$0xff]   ;;  %v2053_v29 = vld [vmem:[%s2710_s1 + $0x38] sm:$0xff]   ;;  %v2057_v32 = vld [vmem:[%s2711_s0 + $0x4] ss:$72 sps:$4 sm:$0xff]  }
   0xb   :  { %1831 = vmatpush3.bf16.msra.mxu0 %v2033_v9  ;;  %v2050_v26 = vld [vmem:[%s2710_s1 + $0xf0] sm:$0xff]   ;;  %v2054_v30 = vld [vmem:[%s2710_s1 + $0xf8] sm:$0xff]   ;;  %1314 = vmatprep.mubr.bf16.mxu0 %v2057_v32  ;;  %v2059_v34 = vld [vmem:[%s2710_s1 + $0x140] sm:$0xff]  }
   0xc   :  { %1832 = vmatprep.subr.bf16.mxu0 %v2036_v12  ;;  %v2051_v27 = vld [vmem:[%s2710_s1 + $0xb0] sm:$0xff]   ;;  %v2058_v33 = vld [vmem:[%s2710_s1 + $0xb8] sm:$0xff]   ;;  %v2063_v37 = vld [vmem:[%s2710_s1 + $0x100] sm:$0xff]  }
   0xd   :  { %1853 = vmatpush3.bf16.msra.mxu1 %v2035_v11  ;;  %v2060_v35 = vld [vmem:[%s2711_s0 + $0x8] ss:$72 sps:$4 sm:$0xff]   ;;  %v2062_v36 = vld [vmem:[%s2711_s0 + $0xc] ss:$72 sps:$4 sm:$0xff]   ;;  %v2064_v38 = vld [vmem:[%s2710_s1 + $0x1c0] sm:$0xff]  }
   0xe   :  { %1854 = vmatprep.subr.bf16.mxu1 %v2038_v14  ;;  %1355 = vmatprep.mubr.bf16.mxu1 %v2062_v36  ;;  %v2065_v39 = vld [vmem:[%s2710_s1 + $0x180] sm:$0xff]   ;;  %v2066_v40 = vld [vmem:[%s2710_s1 + $0x148] sm:$0xff]   ;;  %v2070_v44 = vld [vmem:[%s2710_s1 + $0x150] sm:$0xff]  }
   0xf   :  { %1833 = vmatpush3.bf16.msra.mxu0 %v2037_v13  ;;  %v2067_v41 = vld [vmem:[%s2710_s1 + $0x108] sm:$0xff]   ;;  %v2071_v45 = vld [vmem:[%s2710_s1 + $0x110] sm:$0xff]   ;;  %v2074_v48 = vld [vmem:[%s2710_s1 + $0x158] sm:$0xff]  }
  0x10   :  { %1834 = vmatprep.subr.bf16.mxu0 %v2040_v16  ;;  %v2068_v42 = vld [vmem:[%s2710_s1 + $0x1c8] sm:$0xff]   ;;  %v2072_v46 = vld [vmem:[%s2710_s1 + $0x1d0] sm:$0xff]   ;;  %v2075_v49 = vld [vmem:[%s2710_s1 + $0x118] sm:$0xff]  }
  0x11   :  { %1855 = vmatpush3.bf16.msra.mxu1 %v2039_v15  ;;  %v2069_v43 = vld [vmem:[%s2710_s1 + $0x188] sm:$0xff]   ;;  %v2073_v47 = vld [vmem:[%s2710_s1 + $0x190] sm:$0xff]   ;;  %v2076_v50 = vld [vmem:[%s2710_s1 + $0x1d8] sm:$0xff]  }
  0x12   :  { %1856 = vmatprep.subr.bf16.mxu1 %v2042_v18  ;;  %v2077_v51 = vld [vmem:[%s2710_s1 + $0x198] sm:$0xff]   ;;  %v2078_v52 = vld [vmem:[%s2710_s1 + $0x160] sm:$0xff]   ;;  %v2082_v56 = vld [vmem:[%s2710_s1 + $0x168] sm:$0xff]  }
  0x13   :  { %1835 = vmatpush3.bf16.msra.mxu0 %v2041_v17  ;;  %v2079_v53 = vld [vmem:[%s2710_s1 + $0x120] sm:$0xff]   ;;  %v2083_v57 = vld [vmem:[%s2710_s1 + $0x128] sm:$0xff]   ;;  %v2086_v60 = vld [vmem:[%s2710_s1 + $0x170] sm:$0xff]  }
  0x14   :  { %1836 = vmatprep.subr.bf16.mxu0 %v2044_v20  ;;  %v2080_v54 = vld [vmem:[%s2710_s1 + $0x1e0] sm:$0xff]   ;;  %v2084_v58 = vld [vmem:[%s2710_s1 + $0x1e8] sm:$0xff]   ;;  %v2087_v61 = vld [vmem:[%s2710_s1 + $0x130] sm:$0xff]  }
  0x15   :  { %1857 = vmatpush3.bf16.msra.mxu1 %v2043_v19  ;;  %v2081_v55 = vld [vmem:[%s2710_s1 + $0x1a0] sm:$0xff]   ;;  %v2085_v59 = vld [vmem:[%s2710_s1 + $0x1a8] sm:$0xff]   ;;  %v2088_v62 = vld [vmem:[%s2710_s1 + $0x1f0] sm:$0xff]  }
  0x16   :  { %1858 = vmatprep.subr.bf16.mxu1 %v2046_v22  ;;  %v2089_v63 = vld [vmem:[%s2710_s1 + $0x1b0] sm:$0xff]   ;;  %v2090_v0 = vld [vmem:[%s2710_s1 + $0x178] sm:$0xff]   ;;  %v2097_v6 = vld [vmem:[%s2710_s1 + $0x240] sm:$0xff]  }
  0x17   :  { %1837 = vmatpush3.bf16.msra.mxu0 %v2045_v21  ;;  %v2091_v1 = vld [vmem:[%s2710_s1 + $0x138] sm:$0xff]   ;;  %v2101_v9 = vld [vmem:[%s2710_s1 + $0x200] sm:$0xff]   ;;  %v2104_v12 = vld [vmem:[%s2710_s1 + $0x248] sm:$0xff]  }
  0x18   :  { %1838 = vmatprep.subr.bf16.mxu0 %v2048_v24  ;;  %v2092_v2 = vld [vmem:[%s2710_s1 + $0x1f8] sm:$0xff]   ;;  %v2102_v10 = vld [vmem:[%s2710_s1 + $0x2c0] sm:$0xff]   ;;  %v2105_v13 = vld [vmem:[%s2710_s1 + $0x208] sm:$0xff]  }
  0x19   :  { %1859 = vmatpush3.bf16.msra.mxu1 %v2047_v23  ;;  %v2093_v3 = vld [vmem:[%s2711_s0 + $0x10] ss:$72 sps:$4 sm:$0xff]   ;;  %v2095_v4 = vld [vmem:[%s2711_s0 + $0x14] ss:$72 sps:$4 sm:$0xff]   ;;  %v2103_v11 = vld [vmem:[%s2710_s1 + $0x280] sm:$0xff]  }
  0x1a   :  { %1860 = vmatprep.subr.bf16.mxu1 %v2050_v26  ;;  %v2096_v5 = vld [vmem:[%s2710_s1 + $0x1b8] sm:$0xff]   ;;  %v2106_v14 = vld [vmem:[%s2710_s1 + $0x2c8] sm:$0xff]   ;;  %v2108_v16 = vld [vmem:[%s2710_s1 + $0x250] sm:$0xff]  }
  0x1b   :  { %1839 = vmatpush3.bf16.msra.mxu0 %v2049_v25  ;;  %v2098_v7 = vld [vmem:[%s2711_s0 + $0x18] ss:$72 sps:$4 sm:$0xff]   ;;  %v2100_v8 = vld [vmem:[%s2711_s0 + $0x1c] ss:$72 sps:$4 sm:$0xff]   ;;  %v2107_v15 = vld [vmem:[%s2710_s1 + $0x288] sm:$0xff]  }
  0x1c   :  { %1840 = vmatprep.subr.bf16.mxu0 %v2052_v28  ;;  %v2109_v17 = vld [vmem:[%s2710_s1 + $0x210] sm:$0xff]   ;;  %v2112_v20 = vld [vmem:[%s2710_s1 + $0x258] sm:$0xff]   ;;  %v2116_v24 = vld [vmem:[%s2710_s1 + $0x260] sm:$0xff]  }
  0x1d   :  { %1861 = vmatpush3.bf16.msra.mxu1 %v2051_v27  ;;  %v2110_v18 = vld [vmem:[%s2710_s1 + $0x2d0] sm:$0xff]   ;;  %v2113_v21 = vld [vmem:[%s2710_s1 + $0x218] sm:$0xff]   ;;  %v2117_v25 = vld [vmem:[%s2710_s1 + $0x220] sm:$0xff]  }
  0x1e   :  { %1862 = vmatprep.subr.bf16.mxu1 %v2054_v30  ;;  %v2111_v19 = vld [vmem:[%s2710_s1 + $0x290] sm:$0xff]   ;;  %v2114_v22 = vld [vmem:[%s2710_s1 + $0x2d8] sm:$0xff]   ;;  %v2118_v26 = vld [vmem:[%s2710_s1 + $0x2e0] sm:$0xff]  }
  0x1f   :  { %1841 = vmatpush3.bf16.msra.mxu0 %v2053_v29  ;;  %v2115_v23 = vld [vmem:[%s2710_s1 + $0x298] sm:$0xff]   ;;  %v2119_v27 = vld [vmem:[%s2710_s1 + $0x2a0] sm:$0xff]   ;;  %v2120_v28 = vld [vmem:[%s2710_s1 + $0x268] sm:$0xff]  }
  0x20   :  { %1870 = vmatprep.subr.bf16.mxu0 %v2059_v34  ;;  %v2121_v29 = vld [vmem:[%s2710_s1 + $0x228] sm:$0xff]   ;;  %v2124_v32 = vld [vmem:[%s2710_s1 + $0x270] sm:$0xff]   ;;  %v2128_v36 = vld [vmem:[%s2710_s1 + $0x278] sm:$0xff]  }
  0x21   :  { %1863 = vmatpush3.bf16.msra.mxu1 %v2058_v33  ;;  %v2122_v30 = vld [vmem:[%s2710_s1 + $0x2e8] sm:$0xff]   ;;  %v2125_v33 = vld [vmem:[%s2710_s1 + $0x230] sm:$0xff]  }
  0x22   :  { %1315 = vmatmul.mubr.bf16.vlgmr.msra.gmra.mrb[0].mxu0 %v2055_v31  ;;  %1892 = vmatprep.subr.bf16.mxu1 %v2064_v38  ;;  %v2123_v31 = vld [vmem:[%s2710_s1 + $0x2a8] sm:$0xff]   ;;  %v2126_v34 = vld [vmem:[%s2710_s1 + $0x2f0] sm:$0xff]   ;;  %v2130_v38 = vld [vmem:[%s2710_s1 + $0x2f8] sm:$0xff]  }
  0x23   :  { %1871 = vmatpush3.bf16.msra.mxu0 %v2063_v37  ;;  %1396 = vmatprep.mubr.bf16.mxu0 %v2095_v4  ;;  %v2129_v37 = vld [vmem:[%s2710_s1 + $0x238] sm:$0xff]   ;;  %v2162_v4 = vld [vmem:[%s2710_s1 + $0x370] sm:$0xff]  }
  0x24   :  { %1356 = vmatmul.mubr.bf16.vlgmr.msra.gmra.mrb[0].mxu1 %v2060_v35  ;;  %1872 = vmatprep.subr.bf16.mxu0 %v2066_v40  ;;  %v2127_v35 = vld [vmem:[%s2710_s1 + $0x2b0] sm:$0xff]   ;;  %v2133_v40 = vld [vmem:[%s2711_s0 + $0x24] ss:$72 sps:$4 sm:$0xff]  }
  0x25   :  { %1893 = vmatpush3.bf16.msra.mxu1 %v2065_v39  ;;  %1437 = vmatprep.mubr.bf16.mxu1 %v2100_v8  ;;  %v2131_v39 = vld [vmem:[%s2711_s0 + $0x20] ss:$72 sps:$4 sm:$0xff]   ;;  %v2166_v8 = vld [vmem:[%s2710_s1 + $0x378] sm:$0xff]  }
  0x26   :  { %1894 = vmatprep.subr.bf16.mxu1 %v2068_v42  ;;  %v2135_v42 = vld [vmem:[%s2710_s1 + $0x340] sm:$0xff]  }
  0x27   :  { %1873 = vmatpush3.bf16.msra.mxu0 %v2067_v41  ;;  %v2134_v41 = vld [vmem:[%s2710_s1 + $0x2b8] sm:$0xff]  }
  0x28   :  { %1874 = vmatprep.subr.bf16.mxu0 %v2070_v44  ;;  %v2138_v44 = vld [vmem:[%s2711_s0 + $0x2c] ss:$72 sps:$4 sm:$0xff]  }
  0x29   :  { %1895 = vmatpush3.bf16.msra.mxu1 %v2069_v43  ;;  %v2136_v43 = vld [vmem:[%s2711_s0 + $0x28] ss:$72 sps:$4 sm:$0xff]  }
  0x2a   :  { %1896 = vmatprep.subr.bf16.mxu1 %v2072_v46  ;;  %v2140_v46 = vld [vmem:[%s2710_s1 + $0x3c0] sm:$0xff]  }
  0x2b   :  { %1875 = vmatpush3.bf16.msra.mxu0 %v2071_v45  ;;  %v2139_v45 = vld [vmem:[%s2710_s1 + $0x300] sm:$0xff]  }
  0x2c   :  { %1876 = vmatprep.subr.bf16.mxu0 %v2074_v48  ;;  %v2142_v48 = vld [vmem:[%s2710_s1 + $0x348] sm:$0xff]  }
  0x2d   :  { %1897 = vmatpush3.bf16.msra.mxu1 %v2073_v47  ;;  %v2141_v47 = vld [vmem:[%s2710_s1 + $0x380] sm:$0xff]  }
  0x2e   :  { %1898 = vmatprep.subr.bf16.mxu1 %v2076_v50  ;;  %v2144_v50 = vld [vmem:[%s2710_s1 + $0x3c8] sm:$0xff]  }
  0x2f   :  { %1877 = vmatpush3.bf16.msra.mxu0 %v2075_v49  ;;  %v2143_v49 = vld [vmem:[%s2710_s1 + $0x308] sm:$0xff]  }
  0x30   :  { %1878 = vmatprep.subr.bf16.mxu0 %v2078_v52  ;;  %v2146_v52 = vld [vmem:[%s2710_s1 + $0x350] sm:$0xff]  }
  0x31   :  { %1899 = vmatpush3.bf16.msra.mxu1 %v2077_v51  ;;  %v2145_v51 = vld [vmem:[%s2710_s1 + $0x388] sm:$0xff]  }
  0x32   :  { %1900 = vmatprep.subr.bf16.mxu1 %v2080_v54  ;;  %v2148_v54 = vld [vmem:[%s2710_s1 + $0x3d0] sm:$0xff]  }
  0x33   :  { %1879 = vmatpush3.bf16.msra.mxu0 %v2079_v53  ;;  %v2147_v53 = vld [vmem:[%s2710_s1 + $0x310] sm:$0xff]  }
  0x34   :  { %1880 = vmatprep.subr.bf16.mxu0 %v2082_v56  ;;  %v2150_v56 = vld [vmem:[%s2710_s1 + $0x358] sm:$0xff]  }
  0x35   :  { %1901 = vmatpush3.bf16.msra.mxu1 %v2081_v55  ;;  %v2149_v55 = vld [vmem:[%s2710_s1 + $0x390] sm:$0xff]  }
  0x36   :  { %1902 = vmatprep.subr.bf16.mxu1 %v2084_v58  ;;  %v2152_v58 = vld [vmem:[%s2710_s1 + $0x3d8] sm:$0xff]  }
  0x37   :  { %1881 = vmatpush3.bf16.msra.mxu0 %v2083_v57  ;;  %v2151_v57 = vld [vmem:[%s2710_s1 + $0x318] sm:$0xff]  }
  0x38   :  { %1882 = vmatprep.subr.bf16.mxu0 %v2086_v60  ;;  %v2154_v60 = vld [vmem:[%s2710_s1 + $0x360] sm:$0xff]  }
  0x39   :  { %1903 = vmatpush3.bf16.msra.mxu1 %v2085_v59  ;;  %v2153_v59 = vld [vmem:[%s2710_s1 + $0x398] sm:$0xff]  }
  0x3a   :  { %1904 = vmatprep.subr.bf16.mxu1 %v2088_v62  ;;  %v2156_v62 = vld [vmem:[%s2710_s1 + $0x3e0] sm:$0xff]  }
  0x3b   :  { %1883 = vmatpush3.bf16.msra.mxu0 %v2087_v61  ;;  %v2155_v61 = vld [vmem:[%s2710_s1 + $0x320] sm:$0xff]  }
  0x3c   :  { %1884 = vmatprep.subr.bf16.mxu0 %v2090_v0  ;;  %v2158_v0 = vld [vmem:[%s2710_s1 + $0x368] sm:$0xff]  }
  0x3d   :  { %1905 = vmatpush3.bf16.msra.mxu1 %v2089_v63  ;;  %v2157_v63 = vld [vmem:[%s2710_s1 + $0x3a0] sm:$0xff]  }
  0x3e   :  { %1906 = vmatprep.subr.bf16.mxu1 %v2092_v2  ;;  %v2160_v2 = vld [vmem:[%s2710_s1 + $0x3e8] sm:$0xff]  }
  0x3f   :  { %1885 = vmatpush3.bf16.msra.mxu0 %v2091_v1  ;;  %v2159_v1 = vld [vmem:[%s2710_s1 + $0x328] sm:$0xff]  }
  0x40   :  { %1914 = vmatprep.subr.bf16.mxu0 %v2097_v6  ;;  %v2164_v6 = vld [vmem:[%s2710_s1 + $0x3f0] sm:$0xff]  }
  0x41   :  { %1907 = vmatpush3.bf16.msra.mxu1 %v2096_v5  ;;  %v2163_v5 = vld [vmem:[%s2710_s1 + $0x330] sm:$0xff]  }
  0x42   :  { %1397 = vmatmul.mubr.bf16.vlgmr.msra.gmra.mrb[4].mxu0 %v2093_v3  ;;  %1936 = vmatprep.subr.bf16.mxu1 %v2102_v10  ;;  %v2161_v3 = vld [vmem:[%s2710_s1 + $0x3a8] sm:$0xff]   ;;  %v2168_v10 = vld [vmem:[%s2710_s1 + $0x3f8] sm:$0xff]  }
  0x43   :  { %1915 = vmatpush3.bf16.msra.mxu0 %v2101_v9  ;;  %1478 = vmatprep.mubr.bf16.mxu0 %v2133_v40  ;;  %v2167_v9 = vld [vmem:[%s2710_s1 + $0x338] sm:$0xff]  }
  0x44   :  { %1438 = vmatmul.mubr.bf16.vlgmr.msra.gmra.mrb[4].mxu1 %v2098_v7  ;;  %1916 = vmatprep.subr.bf16.mxu0 %v2104_v12  ;;  %v2165_v7 = vld [vmem:[%s2710_s1 + $0x3b0] sm:$0xff]  }
  0x45   :  { %1937 = vmatpush3.bf16.msra.mxu1 %v2103_v11  ;;  %1519 = vmatprep.mubr.bf16.mxu1 %v2138_v44  ;;  %v2169_v11 = vld [vmem:[%s2711_s0 + $0x30] ss:$72 sps:$4 sm:$0xff]   ;;  %v2171_v12 = vld [vmem:[%s2711_s0 + $0x34] ss:$72 sps:$4 sm:$0xff]  }
  0x46   :  { %1938 = vmatprep.subr.bf16.mxu1 %v2106_v14  ;;  %v2173_v14 = vld [vmem:[%s2710_s1 + $0x440] sm:$0xff]  }
  0x47   :  { %1917 = vmatpush3.bf16.msra.mxu0 %v2105_v13  ;;  %v2172_v13 = vld [vmem:[%s2710_s1 + $0x3b8] sm:$0xff]  }
  0x48   :  { %1918 = vmatprep.subr.bf16.mxu0 %v2108_v16  ;;  %v2176_v16 = vld [vmem:[%s2711_s0 + $0x3c] ss:$72 sps:$4 sm:$0xff]  }
  0x49   :  { %1939 = vmatpush3.bf16.msra.mxu1 %v2107_v15  ;;  %v2174_v15 = vld [vmem:[%s2711_s0 + $0x38] ss:$72 sps:$4 sm:$0xff]  }
  0x4a   :  { %1940 = vmatprep.subr.bf16.mxu1 %v2110_v18  ;;  %v2178_v18 = vld [vmem:[%s2710_s1 + $0x448] sm:$0xff]  }
  0x4b   :  { %1919 = vmatpush3.bf16.msra.mxu0 %v2109_v17  ;;  %v2177_v17 = vld [vmem:[%s2710_s1 + $0x400] sm:$0xff]  }
  0x4c   :  { %1920 = vmatprep.subr.bf16.mxu0 %v2112_v20  ;;  %v2180_v20 = vld [vmem:[%s2710_s1 + $0x450] sm:$0xff]  }
  0x4d   :  { %1941 = vmatpush3.bf16.msra.mxu1 %v2111_v19  ;;  %v2179_v19 = vld [vmem:[%s2710_s1 + $0x408] sm:$0xff]  }
  0x4e   :  { %1942 = vmatprep.subr.bf16.mxu1 %v2114_v22  ;;  %v2182_v22 = vld [vmem:[%s2710_s1 + $0x458] sm:$0xff]  }
  0x4f   :  { %1921 = vmatpush3.bf16.msra.mxu0 %v2113_v21  ;;  %v2181_v21 = vld [vmem:[%s2710_s1 + $0x410] sm:$0xff]  }
  0x50   :  { %1922 = vmatprep.subr.bf16.mxu0 %v2116_v24  ;;  %v2184_v24 = vld [vmem:[%s2710_s1 + $0x460] sm:$0xff]  }
  0x51   :  { %1943 = vmatpush3.bf16.msra.mxu1 %v2115_v23  ;;  %v2183_v23 = vld [vmem:[%s2710_s1 + $0x418] sm:$0xff]  }
  0x52   :  { %1944 = vmatprep.subr.bf16.mxu1 %v2118_v26  ;;  %v2186_v26 = vld [vmem:[%s2710_s1 + $0x468] sm:$0xff]  }
  0x53   :  { %1923 = vmatpush3.bf16.msra.mxu0 %v2117_v25  ;;  %v2185_v25 = vld [vmem:[%s2710_s1 + $0x420] sm:$0xff]  }
  0x54   :  { %1924 = vmatprep.subr.bf16.mxu0 %v2120_v28  ;;  %v2187_v28 = vld [vmem:[%s2710_s1 + $0x428] sm:$0xff]  }
  0x55   :  { %1945 = vmatpush3.bf16.msra.mxu1 %v2119_v27  ;;  %v2194_v27 = vld [vmem:[%s2711_s0 + $0x44] ss:$72 sps:$4 sm:$0xff]  }
  0x56   :  { %1946 = vmatprep.subr.bf16.mxu1 %v2122_v30  ;;  %v2189_v30 = vld [vmem:[%s2710_s1 + $0x430] sm:$0xff]  }
  0x57   :  { %1925 = vmatpush3.bf16.msra.mxu0 %v2121_v29  ;;  %v2188_v29 = vld [vmem:[%s2710_s1 + $0x470] sm:$0xff]  }
  0x58   :  { %1926 = vmatprep.subr.bf16.mxu0 %v2124_v32  ;;  %v2191_v32 = vld [vmem:[%s2710_s1 + $0x438] sm:$0xff]  }
  0x59   :  { %1947 = vmatpush3.bf16.msra.mxu1 %v2123_v31  ;;  %v2190_v31 = vld [vmem:[%s2710_s1 + $0x478] sm:$0xff]  }
  0x5a   :  { %1948 = vmatprep.subr.bf16.mxu1 %v2126_v34 }
  0x5b   :  { %1927 = vmatpush3.bf16.msra.mxu0 %v2125_v33  ;;  %v2192_v33 = vld [vmem:[%s2711_s0 + $0x40] ss:$72 sps:$4 sm:$0xff]  }
  0x5c   :  { %1928 = vmatprep.subr.bf16.mxu0 %v2128_v36 }
  0x5d   :  { %1949 = vmatpush3.bf16.msra.mxu1 %v2127_v35  ;;  %v1663_v35 = vld [vmem:[%s2712_s2] ss:$0 sm:$0xff] }
  0x5e   :  { %1950 = vmatprep.subr.bf16.mxu1 %v2130_v38 }
  0x5f   :  { %1929 = vmatpush3.bf16.msra.mxu0 %v2129_v37 }
  0x60   :  { %1958 = vmatprep.subr.bf16.mxu0 %v2135_v42 }
  0x61   :  { %1951 = vmatpush3.bf16.msra.mxu1 %v2134_v41 }
  0x62   :  { %1479 = vmatmul.mubr.bf16.vlgmr.msra.gmra.mrb[8].mxu0 %v2131_v39  ;;  %1980 = vmatprep.subr.bf16.mxu1 %v2140_v46 }
  0x63   :  { %1959 = vmatpush3.bf16.msra.mxu0 %v2139_v45  ;;  %1560 = vmatprep.mubr.bf16.mxu0 %v2171_v12 }
  0x64   :  { %1520 = vmatmul.mubr.bf16.vlgmr.msra.gmra.mrb[8].mxu1 %v2136_v43  ;;  %1960 = vmatprep.subr.bf16.mxu0 %v2142_v48 }
  0x65   :  { %1981 = vmatpush3.bf16.msra.mxu1 %v2141_v47  ;;  %1601 = vmatprep.mubr.bf16.mxu1 %v2176_v16 }
  0x66   :  { %1982 = vmatprep.subr.bf16.mxu1 %v2144_v50 }
  0x67   :  { %1961 = vmatpush3.bf16.msra.mxu0 %v2143_v49 }
  0x68   :  { %1962 = vmatprep.subr.bf16.mxu0 %v2146_v52 }
  0x69   :  { %1983 = vmatpush3.bf16.msra.mxu1 %v2145_v51 }
  0x6a   :  { %1984 = vmatprep.subr.bf16.mxu1 %v2148_v54 }
  0x6b   :  { %1963 = vmatpush3.bf16.msra.mxu0 %v2147_v53 }
  0x6c   :  { %1964 = vmatprep.subr.bf16.mxu0 %v2150_v56 }
  0x6d   :  { %1985 = vmatpush3.bf16.msra.mxu1 %v2149_v55 }
  0x6e   :  { %1986 = vmatprep.subr.bf16.mxu1 %v2152_v58 }
  0x6f   :  { %1965 = vmatpush3.bf16.msra.mxu0 %v2151_v57 }
  0x70   :  { %1966 = vmatprep.subr.bf16.mxu0 %v2154_v60 }
  0x71   :  { %1987 = vmatpush3.bf16.msra.mxu1 %v2153_v59 }
  0x72   :  { %1988 = vmatprep.subr.bf16.mxu1 %v2156_v62 }
  0x73   :  { %1967 = vmatpush3.bf16.msra.mxu0 %v2155_v61 }
  0x74   :  { %1968 = vmatprep.subr.bf16.mxu0 %v2158_v0 }
  0x75   :  { %1989 = vmatpush3.bf16.msra.mxu1 %v2157_v63 }
  0x76   :  { %1990 = vmatprep.subr.bf16.mxu1 %v2160_v2 }
  0x77   :  { %1969 = vmatpush3.bf16.msra.mxu0 %v2159_v1 }
  0x78   :  { %1970 = vmatprep.subr.bf16.mxu0 %v2162_v4 }
  0x79   :  { %1991 = vmatpush3.bf16.msra.mxu1 %v2161_v3 }
  0x7a   :  { %1992 = vmatprep.subr.bf16.mxu1 %v2164_v6 }
  0x7b   :  { %1971 = vmatpush3.bf16.msra.mxu0 %v2163_v5 }
  0x7c   :  { %1972 = vmatprep.subr.bf16.mxu0 %v2166_v8 }
  0x7d   :  { %1993 = vmatpush3.bf16.msra.mxu1 %v2165_v7 }
  0x7e   :  { %1994 = vmatprep.subr.bf16.mxu1 %v2168_v10 }
  0x7f   :  { %1973 = vmatpush3.bf16.msra.mxu0 %v2167_v9 }
  0x80   :  { %2002 = vmatprep.subr.bf16.mxu0 %v2173_v14 }
  0x81   :  { %1995 = vmatpush3.bf16.msra.mxu1 %v2172_v13 }
  0x82   :  { %1561 = vmatmul.mubr.bf16.vlgmr.msra.gmra.mrb[12].mxu0 %v2169_v11 }
  0x83   :  { %2003 = vmatpush3.bf16.msra.mxu0 %v2177_v17  ;;  %1642 = vmatprep.mubr.bf16.mxu0 %v2194_v27 }
  0x84   :  { %1602 = vmatmul.mubr.bf16.vlgmr.msra.gmra.mrb[12].mxu1 %v2174_v15  ;;  %2004 = vmatprep.subr.bf16.mxu0 %v2178_v18 }
  0x87   :  { %2005 = vmatpush3.bf16.msra.mxu0 %v2179_v19 }
  0x88   :  { %2006 = vmatprep.subr.bf16.mxu0 %v2180_v20 }
  0x8b   :  { %2007 = vmatpush3.bf16.msra.mxu0 %v2181_v21 }
  0x8c   :  { %2008 = vmatprep.subr.bf16.mxu0 %v2182_v22 }
  0x8f   :  { %2009 = vmatpush3.bf16.msra.mxu0 %v2183_v23 }
  0x90   :  { %2010 = vmatprep.subr.bf16.mxu0 %v2184_v24 }
  0x93   :  { %2011 = vmatpush3.bf16.msra.mxu0 %v2185_v25 }
  0x94   :  { %2012 = vmatprep.subr.bf16.mxu0 %v2186_v26 }
  0x97   :  { %2013 = vmatpush3.bf16.msra.mxu0 %v2187_v28 }
  0x98   :  { %2014 = vmatprep.subr.bf16.mxu0 %v2188_v29 }
  0x9b   :  { %2015 = vmatpush3.bf16.msra.mxu0 %v2189_v30 }
  0x9c   :  { %2016 = vmatprep.subr.bf16.mxu0 %v2190_v31 }
  0x9f   :  { %2017 = vmatpush3.bf16.msra.mxu0 %v2191_v32 }
  0xa2   :  { %1643 = vmatmul.mubr.bf16.vlgmr.msra.gmra.mrb[16].mxu0 %v2192_v33 }
  0xf5   :  { %v1842_v34 = vpop.f32.mrb[0].mxu0 }
  0xf6   :  { %v1843_v36 = vpop.f32.mrb[1].mxu0 }
  0xf7   :  { %v1844_v37 = vadd.f32 %v1843_v36, %v1842_v34  ;;  %v1845_v38 = vpop.f32.mrb[2].mxu0  ;;  %v1864_v39 = vpop.f32.mrb[0].mxu1 }
  0xf8   :  { %v1846_v40 = vpop.f32.mrb[3].mxu0  ;;  %v1865_v43 = vpop.f32.mrb[1].mxu1 }
  0xf9   :  { %v1317_v41 = vadd.f32 %v1844_v37, %v1663_v35  ;;  %v1847_v42 = vadd.f32 %v1846_v40, %v1845_v38  ;;  %v1866_v44 = vadd.f32 %v1865_v43, %v1864_v39  ;;  %v1867_v45 = vpop.f32.mrb[2].mxu1 }
  0xfa   :  { %v1868_v47 = vpop.f32.mrb[3].mxu1 }
  0xfb   :  { %v1320_v46 = vadd.f32 %v1847_v42, %v1663_v35  ;;  %v1358_v48 = vadd.f32 %v1866_v44, %v1317_v41  ;;  %v1869_v49 = vadd.f32 %v1868_v47, %v1867_v45 }
  0xfd   :  { %v1361_v50 = vadd.f32 %v1869_v49, %v1320_v46 }
 0x115   :  { %v1886_v51 = vpop.f32.mrb[4].mxu0 }
 0x116   :  { %v1887_v52 = vpop.f32.mrb[5].mxu0 }
 0x117   :  { %v1888_v53 = vadd.f32 %v1887_v52, %v1886_v51  ;;  %v1889_v54 = vpop.f32.mrb[6].mxu0  ;;  %v1908_v57 = vpop.f32.mrb[4].mxu1 }
 0x118   :  { %v1890_v55 = vpop.f32.mrb[7].mxu0  ;;  %v1909_v59 = vpop.f32.mrb[5].mxu1 }
 0x119   :  { %v1399_v56 = vadd.f32 %v1888_v53, %v1358_v48  ;;  %v1891_v58 = vadd.f32 %v1890_v55, %v1889_v54  ;;  %v1910_v61 = vadd.f32 %v1909_v59, %v1908_v57  ;;  %v1911_v62 = vpop.f32.mrb[6].mxu1 }
 0x11a   :  { %v1912_v63 = vpop.f32.mrb[7].mxu1 }
 0x11b   :  { %v1402_v60 = vadd.f32 %v1891_v58, %v1361_v50  ;;  %v1440_v0 = vadd.f32 %v1910_v61, %v1399_v56  ;;  %v1913_v1 = vadd.f32 %v1912_v63, %v1911_v62 }
 0x11d   :  { %v1443_v2 = vadd.f32 %v1913_v1, %v1402_v60 }
 0x135   :  { %v1930_v3 = vpop.f32.mrb[8].mxu0 }
 0x136   :  { %v1931_v4 = vpop.f32.mrb[9].mxu0 }
 0x137   :  { %v1932_v5 = vadd.f32 %v1931_v4, %v1930_v3  ;;  %v1933_v6 = vpop.f32.mrb[10].mxu0  ;;  %v1952_v7 = vpop.f32.mrb[8].mxu1 }
 0x138   :  { %v1934_v8 = vpop.f32.mrb[11].mxu0  ;;  %v1953_v11 = vpop.f32.mrb[9].mxu1 }
 0x139   :  { %v1481_v9 = vadd.f32 %v1932_v5, %v1440_v0  ;;  %v1935_v10 = vadd.f32 %v1934_v8, %v1933_v6  ;;  %v1954_v12 = vadd.f32 %v1953_v11, %v1952_v7  ;;  %v1955_v13 = vpop.f32.mrb[10].mxu1 }
 0x13a   :  { %v1956_v15 = vpop.f32.mrb[11].mxu1 }
 0x13b   :  { %v1484_v14 = vadd.f32 %v1935_v10, %v1443_v2  ;;  %v1522_v16 = vadd.f32 %v1954_v12, %v1481_v9  ;;  %v1957_v17 = vadd.f32 %v1956_v15, %v1955_v13 }
 0x13d   :  { %v1525_v18 = vadd.f32 %v1957_v17, %v1484_v14 }
 0x155   :  { %v1974_v19 = vpop.f32.mrb[12].mxu0 }
 0x156   :  { %v1975_v20 = vpop.f32.mrb[13].mxu0 }
 0x157   :  { %v1976_v21 = vadd.f32 %v1975_v20, %v1974_v19  ;;  %v1977_v22 = vpop.f32.mrb[14].mxu0  ;;  %v1996_v23 = vpop.f32.mrb[12].mxu1 }
 0x158   :  { %v1978_v24 = vpop.f32.mrb[15].mxu0  ;;  %v1997_v27 = vpop.f32.mrb[13].mxu1 }
 0x159   :  { %v1563_v25 = vadd.f32 %v1976_v21, %v1522_v16  ;;  %v1979_v26 = vadd.f32 %v1978_v24, %v1977_v22  ;;  %v1998_v28 = vadd.f32 %v1997_v27, %v1996_v23  ;;  %v1999_v29 = vpop.f32.mrb[14].mxu1 }
 0x15a   :  { %v2000_v31 = vpop.f32.mrb[15].mxu1 }
 0x15b   :  { %v1566_v30 = vadd.f32 %v1979_v26, %v1525_v18  ;;  %v1604_v32 = vadd.f32 %v1998_v28, %v1563_v25  ;;  %v2001_v33 = vadd.f32 %v2000_v31, %v1999_v29 }
 0x15d   :  { %v1607_v34 = vadd.f32 %v2001_v33, %v1566_v30 }
 0x175   :  { %v2018_v35 = vpop.f32.mrb[16].mxu0 }
 0x176   :  { %v2019_v36 = vpop.f32.mrb[17].mxu0 }
 0x177   :  { %v2020_v37 = vadd.f32 %v2019_v36, %v2018_v35  ;;  %v2021_v38 = vpop.f32.mrb[18].mxu0 }
 0x178   :  { %v2022_v39 = vpop.f32.mrb[19].mxu0 }
 0x179   :  { %v1645_v40 = vadd.f32 %v2020_v37, %v1604_v32  ;;  %v2023_v41 = vadd.f32 %v2022_v39, %v2021_v38 }
 0x17b   :  { %vm1651_vm0 = vcmp.gt.f32.partialorder %v1645_v40, 0.0  ;;  %v1653_v42 = vmul.f32 0.01, %v1645_v40  ;;  %v1648_v43 = vadd.f32 %v2023_v41, %v1607_v34 }
 0x17d   :  { %v1655_v44 = vsel %vm1651_vm0, %v1645_v40, %v1653_v42  ;;  %vm1652_vm1 = vcmp.gt.f32.partialorder %v1648_v43, 0.0  ;;  %v1654_v45 = vmul.f32 0.01, %v1648_v43 }
 0x17e   :  { %1657 = vst [vmem:[%s2713_s3] sm:$0xff] %v1655_v44 }
 0x17f   :  { %v1656_v46 = vsel %vm1652_vm1, %v1648_v43, %v1654_v45 }
 0x180   :  { %1658 = vst [vmem:[%s2713_s3 + $0x8] sm:$0xff] %v1656_v46 }

// kernel: cae5_forward.15
= control target key start
LH: loop header
LB: loop body
LE: loop exit
PB: predicated region body
PF: predicated region fallthrough
CT: control target
= control target key end

     0   :  { %vm390_vm1 = vcmask 523264   ;;  %s653_s1 = inlined_call_operand.vmem [shape: bf16[512,64], index: 1, kind: input, shape index: {}]   ;;  %s654_s0 = inlined_call_operand.vmem [shape: bf16[16,512], index: 0, kind: input, shape index: {}]   ;;  %s655_s2 = inlined_call_operand.vmem [shape: f32[1,64], index: 2, kind: input, shape index: {}]   ;;  %s656_s3 = inlined_call_operand.vmem [shape: f32[16,64], index: 3, kind: output, shape index: {}]  }
   0x1   :  { %v478_v0 = vld [vmem:[%s653_s1 + $0x40] sm:$0xff]   ;;  %v482_v4 = vld [vmem:[%s653_s1 + $0x48] sm:$0xff]   ;;  %v486_v8 = vld [vmem:[%s653_s1 + $0x50] sm:$0xff]  }
   0x2   :  { %v479_v1 = vld [vmem:[%s653_s1 + $0xc0] sm:$0xff]   ;;  %434 = vmatprep.subr.bf16.mxu0 %v478_v0  ;;  %v483_v5 = vld [vmem:[%s653_s1 + $0xc8] sm:$0xff]   ;;  %v487_v9 = vld [vmem:[%s653_s1 + $0xd0] sm:$0xff]  }
   0x3   :  { %v480_v2 = vld [vmem:[%s653_s1] sm:$0xff]   ;;  %456 = vmatprep.subr.bf16.mxu1 %v479_v1  ;;  %v484_v6 = vld [vmem:[%s653_s1 + $0x8] sm:$0xff]   ;;  %v488_v10 = vld [vmem:[%s653_s1 + $0x10] sm:$0xff]  }
   0x4   :  { %v481_v3 = vld [vmem:[%s653_s1 + $0x80] sm:$0xff]   ;;  %435 = vmatpush3.bf16.msra.mxu0 %v480_v2  ;;  %v485_v7 = vld [vmem:[%s653_s1 + $0x88] sm:$0xff]   ;;  %v489_v11 = vld [vmem:[%s653_s1 + $0x90] sm:$0xff]  }
   0x5   :  { %457 = vmatpush3.bf16.msra.mxu1 %v481_v3  ;;  %436 = vmatprep.subr.bf16.mxu0 %v482_v4  ;;  %v490_v12 = vld [vmem:[%s653_s1 + $0x58] sm:$0xff]   ;;  %v494_v16 = vld [vmem:[%s653_s1 + $0x60] sm:$0xff]   ;;  %v498_v20 = vld [vmem:[%s653_s1 + $0x68] sm:$0xff]  }
   0x6   :  { %458 = vmatprep.subr.bf16.mxu1 %v483_v5  ;;  %v491_v13 = vld [vmem:[%s653_s1 + $0xd8] sm:$0xff]   ;;  %v495_v17 = vld [vmem:[%s653_s1 + $0xe0] sm:$0xff]   ;;  %v499_v21 = vld [vmem:[%s653_s1 + $0xe8] sm:$0xff]  }
   0x7   :  { %v492_v14 = vld [vmem:[%s653_s1 + $0x18] sm:$0xff]   ;;  %v496_v18 = vld [vmem:[%s653_s1 + $0x20] sm:$0xff]   ;;  %v500_v22 = vld [vmem:[%s653_s1 + $0x28] sm:$0xff]  }
   0x8   :  { %437 = vmatpush3.bf16.msra.mxu0 %v484_v6  ;;  %v493_v15 = vld [vmem:[%s653_s1 + $0x98] sm:$0xff]   ;;  %v497_v19 = vld [vmem:[%s653_s1 + $0xa0] sm:$0xff]   ;;  %v501_v23 = vld [vmem:[%s653_s1 + $0xa8] sm:$0xff]  }
   0x9   :  { %459 = vmatpush3.bf16.msra.mxu1 %v485_v7  ;;  %438 = vmatprep.subr.bf16.mxu0 %v486_v8  ;;  %v502_v24 = vld [vmem:[%s653_s1 + $0x70] sm:$0xff]   ;;  %v506_v28 = vld [vmem:[%s653_s1 + $0x78] sm:$0xff]   ;;  %v397_v38 = vld [vmem:[%s655_s2] ss:$0 sm:$0xff] }
   0xa   :  { %460 = vmatprep.subr.bf16.mxu1 %v487_v9  ;;  %v503_v25 = vld [vmem:[%s653_s1 + $0xf0] sm:$0xff]   ;;  %v507_v29 = vld [vmem:[%s653_s1 + $0xf8] sm:$0xff]  }
   0xb   :  { %v504_v26 = vld [vmem:[%s653_s1 + $0x30] sm:$0xff]   ;;  %v508_v30 = vld [vmem:[%s653_s1 + $0x38] sm:$0xff]  }
   0xc   :  { %439 = vmatpush3.bf16.msra.mxu0 %v488_v10  ;;  %v505_v27 = vld [vmem:[%s653_s1 + $0xb0] sm:$0xff]   ;;  %v509_v31 = vld [vmem:[%s653_s1 + $0xb8] sm:$0xff]  }
   0xd   :  { %461 = vmatpush3.bf16.msra.mxu1 %v489_v11  ;;  %440 = vmatprep.subr.bf16.mxu0 %v490_v12  ;;  %v510_v32 = vld [vmem:[%s654_s0] ss:$16 sps:$4 sm:$0xff]   ;;  %v512_v33 = vld [vmem:[%s654_s0 + $0x4] ss:$16 sps:$4 sm:$0xff]   ;;  %v513_v34 = vld [vmem:[%s654_s0 + $0x8] ss:$16 sps:$4 sm:$0xff]  }
   0xe   :  { %462 = vmatprep.subr.bf16.mxu1 %v491_v13  ;;  %v515_v35 = vld [vmem:[%s654_s0 + $0xc] ss:$16 sps:$4 sm:$0xff]   ;;  %334 = vmatprep.mubr.bf16.mxu0 %v512_v33 }
   0xf   :  { %375 = vmatprep.mubr.bf16.mxu1 %v515_v35 }
  0x10   :  { %441 = vmatpush3.bf16.msra.mxu0 %v492_v14 }
  0x11   :  { %463 = vmatpush3.bf16.msra.mxu1 %v493_v15  ;;  %442 = vmatprep.subr.bf16.mxu0 %v494_v16 }
  0x12   :  { %464 = vmatprep.subr.bf16.mxu1 %v495_v17 }
  0x14   :  { %443 = vmatpush3.bf16.msra.mxu0 %v496_v18 }
  0x15   :  { %465 = vmatpush3.bf16.msra.mxu1 %v497_v19  ;;  %444 = vmatprep.subr.bf16.mxu0 %v498_v20 }
  0x16   :  { %466 = vmatprep.subr.bf16.mxu1 %v499_v21 }
  0x18   :  { %445 = vmatpush3.bf16.msra.mxu0 %v500_v22 }
  0x19   :  { %467 = vmatpush3.bf16.msra.mxu1 %v501_v23  ;;  %446 = vmatprep.subr.bf16.mxu0 %v502_v24 }
  0x1a   :  { %468 = vmatprep.subr.bf16.mxu1 %v503_v25 }
  0x1c   :  { %447 = vmatpush3.bf16.msra.mxu0 %v504_v26 }
  0x1d   :  { %469 = vmatpush3.bf16.msra.mxu1 %v505_v27  ;;  %448 = vmatprep.subr.bf16.mxu0 %v506_v28 }
  0x1e   :  { %470 = vmatprep.subr.bf16.mxu1 %v507_v29 }
  0x20   :  { %449 = vmatpush3.bf16.msra.mxu0 %v508_v30 }
  0x21   :  { %471 = vmatpush3.bf16.msra.mxu1 %v509_v31 }
  0x23   :  { %335 = vmatmul.mubr.bf16.vlgmr.msra.gmra.mrb[0].mxu0 %v510_v32 }
  0x24   :  { %376 = vmatmul.mubr.bf16.vlgmr.msra.gmra.mrb[0].mxu1 %v513_v34 }
  0xf6   :  { %v450_v36 = vpop.f32.mrb[0].mxu0 }
  0xf7   :  { %v472_v37 = vpop.f32.mrb[0].mxu1  ;;  %v451_v39 = vpop.f32.mrb[1].mxu0 }
  0xf8   :  { %v452_v40 = vadd.f32 %v451_v39, %v450_v36  ;;  %v473_v41 = vpop.f32.mrb[1].mxu1  ;;  %v453_v42 = vpop.f32.mrb[2].mxu0 }
  0xf9   :  { %v474_v43 = vadd.f32 %v473_v41, %v472_v37  ;;  %v475_v44 = vpop.f32.mrb[2].mxu1  ;;  %v454_v45 = vpop.f32.mrb[3].mxu0 }
  0xfa   :  { %v337_v46 = vadd.f32 %v452_v40, %v397_v38  ;;  %v455_v47 = vadd.f32 %v454_v45, %v453_v42  ;;  %v476_v48 = vpop.f32.mrb[3].mxu1 }
  0xfb   :  { %v477_v49 = vadd.f32 %v476_v48, %v475_v44 }
  0xfc   :  { %v378_v50 = vadd.f32 %v474_v43, %v337_v46  ;;  %v340_v51 = vadd.f32 %v455_v47, %v397_v38 }
  0xfe   :  { %vm384_vm0 = vcmp.gt.f32.partialorder %v378_v50, 0.0  ;;  %v386_v52 = vmul.f32 0.01, %v378_v50  ;;  %v381_v53 = vadd.f32 %v477_v49, %v340_v51 }
 0x100   :  { %v388_v54 = vsel %vm384_vm0, %v378_v50, %v386_v52  ;;  %vm385_vm2 = vcmp.gt.f32.partialorder %v381_v53, 0.0  ;;  %v387_v55 = vmul.f32 0.01, %v381_v53 }
 0x101   :  { %391 = vst.msk [vmem:[%s656_s3] sm:$0xff] %vm390_vm1, %v388_v54 }
 0x102   :  { %v389_v56 = vsel %vm385_vm2, %v381_v53, %v387_v55 }
 0x103   :  { %392 = vst.msk [vmem:[%s656_s3 + $0x8] sm:$0xff] %vm390_vm1, %v389_v56 }

// kernel: cae5_forward.16
= control target key start
LH: loop header
LB: loop body
LE: loop exit
PB: predicated region body
PF: predicated region fallthrough
CT: control target
= control target key end

     0   :  { %14 = vsyncpa [#allocation3], 0  ;;  %v479_v3 = vmov 0.0|0.0   ;;  %vm480_vm0 = vmmov 0   ;;  %v481_v6 = vmov 0.0   ;;  %s621_s0 = inlined_call_operand.vmem [shape: f32[2,64], index: 0, kind: input, shape index: {}]   ;;  %s622_s1 = inlined_call_operand.vmem [shape: f32[64,10], index: 1, kind: input, shape index: {}]   ;;  %s623_s2 = inlined_call_operand.vmem [shape: f32[1,10], index: 2, kind: input, shape index: {}]   ;;  %s624_s3 = inlined_call_operand.vmem [shape: f32[10,10], index: 3, kind: input, shape index: {}]   ;;  %s625_s4 = inlined_call_operand.vmem [shape: f32[10,64], index: 4, kind: input, shape index: {}]   ;;  %s626_s5 = inlined_call_operand.vmem [shape: f32[1,64], index: 5, kind: input, shape index: {}]   ;;  %s627_s6 = inlined_call_operand.hbm [shape: f32[2,10], index: 6, kind: output, shape index: {0}]   ;;  %s628_s7 = inlined_call_operand.hbm [shape: f32[2,10], index: 7, kind: output, shape index: {1}]   ;;  %s629_s8 = inlined_call_operand.vmem [shape: f32[2,64], index: 8, kind: output, shape index: {2}]  }
   0x1   :  { %v29_v0 = vld [vmem:[%s622_s1] sm:$0xff]  ;;  %v30_v1 = vld [vmem:[%s622_s1 + $0x8] sm:$0xff]  ;;  %v31_v2 = vld [vmem:[%s622_s1 + $0x10] sm:$0xff]  ;;  %401 = vmatprep.subr.bf16.mxu0 %v479_v3  ;;  %384 = vmatprep.mubr.msk.f32.mxu0 %vm480_vm0, %v481_v6 }
   0x2   :  { %v402_v4 = vpack.c.bf16 %v30_v1, %v29_v0  ;;  %v32_v5 = vld [vmem:[%s622_s1 + $0x18] sm:$0xff]  ;;  %413 = vmatprep.subr.bf16.mxu1 %v479_v3  ;;  %391 = vmatprep.mubr.msk.f32.mxu1 %vm480_vm0, %v481_v6 }
   0x3   :  { %v405_v7 = vpack.c.bf16 %v32_v5, %v31_v2 }
   0x4   :  { %403 = vmatpush3.bf16.msra.mxu0 %v402_v4 }
   0x5   :  { %15 = vsyncpa [#allocation5], 0  ;;  %404 = vmatprep.subr.bf16.mxu0 %v479_v3  ;;  %v33_v8 = vld [vmem:[%s622_s1 + $0x20] sm:$0xff]  ;;  %v34_v9 = vld [vmem:[%s622_s1 + $0x28] sm:$0xff]  ;;  %vm44_vm1 = vcmask 523264   ;;  %vm141_vm2 = vcmask 1041408  }
   0x6   :  { %v408_v10 = vpack.c.bf16 %v34_v9, %v33_v8  ;;  %v35_v11 = vld [vmem:[%s622_s1 + $0x30] sm:$0xff]  ;;  %v36_v12 = vld [vmem:[%s622_s1 + $0x38] sm:$0xff]  ;;  %v28_v14 = vld [vmem:[%s621_s0] sm:$0x3]  ;;  %vm482_vm3 = vmmov 1   ;;  %vm128_vm5 = vcmask 80896  }
   0x7   :  { %v411_v13 = vpack.c.bf16 %v36_v12, %v35_v11  ;;  %v120_v15 = vld [vmem:[%s624_s3] sm:$0xff]  ;;  %v121_v16 = vld [vmem:[%s624_s3 + $0x8] sm:$0x3]  ;;  %vm565_vm4 = vmpackc.low %vm141_vm2, %vm482_vm3  ;;  %vm118_vm6 = vcmask 74752   ;;  %vm312_vm8 = vcmask 517120  }
   0x8   :  { %406 = vmatpush3.bf16.msra.mxu0 %v405_v7  ;;  %v414_v17 = vpack.c.bf16 %v121_v16, %v120_v15  ;;  %v126_v19 = vmul.f32 %v120_v15, %v120_v15  ;;  %v127_v20 = vmul.f32 %v121_v16, %v121_v16  ;;  %v227_v24 = vld [vmem:[%s625_s4] sm:$0xff]  ;;  %v228_v25 = vld [vmem:[%s625_s4 + $0x8] sm:$0x3] }
   0x9   :  { %407 = vmatprep.subr.bf16.mxu0 %v479_v3  ;;  %v346_v26 = vld [vmem:[%s623_s2] ss:$0 sm:$0xff]  ;;  %v418_v28 = vpack.c.bf16 %v228_v25, %v227_v24 }
   0xa   :  { %416 = vmatpush3.bf16.msk.msra.mxu1 %vm565_vm4, %v414_v17  ;;  %v129_v21 = vsel %vm128_vm5, %v126_v19, 0.0  ;;  %v130_v22 = vsel %vm118_vm6, %v127_v20, 0.0  ;;  %v350_v44 = vld [vmem:[%s626_s5] ss:$0 sm:$0xff]  ;;  %s483_s5 = smov [#allocation2]  }
   0xb   :  { %417 = vmatprep.subr.bf16.mxu1 %v479_v3  ;;  %v131_v23 = vadd.f32 %v130_v22, %v129_v21  ;;  %s320_s10 = sshll.u32 %s483_s5, 4  ;;  %s321_s10 = int_to_ptr.vmem [resolvable:$true] %s320_s10 }
   0xc   :  { %409 = vmatpush3.bf16.msra.mxu0 %v408_v10  ;;  %s431_s11 = scalar_lea.vmem %s321_s10, 32  ;;  %p436_p1 = scmp.lt.s32.totalorder %s321_s10, %s321_s10 }
   0xd   :  { %410 = vmatprep.subr.bf16.mxu0 %v479_v3  ;;  %v132_v33 = vrot.slane %v131_v23, 4  ;;  %p432_p0 = scmp.ne.s32.totalorder %s321_s10, %s431_s11  ;;  %p437_p2 = scmp.lt.s32.totalorder %s431_s11, %s431_s11 }
   0xf   :  { %v133_v34 = vadd.f32 %v132_v33, %v131_v23  ;;  %p438_p3 = por %p437_p2, %p436_p1 }
  0x10   :  { %412 = vmatpush3.bf16.msra.mxu0 %v411_v13 }
  0x11   :  { %v134_v35 = vrot.slane %v133_v34, 2  ;;  %p439_p4 = pnand %p438_p3, %p432_p0 }
  0x13   :  { %385 = vmatmul.mubr.msk.f32.vlgmr.msra.gmra.mrb[0].mxu0 %vm44_vm1, %v28_v14  ;;  %v135_v36 = vadd.f32 %v134_v35, %v133_v34 }
  0x15   :  { %v136_v37 = vrot.slane %v135_v36, 1 }
  0x17   :  { %v137_v38 = vadd.f32 %v136_v37, %v135_v36 }
  0xe6   :  { %v114_v27 = vpop.f32.mrb[0].mxu0 }
  0xe7   :  { %v115_v29 = vadd.f32 %v346_v26, %v114_v27  ;;  %v386_v30 = vpop.f32.mrb[1].mxu0 }
  0xe9   :  { %392 = vmatmul.mubr.msk.f32.vlgmr.msra.gmra.mrb[0].mxu1 %vm128_vm5, %v115_v29  ;;  %v122_v31 = vmul.f32 %v115_v29, %v115_v29  ;;  %119 = vst.msk [vmem:[#allocation2] sm:$0x3] %vm118_vm6, %v115_v29 }
  0xea   :  { %420 = vmatpush3.bf16.msk.msra.mxu1 %vm565_vm4, %v418_v28  ;;  %398 = vmatprep.mubr.msk.f32.mxu1 %vm480_vm0, %v481_v6 }
  0xeb   :  { %v123_v32 = vsel %vm118_vm6, %v122_v31, 0.0 }
  0xec   :  { %124 = vadd.xlane.f32.xlu0 %v123_v32 }
  0xed   :  { %399 = vmatmul.mubr.msk.f32.vlgmr.msra.gmra.mrb[2].mxu1 %vm128_vm5, %v115_v29 }
 0x179   :  { %v125_v39 = vpop.xlane.xlu0 %124 }
 0x17a   :  { %v215_v41 = vadd.f32 %v137_v38, %v125_v39 }
 0x1bc   :  { %v211_v40 = vpop.f32.mrb[0].mxu1 }
 0x1bd   :  { %v216_v42 = vmul.f32 2.0, %v211_v40  ;;  %v393_v43 = vpop.f32.mrb[1].mxu1 }
 0x1bf   :  { %v217_v45 = vsub.f32 %v215_v41, %v216_v42 }
 0x1c0   :  { %v305_v46 = vpop.f32.mrb[2].mxu1 }
 0x1c1   :  { %v218_v47 = vmax.f32 %v217_v45, 0.0  ;;  %v306_v48 = vadd.f32 %v350_v44, %v305_v46  ;;  %v400_v49 = vpop.f32.mrb[3].mxu1 }
 0x1c3   :  { %v219_v50 = vadd.f32 1.0, %v218_v47  ;;  %vm309_vm7 = vcmp.gt.f32.partialorder %v306_v48, 0.0  ;;  %v310_v51 = vmul.f32 0.01, %v306_v48 }
 0x1c5   :  { %427 = vrcp.f32 %v219_v50  ;;  %v311_v52 = vsel %vm309_vm7, %v306_v48, %v310_v51 }
 0x1c6   :  { %313 = vst.msk [vmem:[%s629_s8] sm:$0x3] %vm312_vm8, %v311_v52 }
 0x1cf   :  { %v428_v53 = vpop.eup %427 }
 0x1d0   :  { %v221_v54 = vsel %vm118_vm6, %v428_v53, 0.0 }
 0x1d1   :  { %222 = vadd.xlane.f32.xlu0 %v221_v54 }
 0x1d2   :  { %442 = shalt.err (!%p439_p4)
}
 0x1d3   :  { %s443_s14 = scalar_lea.hbm %s627_s6, 32 }
 0x1d4   :  { %p444_p5 = scmp.ne.s32.totalorder %s627_s6, %s443_s14  ;;  %p447_p6 = scmp.lt.u32.totalorder %s443_s14, %s627_s6 }
 0x1d6   :  { %p449_p7 = pnand %p447_p6, %p444_p5 }
 0x1d8   :  { %452 = shalt.err (!%p449_p7)
}
 0x1d9   :  { %323 = dma.vmem_to_hbm [thread:$0]  %s321_s10, 32, %s627_s6, [#allocation3]  }
 0x1da   :  { %s484_s20 = smov [#allocation4]  }
 0x1db   :  { %s330_s21 = sshll.u32 %s484_s20, 4  ;;  %s331_s21 = int_to_ptr.vmem [resolvable:$true] %s330_s21 }
 0x1dc   :  { %s453_s22 = scalar_lea.vmem %s331_s21, 32  ;;  %p458_p9 = scmp.lt.s32.totalorder %s331_s21, %s331_s21 }
 0x1dd   :  { %p454_p8 = scmp.ne.s32.totalorder %s331_s21, %s453_s22  ;;  %p459_p10 = scmp.lt.s32.totalorder %s453_s22, %s453_s22 }
 0x1df   :  { %p460_p11 = por %p459_p10, %p458_p9 }
 0x1e1   :  { %p461_p12 = pnand %p460_p11, %p454_p8 }
 0x25e   :  { %v223_v55 = vpop.xlane.xlu0 %222 }
 0x25f   :  { %429 = vrcp.f32 %v223_v55 }
 0x269   :  { %v430_v56 = vpop.eup %429 }
 0x26a   :  { %v225_v57 = vmul.f32 %v430_v56, %v428_v53 }
 0x26c   :  { %226 = vst.msk [vmem:[#allocation4] sm:$0x3] %vm118_vm6, %v225_v57 }
 0x26d   :  { %464 = shalt.err (!%p461_p12)
}
 0x26e   :  { %s465_s6 = scalar_lea.hbm %s628_s7, 32 }
 0x26f   :  { %p466_p13 = scmp.ne.s32.totalorder %s628_s7, %s465_s6  ;;  %p469_p0 = scmp.lt.u32.totalorder %s465_s6, %s628_s7 }
 0x271   :  { %p471_p1 = pnand %p469_p0, %p466_p13 }
 0x273   :  { %474 = shalt.err (!%p471_p1)
}
 0x274   :  { %333 = dma.vmem_to_hbm [thread:$0]  %s331_s21, 32, %s628_s7, [#allocation5]  }
 0x275   :  { %475 = dma.done.wait [#allocation3], 32  }
 0x276   :  { %476 = vsyncadd [#allocation3], 4294967264 }
 0x277   :  { %477 = dma.done.wait [#allocation5], 32  }
 0x278   :  { %478 = vsyncadd [#allocation5], 4294967264 }
 0x279   :  { %344 = vsyncpa [#allocation3], 1 }
 0x27a   :  { %345 = vsyncpa [#allocation5], 1 }

// kernel: cae5_forward.17
= control target key start
LH: loop header
LB: loop body
LE: loop exit
PB: predicated region body
PF: predicated region fallthrough
CT: control target
= control target key end

     0   :  { %s358_s1 = inlined_call_operand.vmem [shape: bf16[256,128], index: 1, kind: input, shape index: {}]   ;;  %s359_s0 = inlined_call_operand.vmem [shape: bf16[16,256], index: 0, kind: input, shape index: {}]   ;;  %s360_s2 = inlined_call_operand.vmem [shape: f32[1,128], index: 2, kind: input, shape index: {}]   ;;  %s361_s3 = inlined_call_operand.vmem [shape: f32[16,128], index: 3, kind: output, shape index: {}]  }
   0x1   :  { %v256_v0 = vld [vmem:[%s358_s1 + $0x40] sm:$0xff]   ;;  %v258_v2 = vld [vmem:[%s358_s1 + $0x48] sm:$0xff]   ;;  %v260_v4 = vld [vmem:[%s358_s1 + $0x50] sm:$0xff]  }
   0x2   :  { %v257_v1 = vld [vmem:[%s358_s1] sm:$0xff]   ;;  %234 = vmatprep.subr.bf16.mxu0 %v256_v0  ;;  %v259_v3 = vld [vmem:[%s358_s1 + $0x8] sm:$0xff]   ;;  %v261_v5 = vld [vmem:[%s358_s1 + $0x10] sm:$0xff]  }
   0x3   :  { %235 = vmatpush3.bf16.msra.mxu0 %v257_v1  ;;  %v262_v6 = vld [vmem:[%s358_s1 + $0x58] sm:$0xff]   ;;  %v264_v8 = vld [vmem:[%s358_s1 + $0x60] sm:$0xff]   ;;  %v266_v10 = vld [vmem:[%s358_s1 + $0x68] sm:$0xff]  }
   0x4   :  { %236 = vmatprep.subr.bf16.mxu0 %v258_v2  ;;  %v263_v7 = vld [vmem:[%s358_s1 + $0x18] sm:$0xff]   ;;  %v265_v9 = vld [vmem:[%s358_s1 + $0x20] sm:$0xff]   ;;  %v267_v12 = vld [vmem:[%s358_s1 + $0x28] sm:$0xff]  }
   0x5   :  { %v274_v11 = vld [vmem:[%s359_s0 + $0x4] ss:$8 sps:$4 sm:$0xff]   ;;  %v268_v13 = vld [vmem:[%s358_s1 + $0x70] sm:$0xff]   ;;  %v270_v15 = vld [vmem:[%s358_s1 + $0x78] sm:$0xff]  }
   0x6   :  { %194 = vmatprep.mubr.bf16.mxu0 %v274_v11  ;;  %v269_v14 = vld [vmem:[%s358_s1 + $0x30] sm:$0xff]   ;;  %v271_v16 = vld [vmem:[%s358_s1 + $0x38] sm:$0xff]   ;;  %v272_v17 = vld [vmem:[%s359_s0] ss:$8 sps:$4 sm:$0xff]  }
   0x7   :  { %237 = vmatpush3.bf16.msra.mxu0 %v259_v3  ;;  %v215_v19 = vld [vmem:[%s360_s2] ss:$0 sm:$0xff] }
   0x8   :  { %238 = vmatprep.subr.bf16.mxu0 %v260_v4 }
   0xb   :  { %239 = vmatpush3.bf16.msra.mxu0 %v261_v5 }
   0xc   :  { %240 = vmatprep.subr.bf16.mxu0 %v262_v6 }
   0xf   :  { %241 = vmatpush3.bf16.msra.mxu0 %v263_v7 }
  0x10   :  { %242 = vmatprep.subr.bf16.mxu0 %v264_v8 }
  0x13   :  { %243 = vmatpush3.bf16.msra.mxu0 %v265_v9 }
  0x14   :  { %244 = vmatprep.subr.bf16.mxu0 %v266_v10 }
  0x17   :  { %245 = vmatpush3.bf16.msra.mxu0 %v267_v12 }
  0x18   :  { %246 = vmatprep.subr.bf16.mxu0 %v268_v13 }
  0x1b   :  { %247 = vmatpush3.bf16.msra.mxu0 %v269_v14 }
  0x1c   :  { %248 = vmatprep.subr.bf16.mxu0 %v270_v15 }
  0x1f   :  { %249 = vmatpush3.bf16.msra.mxu0 %v271_v16 }
  0x22   :  { %195 = vmatmul.mubr.bf16.vlgmr.msra.gmra.mrb[0].mxu0 %v272_v17 }
  0xf5   :  { %v250_v18 = vpop.f32.mrb[0].mxu0 }
  0xf6   :  { %v251_v20 = vpop.f32.mrb[1].mxu0 }
  0xf7   :  { %v252_v21 = vadd.f32 %v251_v20, %v250_v18  ;;  %v253_v22 = vpop.f32.mrb[2].mxu0 }
  0xf8   :  { %v254_v23 = vpop.f32.mrb[3].mxu0 }
  0xf9   :  { %v197_v24 = vadd.f32 %v252_v21, %v215_v19  ;;  %v255_v25 = vadd.f32 %v254_v23, %v253_v22 }
  0xfb   :  { %vm203_vm0 = vcmp.gt.f32.partialorder %v197_v24, 0.0  ;;  %v205_v26 = vmul.f32 0.01, %v197_v24  ;;  %v200_v27 = vadd.f32 %v255_v25, %v215_v19 }
  0xfd   :  { %v207_v28 = vsel %vm203_vm0, %v197_v24, %v205_v26  ;;  %vm204_vm1 = vcmp.gt.f32.partialorder %v200_v27, 0.0  ;;  %v206_v29 = vmul.f32 0.01, %v200_v27 }
  0xfe   :  { %209 = vst [vmem:[%s361_s3] sm:$0xff] %v207_v28 }
  0xff   :  { %v208_v30 = vsel %vm204_vm1, %v200_v27, %v206_v29 }
 0x100   :  { %210 = vst [vmem:[%s361_s3 + $0x8] sm:$0xff] %v208_v30 }

// kernel: cae5_forward.18
= control target key start
LH: loop header
LB: loop body
LE: loop exit
PB: predicated region body
PF: predicated region fallthrough
CT: control target
= control target key end

     0   :  { %vm242_vm0 = vcmask 261120   ;;  %s705_s1 = inlined_call_operand.vmem [shape: bf16[288,128], index: 1, kind: input, shape index: {}]   ;;  %s706_s0 = inlined_call_operand.vmem [shape: bf16[64,288], index: 0, kind: input, shape index: {}]   ;;  %s707_s2 = inlined_call_operand.vmem [shape: f32[1,128], index: 2, kind: input, shape index: {}]   ;;  %s708_s3 = inlined_call_operand.vmem [shape: f32[64,128], index: 3, kind: output, shape index: {}]  }
   0x1   :  { %v530_v0 = vld [vmem:[%s705_s1 + $0x40] sm:$0xff]   ;;  %v532_v2 = vld [vmem:[%s705_s1 + $0x48] sm:$0xff]   ;;  %v534_v4 = vld [vmem:[%s705_s1 + $0x50] sm:$0xff]  }
   0x2   :  { %v531_v1 = vld [vmem:[%s705_s1] sm:$0xff]   ;;  %456 = vmatprep.subr.bf16.mxu0 %v530_v0  ;;  %514 = vmatprep.subr.bf16.mxu1 %v530_v0  ;;  %v533_v3 = vld [vmem:[%s705_s1 + $0x8] sm:$0xff]   ;;  %v535_v5 = vld [vmem:[%s705_s1 + $0x10] sm:$0xff]  }
   0x3   :  { %457 = vmatpush3.bf16.msra.mxu0 %v531_v1  ;;  %522 = vmatpush3.bf16.msra.mxu1 %v531_v1  ;;  %v536_v6 = vld [vmem:[%s705_s1 + $0x58] sm:$0xff]   ;;  %v538_v8 = vld [vmem:[%s705_s1 + $0x60] sm:$0xff]   ;;  %v540_v10 = vld [vmem:[%s705_s1 + $0x68] sm:$0xff]  }
   0x4   :  { %458 = vmatprep.subr.bf16.mxu0 %v532_v2  ;;  %515 = vmatprep.subr.bf16.mxu1 %v532_v2  ;;  %v537_v7 = vld [vmem:[%s705_s1 + $0x18] sm:$0xff]   ;;  %v539_v9 = vld [vmem:[%s705_s1 + $0x20] sm:$0xff]   ;;  %v541_v13 = vld [vmem:[%s705_s1 + $0x28] sm:$0xff]  }
   0x5   :  { %v548_v11 = vld [vmem:[%s706_s0 + $0x4] ss:$12 sps:$4 sm:$0xff]   ;;  %v551_v12 = vld [vmem:[%s706_s0 + $0x4c] ss:$12 sps:$4 sm:$0xff]   ;;  %v549_v20 = vld [vmem:[%s706_s0 + $0x48] ss:$12 sps:$4 sm:$0xff]  }
   0x6   :  { %v542_v14 = vld [vmem:[%s705_s1 + $0x70] sm:$0xff]   ;;  %287 = vmatprep.mubr.bf16.mxu0 %v548_v11  ;;  %311 = vmatprep.mubr.bf16.mxu1 %v551_v12  ;;  %v544_v16 = vld [vmem:[%s705_s1 + $0x78] sm:$0xff]   ;;  %v552_v18 = vld [vmem:[%s705_s1 + $0x80] sm:$0xff]  }
   0x7   :  { %459 = vmatpush3.bf16.msra.mxu0 %v533_v3  ;;  %523 = vmatpush3.bf16.msra.mxu1 %v533_v3  ;;  %v543_v15 = vld [vmem:[%s705_s1 + $0x30] sm:$0xff]   ;;  %v545_v17 = vld [vmem:[%s705_s1 + $0x38] sm:$0xff]   ;;  %v546_v19 = vld [vmem:[%s706_s0] ss:$12 sps:$4 sm:$0xff]  }
   0x8   :  { %460 = vmatprep.subr.bf16.mxu0 %v534_v4  ;;  %516 = vmatprep.subr.bf16.mxu1 %v534_v4  ;;  %v554_v21 = vld [vmem:[%s706_s0 + $0x1c] ss:$12 sps:$4 sm:$0xff]   ;;  %v557_v24 = vld [vmem:[%s706_s0 + $0x18] ss:$12 sps:$4 sm:$0xff]   ;;  %v558_v25 = vld [vmem:[%s706_s0 + $0x20] ss:$12 sps:$4 sm:$0xff]  }
   0x9   :  { %v553_v22 = vld [vmem:[%s705_s1 + $0x88] sm:$0xff]   ;;  %v559_v26 = vld [vmem:[%s706_s0 + $0x34] ss:$12 sps:$4 sm:$0xff]   ;;  %v561_v27 = vld [vmem:[%s706_s0 + $0x38] ss:$12 sps:$4 sm:$0xff]  }
   0xa   :  { %v556_v23 = vld [vmem:[%s706_s0 + $0x8] ss:$12 sps:$4 sm:$0xff]   ;;  %v562_v28 = vld [vmem:[%s706_s0 + $0x30] ss:$12 sps:$4 sm:$0xff]   ;;  %v421_v42 = vld [vmem:[%s707_s2] ss:$0 sm:$0xff] }
   0xb   :  { %461 = vmatpush3.bf16.msra.mxu0 %v535_v5  ;;  %524 = vmatpush3.bf16.msra.mxu1 %v535_v5  ;;  %v563_v29 = vld [vmem:[%s706_s0 + $0x50] ss:$12 sps:$4 sm:$0xff]  }
   0xc   :  { %462 = vmatprep.subr.bf16.mxu0 %v536_v6  ;;  %517 = vmatprep.subr.bf16.mxu1 %v536_v6 }
   0xf   :  { %463 = vmatpush3.bf16.msra.mxu0 %v537_v7  ;;  %525 = vmatpush3.bf16.msra.mxu1 %v537_v7 }
  0x10   :  { %464 = vmatprep.subr.bf16.mxu0 %v538_v8  ;;  %518 = vmatprep.subr.bf16.mxu1 %v538_v8 }
  0x13   :  { %465 = vmatpush3.bf16.msra.mxu0 %v539_v9  ;;  %526 = vmatpush3.bf16.msra.mxu1 %v539_v9 }
  0x14   :  { %466 = vmatprep.subr.bf16.mxu0 %v540_v10  ;;  %519 = vmatprep.subr.bf16.mxu1 %v540_v10 }
  0x17   :  { %467 = vmatpush3.bf16.msra.mxu0 %v541_v13  ;;  %527 = vmatpush3.bf16.msra.mxu1 %v541_v13 }
  0x18   :  { %468 = vmatprep.subr.bf16.mxu0 %v542_v14  ;;  %520 = vmatprep.subr.bf16.mxu1 %v542_v14 }
  0x1b   :  { %469 = vmatpush3.bf16.msra.mxu0 %v543_v15  ;;  %528 = vmatpush3.bf16.msra.mxu1 %v543_v15 }
  0x1c   :  { %470 = vmatprep.subr.bf16.mxu0 %v544_v16  ;;  %521 = vmatprep.subr.bf16.mxu1 %v544_v16 }
  0x1f   :  { %471 = vmatpush3.bf16.msra.mxu0 %v545_v17  ;;  %529 = vmatpush3.bf16.msra.mxu1 %v545_v17 }
  0x20   :  { %502 = vmatprep.subr.bf16.mxu1 %v552_v18 }
  0x22   :  { %288 = vmatmul.mubr.bf16.vlgmr.msra.gmra.mrb[0].mxu0 %v546_v19  ;;  %312 = vmatmul.mubr.bf16.vlgmr.msra.gmra.mrb[0].mxu1 %v549_v20 }
  0x23   :  { %503 = vmatpush3.bf16.msra.mxu1 %v552_v18  ;;  %295 = vmatprep.mubr.bf16.mxu0 %v554_v21 }
  0x24   :  { %504 = vmatprep.subr.bf16.mxu1 %v553_v22  ;;  %506 = vmatprep.mubr.msk.bf16.mxu1 %vm242_vm0, %v556_v23 }
  0x27   :  { %505 = vmatpush3.bf16.msra.mxu1 %v553_v22 }
  0x2a   :  { %296 = vmatmul.mubr.bf16.gmra.mrb[4].mxu0 %v557_v24  ;;  %507 = vmatmul.mubr.msk.bf16.vlgmr.msra.gmra.mrb[4].mxu1 %vm242_vm0, %v558_v25 }
  0x2b   :  { %303 = vmatprep.mubr.bf16.mxu0 %v559_v26  ;;  %510 = vmatprep.mubr.msk.bf16.mxu1 %vm242_vm0, %v561_v27 }
  0x32   :  { %304 = vmatmul.mubr.bf16.gmra.mrb[8].mxu0 %v562_v28  ;;  %511 = vmatmul.mubr.msk.bf16.gmra.mrb[8].mxu1 %vm242_vm0, %v563_v29 }
  0xf5   :  { %v472_v30 = vpop.f32.mrb[0].mxu0  ;;  %v490_v31 = vpop.f32.mrb[0].mxu1 }
  0xf6   :  { %v473_v32 = vpop.f32.mrb[1].mxu0  ;;  %v491_v33 = vpop.f32.mrb[1].mxu1 }
  0xf7   :  { %v474_v34 = vadd.f32 %v473_v32, %v472_v30  ;;  %v475_v35 = vpop.f32.mrb[2].mxu0  ;;  %v492_v36 = vadd.f32 %v491_v33, %v490_v31  ;;  %v493_v37 = vpop.f32.mrb[2].mxu1 }
  0xf8   :  { %v476_v38 = vpop.f32.mrb[3].mxu0  ;;  %v494_v39 = vpop.f32.mrb[3].mxu1 }
  0xf9   :  { %v477_v40 = vadd.f32 %v476_v38, %v475_v35  ;;  %v495_v41 = vadd.f32 %v494_v39, %v493_v37  ;;  %v290_v45 = vadd.f32 %v474_v34, %v421_v42  ;;  %v314_v63 = vadd.f32 %v492_v36, %v421_v42 }
  0xfb   :  { %v293_v53 = vadd.f32 %v477_v40, %v421_v42  ;;  %v317_v8 = vadd.f32 %v495_v41, %v421_v42 }
  0xfd   :  { %v478_v43 = vpop.f32.mrb[4].mxu0  ;;  %v508_v44 = vpop.f32.mrb[4].mxu1 }
  0xfe   :  { %v479_v46 = vpop.f32.mrb[5].mxu0  ;;  %v354_v47 = vpop.f32.mrb[5].mxu1 }
  0xff   :  { %v480_v48 = vadd.f32 %v479_v46, %v478_v43  ;;  %v355_v49 = vadd.f32 %v354_v47, %v290_v45  ;;  %v481_v50 = vpop.f32.mrb[6].mxu0  ;;  %v509_v51 = vpop.f32.mrb[6].mxu1 }
 0x100   :  { %v482_v52 = vpop.f32.mrb[7].mxu0  ;;  %v357_v54 = vpop.f32.mrb[7].mxu1 }
 0x101   :  { %v298_v55 = vadd.f32 %v480_v48, %v421_v42  ;;  %vm385_vm1 = vcmp.gt.f32.partialorder %v355_v49, 0.0  ;;  %v393_v56 = vmul.f32 0.01, %v355_v49  ;;  %v483_v57 = vadd.f32 %v482_v52, %v481_v50 }
 0x102   :  { %v358_v58 = vadd.f32 %v357_v54, %v293_v53 }
 0x103   :  { %v363_v59 = vadd.f32 %v508_v44, %v298_v55  ;;  %v401_v60 = vsel %vm385_vm1, %v355_v49, %v393_v56  ;;  %v301_v61 = vadd.f32 %v483_v57, %v421_v42 }
 0x104   :  { %409 = vst [vmem:[%s708_s3] sm:$0xff] %v401_v60  ;;  %vm386_vm2 = vcmp.gt.f32.partialorder %v358_v58, 0.0  ;;  %v394_v62 = vmul.f32 0.01, %v358_v58 }
 0x105   :  { %vm387_vm3 = vcmp.gt.f32.partialorder %v363_v59, 0.0  ;;  %v395_v0 = vmul.f32 0.01, %v363_v59  ;;  %v366_v1 = vadd.f32 %v509_v51, %v301_v61  ;;  %v484_v2 = vpop.f32.mrb[8].mxu0  ;;  %v512_v3 = vpop.f32.mrb[8].mxu1 }
 0x106   :  { %v402_v4 = vsel %vm386_vm2, %v358_v58, %v394_v62  ;;  %v379_v5 = vadd.f32 %v512_v3, %v314_v63  ;;  %v485_v6 = vpop.f32.mrb[9].mxu0  ;;  %v370_v7 = vpop.f32.mrb[9].mxu1 }
 0x107   :  { %v403_v9 = vsel %vm387_vm3, %v363_v59, %v395_v0  ;;  %vm388_vm4 = vcmp.gt.f32.partialorder %v366_v1, 0.0  ;;  %v396_v10 = vmul.f32 0.01, %v366_v1  ;;  %410 = vst [vmem:[%s708_s3 + $0x8] sm:$0xff] %v402_v4  ;;  %v486_v11 = vadd.f32 %v485_v6, %v484_v2  ;;  %v487_v12 = vpop.f32.mrb[10].mxu0  ;;  %v513_v13 = vpop.f32.mrb[10].mxu1 }
 0x108   :  { %411 = vst [vmem:[%s708_s3 + $0x10] sm:$0xff] %v403_v9  ;;  %vm391_vm5 = vcmp.gt.f32.partialorder %v379_v5, 0.0  ;;  %v399_v14 = vmul.f32 0.01, %v379_v5  ;;  %v382_v15 = vadd.f32 %v513_v13, %v317_v8  ;;  %v488_v16 = vpop.f32.mrb[11].mxu0  ;;  %v373_v17 = vpop.f32.mrb[11].mxu1 }
 0x109   :  { %v404_v18 = vsel %vm388_vm4, %v366_v1, %v396_v10  ;;  %v306_v19 = vadd.f32 %v486_v11, %v421_v42  ;;  %v489_v20 = vadd.f32 %v488_v16, %v487_v12 }
 0x10a   :  { %412 = vst [vmem:[%s708_s3 + $0x18] sm:$0xff] %v404_v18  ;;  %v407_v21 = vsel %vm391_vm5, %v379_v5, %v399_v14  ;;  %vm392_vm6 = vcmp.gt.f32.partialorder %v382_v15, 0.0  ;;  %v400_v22 = vmul.f32 0.01, %v382_v15 }
 0x10b   :  { %415 = vst [vmem:[%s708_s3 + $0x30] sm:$0xff] %v407_v21  ;;  %v371_v23 = vadd.f32 %v370_v7, %v306_v19  ;;  %v309_v24 = vadd.f32 %v489_v20, %v421_v42 }
 0x10c   :  { %v408_v25 = vsel %vm392_vm6, %v382_v15, %v400_v22 }
 0x10d   :  { %vm389_vm7 = vcmp.gt.f32.partialorder %v371_v23, 0.0  ;;  %v397_v26 = vmul.f32 0.01, %v371_v23  ;;  %416 = vst [vmem:[%s708_s3 + $0x38] sm:$0xff] %v408_v25  ;;  %v374_v27 = vadd.f32 %v373_v17, %v309_v24 }
 0x10f   :  { %v405_v28 = vsel %vm389_vm7, %v371_v23, %v397_v26  ;;  %vm390_vm8 = vcmp.gt.f32.partialorder %v374_v27, 0.0  ;;  %v398_v29 = vmul.f32 0.01, %v374_v27 }
 0x110   :  { %413 = vst [vmem:[%s708_s3 + $0x20] sm:$0xff] %v405_v28 }
 0x111   :  { %v406_v30 = vsel %vm390_vm8, %v374_v27, %v398_v29 }
 0x112   :  { %414 = vst [vmem:[%s708_s3 + $0x28] sm:$0xff] %v406_v30 }

// kernel: tile.92
= control target key start
LH: loop header
LB: loop body
LE: loop exit
PB: predicated region body
PF: predicated region fallthrough
CT: control target
= control target key end

     0   :  { %s22_s0 = inlined_call_operand.vmem [shape: f32[16], index: 0, kind: input, shape index: {}]   ;;  %s23_s1 = inlined_call_operand.vmem [shape: f32[4,16], index: 1, kind: output, shape index: {}]  }
   0x1   :  { %v4_v0 = vld [vmem:[%s22_s0] ss:$0 sm:$0xff] }
   0x2   :  { %5 = vst [vmem:[%s23_s1] sm:$0xf] %v4_v0 }

// kernel: tile.95
= control target key start
LH: loop header
LB: loop body
LE: loop exit
PB: predicated region body
PF: predicated region fallthrough
CT: control target
= control target key end

     0   :  { %vm7_vm0 = vcmask 130048   ;;  %s37_s8 = smov 16   ;;  %s38_s9 = smov 32   ;;  %vm13_vm1 = vcmask 523648   ;;  %vm19_vm2 = vcmask 392448   ;;  %vm25_vm3 = vcmask 261248   ;;  %s55_s0 = inlined_call_operand.vmem [shape: f32[4,16], index: 0, kind: input, shape index: {}]   ;;  %s56_s1 = inlined_call_operand.vmem [shape: f32[64], index: 1, kind: output, shape index: {}]  }
   0x1   :  { %v4_v0 = vld [vmem:[%s55_s0] sm:$0xf]  ;;  %s36_s0 = smov 48  }
   0x2   :  { %5 = vst [vmem:[#allocation1] sm:$0xf] %v4_v0 }
   0x9   :  { %v10_v1 = vld [vmem:[#allocation1 + $0x3] sm:$0x1]   ;;  %v22_v2 = vld [vmem:[#allocation1 + $0x1] sm:$0x1]   ;;  %v6_v3 = vld [vmem:[#allocation1] sm:$0x1]  }
   0xa   :  { %11 = vrot.lane.b32.xlu0 %v10_v1, %s36_s0  ;;  %23 = vrot.lane.b32.xlu1 %v22_v2, %s37_s8  ;;  %v16_v4 = vld [vmem:[#allocation1 + $0x2] sm:$0x1]   ;;  %8 = vst.msk [vmem:[#allocation0] sm:$0x1] %vm7_vm0, %v6_v3  }
   0xe   :  { %17 = vrot.lane.b32.xlu0 %v16_v4, %s38_s9 }
  0x7c   :  { %v12_v5 = vpop.permute.xlu0 %11   ;;  %v24_v6 = vpop.permute.xlu1 %23  }
  0x7d   :  { %14 = vst.msk [vmem:[#allocation0] sm:$0x1] %vm13_vm1, %v12_v5  }
  0x80   :  { %v18_v7 = vpop.permute.xlu0 %17  }
  0x81   :  { %20 = vst.msk [vmem:[#allocation0] sm:$0x1] %vm19_vm2, %v18_v7  }
  0x82   :  { %26 = vst.msk [vmem:[#allocation0] sm:$0x1] %vm25_vm3, %v24_v6  }
  0x89   :  { %v30_v8 = vld [vmem:[#allocation0] sm:$0x1] }
  0x8a   :  { %32 = vst [vmem:[%s56_s1] sm:$0x1] %v30_v8 }

// kernel: tile.96
= control target key start
LH: loop header
LB: loop body
LE: loop exit
PB: predicated region body
PF: predicated region fallthrough
CT: control target
= control target key end

     0   :  { %s22_s0 = inlined_call_operand.vmem [shape: f32[64], index: 0, kind: input, shape index: {}]   ;;  %s23_s1 = inlined_call_operand.vmem [shape: f32[2,64], index: 1, kind: output, shape index: {}]  }
   0x1   :  { %v4_v0 = vld [vmem:[%s22_s0] ss:$0 sm:$0xff] }
   0x2   :  { %5 = vst [vmem:[%s23_s1] sm:$0x3] %v4_v0 }

// kernel: tile.97
= control target key start
LH: loop header
LB: loop body
LE: loop exit
PB: predicated region body
PF: predicated region fallthrough
CT: control target
= control target key end

     0   :  { %vm7_vm0 = vcmask 523264   ;;  %vm13_vm1 = vcmask 1048064   ;;  %s39_s0 = inlined_call_operand.vmem [shape: f32[2,64], index: 0, kind: input, shape index: {}]   ;;  %s40_s1 = inlined_call_operand.vmem [shape: f32[1,128], index: 1, kind: output, shape index: {}]  }
   0x1   :  { %v4_v0 = vld [vmem:[%s39_s0] sm:$0x3]  ;;  %s22_s0 = smov 64  }
   0x2   :  { %5 = vst [vmem:[#allocation1] sm:$0x3] %v4_v0 }
   0x9   :  { %v10_v1 = vld [vmem:[#allocation1 + $0x1] sm:$0x1]   ;;  %v6_v2 = vld [vmem:[#allocation1] sm:$0x1]  }
   0xa   :  { %11 = vrot.lane.b32.xlu0 %v10_v1, %s22_s0  ;;  %8 = vst.msk [vmem:[#allocation0] sm:$0x1] %vm7_vm0, %v6_v2  }
  0x7c   :  { %v12_v3 = vpop.permute.xlu0 %11  }
  0x7d   :  { %14 = vst.msk [vmem:[#allocation0] sm:$0x1] %vm13_vm1, %v12_v3  }
  0x84   :  { %v18_v4 = vld [vmem:[#allocation0] sm:$0x1] }
  0x85   :  { %20 = vst [vmem:[%s40_s1] sm:$0x1] %v18_v4 }

// kernel: cae5_forward.19
= control target key start
LH: loop header
LB: loop body
LE: loop exit
PB: predicated region body
PF: predicated region fallthrough
CT: control target
= control target key end

     0   :  { %s932_s1 = inlined_call_operand.vmem [shape: bf16[384,128], index: 1, kind: input, shape index: {}]   ;;  %s933_s0 = inlined_call_operand.vmem [shape: bf16[96,384], index: 0, kind: input, shape index: {}]   ;;  %s934_s2 = inlined_call_operand.vmem [shape: f32[1,128], index: 2, kind: input, shape index: {}]   ;;  %s935_s3 = inlined_call_operand.vmem [shape: f32[96,128], index: 3, kind: output, shape index: {}]  }
   0x1   :  { %v685_v0 = vld [vmem:[%s932_s1 + $0x40] sm:$0xff]   ;;  %v687_v2 = vld [vmem:[%s932_s1 + $0x48] sm:$0xff]   ;;  %v690_v5 = vld [vmem:[%s932_s1 + $0x50] sm:$0xff]  }
   0x2   :  { %v686_v1 = vld [vmem:[%s932_s1] sm:$0xff]   ;;  %591 = vmatprep.subr.bf16.mxu0 %v685_v0  ;;  %v689_v4 = vld [vmem:[%s932_s1 + $0x8] sm:$0xff]   ;;  %v692_v7 = vld [vmem:[%s932_s1 + $0x10] sm:$0xff]  }
   0x3   :  { %592 = vmatpush3.bf16.msra.mxu0 %v686_v1  ;;  %v688_v3 = vld [vmem:[%s932_s1 + $0x80] sm:$0xff]   ;;  %v691_v6 = vld [vmem:[%s932_s1 + $0x88] sm:$0xff]   ;;  %v693_v8 = vld [vmem:[%s932_s1 + $0x58] sm:$0xff]  }
   0x4   :  { %593 = vmatprep.subr.bf16.mxu0 %v687_v2  ;;  %657 = vmatprep.subr.bf16.mxu1 %v688_v3  ;;  %v694_v9 = vld [vmem:[%s932_s1 + $0x90] sm:$0xff]   ;;  %v695_v10 = vld [vmem:[%s932_s1 + $0x18] sm:$0xff]   ;;  %v696_v11 = vld [vmem:[%s932_s1 + $0x60] sm:$0xff]  }
   0x5   :  { %658 = vmatpush3.bf16.msra.mxu1 %v688_v3  ;;  %v697_v12 = vld [vmem:[%s932_s1 + $0x98] sm:$0xff]   ;;  %v698_v13 = vld [vmem:[%s932_s1 + $0x20] sm:$0xff]   ;;  %v699_v15 = vld [vmem:[%s932_s1 + $0x68] sm:$0xff]  }
   0x6   :  { %659 = vmatprep.subr.bf16.mxu1 %v691_v6  ;;  %v700_v14 = vld [vmem:[%s932_s1 + $0xa0] sm:$0xff]   ;;  %v701_v16 = vld [vmem:[%s932_s1 + $0x28] sm:$0xff]   ;;  %v702_v18 = vld [vmem:[%s932_s1 + $0x70] sm:$0xff]  }
   0x7   :  { %594 = vmatpush3.bf16.msra.mxu0 %v689_v4  ;;  %v703_v17 = vld [vmem:[%s932_s1 + $0xa8] sm:$0xff]   ;;  %v704_v19 = vld [vmem:[%s932_s1 + $0x30] sm:$0xff]   ;;  %v705_v20 = vld [vmem:[%s932_s1 + $0x78] sm:$0xff]  }
   0x8   :  { %595 = vmatprep.subr.bf16.mxu0 %v690_v5  ;;  %v706_v21 = vld [vmem:[%s932_s1 + $0xb0] sm:$0xff]   ;;  %v707_v23 = vld [vmem:[%s932_s1 + $0x38] sm:$0xff]   ;;  %v708_v26 = vld [vmem:[%s933_s0] ss:$12 sps:$4 sm:$0xff]  }
   0x9   :  { %660 = vmatpush3.bf16.msra.mxu1 %v691_v6  ;;  %v710_v22 = vld [vmem:[%s933_s0 + $0x4] ss:$12 sps:$4 sm:$0xff]   ;;  %v712_v24 = vld [vmem:[%s933_s0 + $0x8] ss:$12 sps:$4 sm:$0xff]   ;;  %v711_v25 = vld [vmem:[%s932_s1 + $0xb8] sm:$0xff]  }
   0xa   :  { %661 = vmatprep.subr.bf16.mxu1 %v694_v9  ;;  %366 = vmatprep.mubr.bf16.mxu0 %v710_v22  ;;  %v714_v27 = vld [vmem:[%s933_s0 + $0x1c] ss:$12 sps:$4 sm:$0xff]   ;;  %v713_v28 = vld [vmem:[%s933_s0 + $0x20] ss:$12 sps:$4 sm:$0xff]   ;;  %v720_v29 = vld [vmem:[%s933_s0 + $0x38] ss:$12 sps:$4 sm:$0xff]  }
   0xb   :  { %596 = vmatpush3.bf16.msra.mxu0 %v692_v7  ;;  %673 = vmatprep.mubr.bf16.mxu1 %v712_v24  ;;  %v716_v30 = vld [vmem:[%s933_s0 + $0x18] ss:$12 sps:$4 sm:$0xff]   ;;  %v717_v31 = vld [vmem:[%s933_s0 + $0x34] ss:$12 sps:$4 sm:$0xff]   ;;  %v721_v32 = vld [vmem:[%s933_s0 + $0x50] ss:$12 sps:$4 sm:$0xff]  }
   0xc   :  { %597 = vmatprep.subr.bf16.mxu0 %v693_v8  ;;  %v728_v33 = vld [vmem:[%s933_s0 + $0x68] ss:$12 sps:$4 sm:$0xff]   ;;  %v719_v34 = vld [vmem:[%s933_s0 + $0x30] ss:$12 sps:$4 sm:$0xff]   ;;  %v722_v35 = vld [vmem:[%s933_s0 + $0x4c] ss:$12 sps:$4 sm:$0xff]  }
   0xd   :  { %662 = vmatpush3.bf16.msra.mxu1 %v694_v9  ;;  %v729_v36 = vld [vmem:[%s933_s0 + $0x80] ss:$12 sps:$4 sm:$0xff]   ;;  %v724_v37 = vld [vmem:[%s933_s0 + $0x48] ss:$12 sps:$4 sm:$0xff]   ;;  %v725_v38 = vld [vmem:[%s933_s0 + $0x64] ss:$12 sps:$4 sm:$0xff]  }
   0xe   :  { %663 = vmatprep.subr.bf16.mxu1 %v697_v12  ;;  %v727_v39 = vld [vmem:[%s933_s0 + $0x60] ss:$12 sps:$4 sm:$0xff]   ;;  %v730_v40 = vld [vmem:[%s933_s0 + $0x7c] ss:$12 sps:$4 sm:$0xff]   ;;  %v732_v41 = vld [vmem:[%s933_s0 + $0x78] ss:$12 sps:$4 sm:$0xff]  }
   0xf   :  { %598 = vmatpush3.bf16.msra.mxu0 %v695_v10  ;;  %v882_v44 = vld [vmem:[%s934_s2] ss:$0 sm:$0xff] }
  0x10   :  { %599 = vmatprep.subr.bf16.mxu0 %v696_v11 }
  0x11   :  { %664 = vmatpush3.bf16.msra.mxu1 %v697_v12 }
  0x12   :  { %665 = vmatprep.subr.bf16.mxu1 %v700_v14 }
  0x13   :  { %600 = vmatpush3.bf16.msra.mxu0 %v698_v13 }
  0x14   :  { %601 = vmatprep.subr.bf16.mxu0 %v699_v15 }
  0x15   :  { %666 = vmatpush3.bf16.msra.mxu1 %v700_v14 }
  0x16   :  { %667 = vmatprep.subr.bf16.mxu1 %v703_v17 }
  0x17   :  { %602 = vmatpush3.bf16.msra.mxu0 %v701_v16 }
  0x18   :  { %603 = vmatprep.subr.bf16.mxu0 %v702_v18 }
  0x19   :  { %668 = vmatpush3.bf16.msra.mxu1 %v703_v17 }
  0x1a   :  { %669 = vmatprep.subr.bf16.mxu1 %v706_v21 }
  0x1b   :  { %604 = vmatpush3.bf16.msra.mxu0 %v704_v19 }
  0x1c   :  { %605 = vmatprep.subr.bf16.mxu0 %v705_v20 }
  0x1d   :  { %670 = vmatpush3.bf16.msra.mxu1 %v706_v21 }
  0x1e   :  { %671 = vmatprep.subr.bf16.mxu1 %v711_v25 }
  0x1f   :  { %606 = vmatpush3.bf16.msra.mxu0 %v707_v23 }
  0x21   :  { %672 = vmatpush3.bf16.msra.mxu1 %v711_v25 }
  0x22   :  { %367 = vmatmul.mubr.bf16.vlgmr.msra.gmra.mrb[0].mxu0 %v708_v26 }
  0x23   :  { %374 = vmatprep.mubr.bf16.mxu0 %v714_v27 }
  0x24   :  { %674 = vmatmul.mubr.bf16.vlgmr.msra.gmra.mrb[0].mxu1 %v713_v28 }
  0x25   :  { %677 = vmatprep.mubr.bf16.mxu1 %v720_v29 }
  0x2a   :  { %375 = vmatmul.mubr.bf16.gmra.mrb[4].mxu0 %v716_v30 }
  0x2b   :  { %382 = vmatprep.mubr.bf16.mxu0 %v717_v31 }
  0x2c   :  { %678 = vmatmul.mubr.bf16.gmra.mrb[4].mxu1 %v721_v32 }
  0x2d   :  { %681 = vmatprep.mubr.bf16.mxu1 %v728_v33 }
  0x32   :  { %383 = vmatmul.mubr.bf16.gmra.mrb[8].mxu0 %v719_v34 }
  0x33   :  { %390 = vmatprep.mubr.bf16.mxu0 %v722_v35 }
  0x34   :  { %682 = vmatmul.mubr.bf16.gmra.mrb[8].mxu1 %v729_v36 }
  0x3a   :  { %391 = vmatmul.mubr.bf16.gmra.mrb[12].mxu0 %v724_v37 }
  0x3b   :  { %398 = vmatprep.mubr.bf16.mxu0 %v725_v38 }
  0x42   :  { %399 = vmatmul.mubr.bf16.gmra.mrb[16].mxu0 %v727_v39 }
  0x43   :  { %406 = vmatprep.mubr.bf16.mxu0 %v730_v40 }
  0x4a   :  { %407 = vmatmul.mubr.bf16.gmra.mrb[20].mxu0 %v732_v41 }
  0xf5   :  { %v607_v42 = vpop.f32.mrb[0].mxu0 }
  0xf6   :  { %v608_v43 = vpop.f32.mrb[1].mxu0 }
  0xf7   :  { %v609_v45 = vadd.f32 %v608_v43, %v607_v42  ;;  %v610_v46 = vpop.f32.mrb[2].mxu0  ;;  %v675_v48 = vpop.f32.mrb[0].mxu1 }
  0xf8   :  { %v611_v47 = vpop.f32.mrb[3].mxu0  ;;  %v449_v51 = vpop.f32.mrb[1].mxu1 }
  0xf9   :  { %v612_v49 = vadd.f32 %v611_v47, %v610_v46  ;;  %v369_v50 = vadd.f32 %v609_v45, %v882_v44  ;;  %v676_v52 = vpop.f32.mrb[2].mxu1 }
  0xfa   :  { %v452_v55 = vpop.f32.mrb[3].mxu1 }
  0xfb   :  { %v450_v53 = vadd.f32 %v449_v51, %v369_v50  ;;  %v372_v54 = vadd.f32 %v612_v49, %v882_v44 }
  0xfd   :  { %vm496_vm0 = vcmp.gt.f32.partialorder %v450_v53, 0.0  ;;  %v508_v56 = vmul.f32 0.01, %v450_v53  ;;  %v453_v57 = vadd.f32 %v452_v55, %v372_v54  ;;  %v613_v58 = vpop.f32.mrb[4].mxu0 }
  0xfe   :  { %v614_v59 = vpop.f32.mrb[5].mxu0 }
  0xff   :  { %v520_v60 = vsel %vm496_vm0, %v450_v53, %v508_v56  ;;  %vm497_vm1 = vcmp.gt.f32.partialorder %v453_v57, 0.0  ;;  %v509_v61 = vmul.f32 0.01, %v453_v57  ;;  %v615_v62 = vadd.f32 %v614_v59, %v613_v58  ;;  %v616_v63 = vpop.f32.mrb[6].mxu0  ;;  %v679_v1 = vpop.f32.mrb[4].mxu1 }
 0x100   :  { %532 = vst [vmem:[%s935_s3] sm:$0xff] %v520_v60  ;;  %v617_v0 = vpop.f32.mrb[7].mxu0  ;;  %v465_v5 = vpop.f32.mrb[5].mxu1 }
 0x101   :  { %v521_v2 = vsel %vm497_vm1, %v453_v57, %v509_v61  ;;  %v377_v3 = vadd.f32 %v615_v62, %v882_v44  ;;  %v618_v4 = vadd.f32 %v617_v0, %v616_v63  ;;  %v680_v6 = vpop.f32.mrb[6].mxu1 }
 0x102   :  { %533 = vst [vmem:[%s935_s3 + $0x8] sm:$0xff] %v521_v2  ;;  %v468_v9 = vpop.f32.mrb[7].mxu1 }
 0x103   :  { %v458_v7 = vadd.f32 %v675_v48, %v377_v3  ;;  %v380_v8 = vadd.f32 %v618_v4, %v882_v44 }
 0x105   :  { %vm498_vm2 = vcmp.gt.f32.partialorder %v458_v7, 0.0  ;;  %v510_v10 = vmul.f32 0.01, %v458_v7  ;;  %v461_v11 = vadd.f32 %v676_v52, %v380_v8  ;;  %v619_v12 = vpop.f32.mrb[8].mxu0 }
 0x106   :  { %v620_v13 = vpop.f32.mrb[9].mxu0 }
 0x107   :  { %v522_v14 = vsel %vm498_vm2, %v458_v7, %v510_v10  ;;  %vm499_vm3 = vcmp.gt.f32.partialorder %v461_v11, 0.0  ;;  %v511_v15 = vmul.f32 0.01, %v461_v11  ;;  %v621_v16 = vadd.f32 %v620_v13, %v619_v12  ;;  %v622_v17 = vpop.f32.mrb[10].mxu0  ;;  %v683_v19 = vpop.f32.mrb[8].mxu1 }
 0x108   :  { %534 = vst [vmem:[%s935_s3 + $0x10] sm:$0xff] %v522_v14  ;;  %v623_v18 = vpop.f32.mrb[11].mxu0  ;;  %v481_v23 = vpop.f32.mrb[9].mxu1 }
 0x109   :  { %v523_v20 = vsel %vm499_vm3, %v461_v11, %v511_v15  ;;  %v624_v21 = vadd.f32 %v623_v18, %v622_v17  ;;  %v385_v22 = vadd.f32 %v621_v16, %v882_v44  ;;  %v684_v24 = vpop.f32.mrb[10].mxu1 }
 0x10a   :  { %535 = vst [vmem:[%s935_s3 + $0x18] sm:$0xff] %v523_v20  ;;  %v484_v27 = vpop.f32.mrb[11].mxu1 }
 0x10b   :  { %v466_v25 = vadd.f32 %v465_v5, %v385_v22  ;;  %v388_v26 = vadd.f32 %v624_v21, %v882_v44 }
 0x10d   :  { %vm500_vm4 = vcmp.gt.f32.partialorder %v466_v25, 0.0  ;;  %v512_v28 = vmul.f32 0.01, %v466_v25  ;;  %v469_v29 = vadd.f32 %v468_v9, %v388_v26  ;;  %v625_v30 = vpop.f32.mrb[12].mxu0 }
 0x10e   :  { %v626_v31 = vpop.f32.mrb[13].mxu0 }
 0x10f   :  { %v524_v32 = vsel %vm500_vm4, %v466_v25, %v512_v28  ;;  %vm501_vm5 = vcmp.gt.f32.partialorder %v469_v29, 0.0  ;;  %v513_v33 = vmul.f32 0.01, %v469_v29  ;;  %v627_v34 = vadd.f32 %v626_v31, %v625_v30  ;;  %v628_v35 = vpop.f32.mrb[14].mxu0 }
 0x110   :  { %536 = vst [vmem:[%s935_s3 + $0x20] sm:$0xff] %v524_v32  ;;  %v629_v36 = vpop.f32.mrb[15].mxu0 }
 0x111   :  { %v525_v37 = vsel %vm501_vm5, %v469_v29, %v513_v33  ;;  %v393_v38 = vadd.f32 %v627_v34, %v882_v44  ;;  %v630_v39 = vadd.f32 %v629_v36, %v628_v35 }
 0x112   :  { %537 = vst [vmem:[%s935_s3 + $0x28] sm:$0xff] %v525_v37 }
 0x113   :  { %v474_v40 = vadd.f32 %v679_v1, %v393_v38  ;;  %v396_v41 = vadd.f32 %v630_v39, %v882_v44 }
 0x115   :  { %vm502_vm6 = vcmp.gt.f32.partialorder %v474_v40, 0.0  ;;  %v514_v42 = vmul.f32 0.01, %v474_v40  ;;  %v477_v43 = vadd.f32 %v680_v6, %v396_v41  ;;  %v631_v45 = vpop.f32.mrb[16].mxu0 }
 0x116   :  { %v632_v46 = vpop.f32.mrb[17].mxu0 }
 0x117   :  { %v526_v47 = vsel %vm502_vm6, %v474_v40, %v514_v42  ;;  %vm503_vm7 = vcmp.gt.f32.partialorder %v477_v43, 0.0  ;;  %v515_v48 = vmul.f32 0.01, %v477_v43  ;;  %v633_v49 = vadd.f32 %v632_v46, %v631_v45  ;;  %v634_v50 = vpop.f32.mrb[18].mxu0 }
 0x118   :  { %538 = vst [vmem:[%s935_s3 + $0x30] sm:$0xff] %v526_v47  ;;  %v635_v51 = vpop.f32.mrb[19].mxu0 }
 0x119   :  { %v527_v52 = vsel %vm503_vm7, %v477_v43, %v515_v48  ;;  %v636_v53 = vadd.f32 %v635_v51, %v634_v50  ;;  %v401_v54 = vadd.f32 %v633_v49, %v882_v44 }
 0x11a   :  { %539 = vst [vmem:[%s935_s3 + $0x38] sm:$0xff] %v527_v52 }
 0x11b   :  { %v482_v55 = vadd.f32 %v481_v23, %v401_v54  ;;  %v404_v56 = vadd.f32 %v636_v53, %v882_v44 }
 0x11d   :  { %vm504_vm8 = vcmp.gt.f32.partialorder %v482_v55, 0.0  ;;  %v516_v57 = vmul.f32 0.01, %v482_v55  ;;  %v485_v58 = vadd.f32 %v484_v27, %v404_v56  ;;  %v637_v59 = vpop.f32.mrb[20].mxu0 }
 0x11e   :  { %v638_v60 = vpop.f32.mrb[21].mxu0 }
 0x11f   :  { %v528_v61 = vsel %vm504_vm8, %v482_v55, %v516_v57  ;;  %vm505_vm9 = vcmp.gt.f32.partialorder %v485_v58, 0.0  ;;  %v517_v62 = vmul.f32 0.01, %v485_v58  ;;  %v639_v63 = vadd.f32 %v638_v60, %v637_v59  ;;  %v640_v0 = vpop.f32.mrb[22].mxu0 }
 0x120   :  { %540 = vst [vmem:[%s935_s3 + $0x40] sm:$0xff] %v528_v61  ;;  %v641_v1 = vpop.f32.mrb[23].mxu0 }
 0x121   :  { %v529_v2 = vsel %vm505_vm9, %v485_v58, %v517_v62  ;;  %v409_v3 = vadd.f32 %v639_v63, %v882_v44  ;;  %v642_v4 = vadd.f32 %v641_v1, %v640_v0 }
 0x122   :  { %541 = vst [vmem:[%s935_s3 + $0x48] sm:$0xff] %v529_v2 }
 0x123   :  { %v490_v5 = vadd.f32 %v683_v19, %v409_v3  ;;  %v412_v6 = vadd.f32 %v642_v4, %v882_v44 }
 0x125   :  { %vm506_vm10 = vcmp.gt.f32.partialorder %v490_v5, 0.0  ;;  %v518_v7 = vmul.f32 0.01, %v490_v5  ;;  %v493_v8 = vadd.f32 %v684_v24, %v412_v6 }
 0x127   :  { %v530_v9 = vsel %vm506_vm10, %v490_v5, %v518_v7  ;;  %vm507_vm11 = vcmp.gt.f32.partialorder %v493_v8, 0.0  ;;  %v519_v10 = vmul.f32 0.01, %v493_v8 }
 0x128   :  { %542 = vst [vmem:[%s935_s3 + $0x50] sm:$0xff] %v530_v9 }
 0x129   :  { %v531_v11 = vsel %vm507_vm11, %v493_v8, %v519_v10 }
 0x12a   :  { %543 = vst [vmem:[%s935_s3 + $0x58] sm:$0xff] %v531_v11 }

// kernel: tile.101
= control target key start
LH: loop header
LB: loop body
LE: loop exit
PB: predicated region body
PF: predicated region fallthrough
CT: control target
= control target key end

     0   :  { %s22_s0 = inlined_call_operand.vmem [shape: f32[8], index: 0, kind: input, shape index: {}]   ;;  %s23_s1 = inlined_call_operand.vmem [shape: f32[4,8], index: 1, kind: output, shape index: {}]  }
   0x1   :  { %v4_v0 = vld [vmem:[%s22_s0] ss:$0 sm:$0xff] }
   0x2   :  { %5 = vst [vmem:[%s23_s1] sm:$0xf] %v4_v0 }

// kernel: tile.104
= control target key start
LH: loop header
LB: loop body
LE: loop exit
PB: predicated region body
PF: predicated region fallthrough
CT: control target
= control target key end

     0   :  { %vm7_vm0 = vcmask 64512   ;;  %s37_s8 = smov 8   ;;  %s38_s9 = smov 16   ;;  %vm13_vm1 = vcmask 261312   ;;  %vm19_vm2 = vcmask 195712   ;;  %vm25_vm3 = vcmask 130112   ;;  %s55_s0 = inlined_call_operand.vmem [shape: f32[4,8], index: 0, kind: input, shape index: {}]   ;;  %s56_s1 = inlined_call_operand.vmem [shape: f32[32], index: 1, kind: output, shape index: {}]  }
   0x1   :  { %v4_v0 = vld [vmem:[%s55_s0] sm:$0xf]  ;;  %s36_s0 = smov 24  }
   0x2   :  { %5 = vst [vmem:[#allocation1] sm:$0xf] %v4_v0 }
   0x9   :  { %v10_v1 = vld [vmem:[#allocation1 + $0x3] sm:$0x1]   ;;  %v22_v2 = vld [vmem:[#allocation1 + $0x1] sm:$0x1]   ;;  %v6_v3 = vld [vmem:[#allocation1] sm:$0x1]  }
   0xa   :  { %11 = vrot.lane.b32.xlu0 %v10_v1, %s36_s0  ;;  %23 = vrot.lane.b32.xlu1 %v22_v2, %s37_s8  ;;  %v16_v4 = vld [vmem:[#allocation1 + $0x2] sm:$0x1]   ;;  %8 = vst.msk [vmem:[#allocation0] sm:$0x1] %vm7_vm0, %v6_v3  }
   0xe   :  { %17 = vrot.lane.b32.xlu0 %v16_v4, %s38_s9 }
  0x7c   :  { %v12_v5 = vpop.permute.xlu0 %11   ;;  %v24_v6 = vpop.permute.xlu1 %23  }
  0x7d   :  { %14 = vst.msk [vmem:[#allocation0] sm:$0x1] %vm13_vm1, %v12_v5  }
  0x80   :  { %v18_v7 = vpop.permute.xlu0 %17  }
  0x81   :  { %20 = vst.msk [vmem:[#allocation0] sm:$0x1] %vm19_vm2, %v18_v7  }
  0x82   :  { %26 = vst.msk [vmem:[#allocation0] sm:$0x1] %vm25_vm3, %v24_v6  }
  0x89   :  { %v30_v8 = vld [vmem:[#allocation0] sm:$0x1] }
  0x8a   :  { %32 = vst [vmem:[%s56_s1] sm:$0x1] %v30_v8 }

// kernel: cae5_forward.20
= control target key start
LH: loop header
LB: loop body
LE: loop exit
PB: predicated region body
PF: predicated region fallthrough
CT: control target
= control target key end

     0   :  { %v1013_v1 = vmov 0.0   ;;  %vm1014_vm0 = vmmov 0   ;;  %vm375_vm1 = vcmask 261120   ;;  %s1316_s1 = inlined_call_operand.vmem [shape: bf16[288,128], index: 1, kind: input, shape index: {}]   ;;  %s1317_s0 = inlined_call_operand.vmem [shape: bf16[176,288], index: 0, kind: input, shape index: {}]   ;;  %s1318_s2 = inlined_call_operand.vmem [shape: f32[1,128], index: 2, kind: input, shape index: {}]   ;;  %s1319_s3 = inlined_call_operand.vmem [shape: f32[176,128], index: 3, kind: output, shape index: {}]  }
   0x1   :  { %v951_v0 = vld [vmem:[%s1316_s1 + $0x40] sm:$0xff]   ;;  %901 = vmatprep.subr.bf16.mxu1 %v1013_v1  ;;  %905 = vmatprep.mubr.msk.bf16.mxu1 %vm1014_vm0, %v1013_v1  ;;  %v953_v3 = vld [vmem:[%s1316_s1 + $0x48] sm:$0xff]   ;;  %v955_v5 = vld [vmem:[%s1316_s1 + $0x50] sm:$0xff]  }
   0x2   :  { %v952_v2 = vld [vmem:[%s1316_s1] sm:$0xff]   ;;  %806 = vmatprep.subr.bf16.mxu0 %v951_v0  ;;  %v954_v4 = vld [vmem:[%s1316_s1 + $0x8] sm:$0xff]   ;;  %v956_v6 = vld [vmem:[%s1316_s1 + $0x10] sm:$0xff]  }
   0x3   :  { %807 = vmatpush3.bf16.msra.mxu0 %v952_v2  ;;  %v957_v7 = vld [vmem:[%s1316_s1 + $0x58] sm:$0xff]   ;;  %v959_v9 = vld [vmem:[%s1316_s1 + $0x60] sm:$0xff]   ;;  %v961_v12 = vld [vmem:[%s1316_s1 + $0x68] sm:$0xff]  }
   0x4   :  { %808 = vmatprep.subr.bf16.mxu0 %v953_v3  ;;  %v958_v8 = vld [vmem:[%s1316_s1 + $0x18] sm:$0xff]   ;;  %v965_v10 = vld [vmem:[%s1316_s1 + $0x80] sm:$0xff]   ;;  %v962_v13 = vld [vmem:[%s1316_s1 + $0x28] sm:$0xff]  }
   0x5   :  { %v960_v11 = vld [vmem:[%s1316_s1 + $0x20] sm:$0xff]   ;;  %902 = vmatpush3.bf16.msra.mxu1 %v965_v10  ;;  %v963_v14 = vld [vmem:[%s1316_s1 + $0x70] sm:$0xff]   ;;  %v971_v16 = vld [vmem:[%s1316_s1 + $0x88] sm:$0xff]  }
   0x6   :  { %903 = vmatprep.subr.bf16.mxu1 %v1013_v1  ;;  %v970_v15 = vld [vmem:[%s1317_s0 + $0x4] ss:$12 sps:$4 sm:$0xff]   ;;  %v972_v17 = vld [vmem:[%s1317_s0 + $0x8] ss:$12 sps:$4 sm:$0xff]   ;;  %v966_v19 = vld [vmem:[%s1316_s1 + $0x78] sm:$0xff]  }
   0x7   :  { %809 = vmatpush3.bf16.msra.mxu0 %v954_v4  ;;  %441 = vmatprep.mubr.bf16.mxu0 %v970_v15  ;;  %v964_v18 = vld [vmem:[%s1316_s1 + $0x30] sm:$0xff]   ;;  %v967_v20 = vld [vmem:[%s1316_s1 + $0x38] sm:$0xff]   ;;  %v976_v21 = vld [vmem:[%s1317_s0 + $0x20] ss:$12 sps:$4 sm:$0xff]  }
   0x8   :  { %810 = vmatprep.subr.bf16.mxu0 %v955_v5  ;;  %v968_v22 = vld [vmem:[%s1317_s0] ss:$12 sps:$4 sm:$0xff]   ;;  %v973_v23 = vld [vmem:[%s1317_s0 + $0x1c] ss:$12 sps:$4 sm:$0xff]   ;;  %v980_v24 = vld [vmem:[%s1317_s0 + $0x38] ss:$12 sps:$4 sm:$0xff]  }
   0x9   :  { %904 = vmatpush3.bf16.msra.mxu1 %v971_v16  ;;  %v975_v25 = vld [vmem:[%s1317_s0 + $0x18] ss:$12 sps:$4 sm:$0xff]   ;;  %v977_v26 = vld [vmem:[%s1317_s0 + $0x34] ss:$12 sps:$4 sm:$0xff]   ;;  %v984_v27 = vld [vmem:[%s1317_s0 + $0x50] ss:$12 sps:$4 sm:$0xff]  }
   0xa   :  { %v979_v28 = vld [vmem:[%s1317_s0 + $0x30] ss:$12 sps:$4 sm:$0xff]   ;;  %v981_v29 = vld [vmem:[%s1317_s0 + $0x4c] ss:$12 sps:$4 sm:$0xff]   ;;  %v988_v30 = vld [vmem:[%s1317_s0 + $0x68] ss:$12 sps:$4 sm:$0xff]  }
   0xb   :  { %811 = vmatpush3.bf16.msra.mxu0 %v956_v6  ;;  %v983_v31 = vld [vmem:[%s1317_s0 + $0x48] ss:$12 sps:$4 sm:$0xff]   ;;  %v985_v32 = vld [vmem:[%s1317_s0 + $0x64] ss:$12 sps:$4 sm:$0xff]   ;;  %v992_v33 = vld [vmem:[%s1317_s0 + $0x80] ss:$12 sps:$4 sm:$0xff]  }
   0xc   :  { %812 = vmatprep.subr.bf16.mxu0 %v957_v7  ;;  %906 = vmatmul.mubr.msk.bf16.vlgmr.msra.gmra.mrb[0].mxu1 %vm375_vm1, %v972_v17  ;;  %v987_v34 = vld [vmem:[%s1317_s0 + $0x60] ss:$12 sps:$4 sm:$0xff]   ;;  %v989_v35 = vld [vmem:[%s1317_s0 + $0x7c] ss:$12 sps:$4 sm:$0xff]   ;;  %v996_v36 = vld [vmem:[%s1317_s0 + $0x98] ss:$12 sps:$4 sm:$0xff]  }
   0xd   :  { %909 = vmatprep.mubr.msk.bf16.mxu1 %vm1014_vm0, %v1013_v1  ;;  %v991_v37 = vld [vmem:[%s1317_s0 + $0x78] ss:$12 sps:$4 sm:$0xff]   ;;  %v993_v38 = vld [vmem:[%s1317_s0 + $0x94] ss:$12 sps:$4 sm:$0xff]   ;;  %v1000_v39 = vld [vmem:[%s1317_s0 + $0xb0] ss:$12 sps:$4 sm:$0xff]  }
   0xe   :  { %v995_v40 = vld [vmem:[%s1317_s0 + $0x90] ss:$12 sps:$4 sm:$0xff]   ;;  %v997_v41 = vld [vmem:[%s1317_s0 + $0xac] ss:$12 sps:$4 sm:$0xff]   ;;  %v1004_v42 = vld [vmem:[%s1317_s0 + $0xc8] ss:$12 sps:$4 sm:$0xff]  }
   0xf   :  { %813 = vmatpush3.bf16.msra.mxu0 %v958_v8  ;;  %v999_v43 = vld [vmem:[%s1317_s0 + $0xa8] ss:$12 sps:$4 sm:$0xff]   ;;  %v1001_v44 = vld [vmem:[%s1317_s0 + $0xc4] ss:$12 sps:$4 sm:$0xff]   ;;  %v1008_v45 = vld [vmem:[%s1317_s0 + $0xe0] ss:$12 sps:$4 sm:$0xff]  }
  0x10   :  { %814 = vmatprep.subr.bf16.mxu0 %v959_v9  ;;  %v1003_v46 = vld [vmem:[%s1317_s0 + $0xc0] ss:$12 sps:$4 sm:$0xff]   ;;  %v1005_v47 = vld [vmem:[%s1317_s0 + $0xdc] ss:$12 sps:$4 sm:$0xff]   ;;  %v1012_v48 = vld [vmem:[%s1317_s0 + $0xf8] ss:$12 sps:$4 sm:$0xff]  }
  0x11   :  { %v1007_v49 = vld [vmem:[%s1317_s0 + $0xd8] ss:$12 sps:$4 sm:$0xff]   ;;  %v1009_v50 = vld [vmem:[%s1317_s0 + $0xf4] ss:$12 sps:$4 sm:$0xff]   ;;  %v1011_v51 = vld [vmem:[%s1317_s0 + $0xf0] ss:$12 sps:$4 sm:$0xff]  }
  0x12   :  { %v1226_v61 = vld [vmem:[%s1318_s2] ss:$0 sm:$0xff] }
  0x13   :  { %815 = vmatpush3.bf16.msra.mxu0 %v960_v11 }
  0x14   :  { %816 = vmatprep.subr.bf16.mxu0 %v961_v12  ;;  %910 = vmatmul.mubr.msk.bf16.gmra.mrb[4].mxu1 %vm375_vm1, %v976_v21 }
  0x15   :  { %913 = vmatprep.mubr.msk.bf16.mxu1 %vm1014_vm0, %v1013_v1 }
  0x17   :  { %817 = vmatpush3.bf16.msra.mxu0 %v962_v13 }
  0x18   :  { %818 = vmatprep.subr.bf16.mxu0 %v963_v14 }
  0x1b   :  { %819 = vmatpush3.bf16.msra.mxu0 %v964_v18 }
  0x1c   :  { %820 = vmatprep.subr.bf16.mxu0 %v966_v19  ;;  %914 = vmatmul.mubr.msk.bf16.gmra.mrb[8].mxu1 %vm375_vm1, %v980_v24 }
  0x1d   :  { %917 = vmatprep.mubr.msk.bf16.mxu1 %vm1014_vm0, %v1013_v1 }
  0x1f   :  { %821 = vmatpush3.bf16.msra.mxu0 %v967_v20 }
  0x22   :  { %442 = vmatmul.mubr.bf16.vlgmr.msra.gmra.mrb[0].mxu0 %v968_v22 }
  0x23   :  { %449 = vmatprep.mubr.bf16.mxu0 %v973_v23 }
  0x24   :  { %918 = vmatmul.mubr.msk.bf16.gmra.mrb[12].mxu1 %vm375_vm1, %v984_v27 }
  0x25   :  { %921 = vmatprep.mubr.msk.bf16.mxu1 %vm1014_vm0, %v1013_v1 }
  0x2a   :  { %450 = vmatmul.mubr.bf16.gmra.mrb[4].mxu0 %v975_v25 }
  0x2b   :  { %457 = vmatprep.mubr.bf16.mxu0 %v977_v26 }
  0x2c   :  { %922 = vmatmul.mubr.msk.bf16.gmra.mrb[16].mxu1 %vm375_vm1, %v988_v30 }
  0x2d   :  { %925 = vmatprep.mubr.msk.bf16.mxu1 %vm1014_vm0, %v1013_v1 }
  0x32   :  { %458 = vmatmul.mubr.bf16.gmra.mrb[8].mxu0 %v979_v28 }
  0x33   :  { %465 = vmatprep.mubr.bf16.mxu0 %v981_v29 }
  0x34   :  { %926 = vmatmul.mubr.msk.bf16.gmra.mrb[20].mxu1 %vm375_vm1, %v992_v33 }
  0x35   :  { %929 = vmatprep.mubr.msk.bf16.mxu1 %vm1014_vm0, %v1013_v1 }
  0x3a   :  { %466 = vmatmul.mubr.bf16.gmra.mrb[12].mxu0 %v983_v31 }
  0x3b   :  { %473 = vmatprep.mubr.bf16.mxu0 %v985_v32 }
  0x3c   :  { %930 = vmatmul.mubr.msk.bf16.gmra.mrb[24].mxu1 %vm375_vm1, %v996_v36 }
  0x3d   :  { %933 = vmatprep.mubr.msk.bf16.mxu1 %vm1014_vm0, %v1013_v1 }
  0x42   :  { %474 = vmatmul.mubr.bf16.gmra.mrb[16].mxu0 %v987_v34 }
  0x43   :  { %481 = vmatprep.mubr.bf16.mxu0 %v989_v35 }
  0x44   :  { %934 = vmatmul.mubr.msk.bf16.gmra.mrb[28].mxu1 %vm375_vm1, %v1000_v39 }
  0x45   :  { %937 = vmatprep.mubr.msk.bf16.mxu1 %vm1014_vm0, %v1013_v1 }
  0x4a   :  { %482 = vmatmul.mubr.bf16.gmra.mrb[20].mxu0 %v991_v37 }
  0x4b   :  { %489 = vmatprep.mubr.bf16.mxu0 %v993_v38 }
  0x4c   :  { %938 = vmatmul.mubr.msk.bf16.gmra.mrb[32].mxu1 %vm375_vm1, %v1004_v42 }
  0x4d   :  { %941 = vmatprep.mubr.msk.bf16.mxu1 %vm1014_vm0, %v1013_v1 }
  0x52   :  { %490 = vmatmul.mubr.bf16.gmra.mrb[24].mxu0 %v995_v40 }
  0x53   :  { %497 = vmatprep.mubr.bf16.mxu0 %v997_v41 }
  0x54   :  { %942 = vmatmul.mubr.msk.bf16.gmra.mrb[36].mxu1 %vm375_vm1, %v1008_v45 }
  0x55   :  { %945 = vmatprep.mubr.msk.bf16.mxu1 %vm1014_vm0, %v1013_v1 }
  0x5a   :  { %498 = vmatmul.mubr.bf16.gmra.mrb[28].mxu0 %v999_v43 }
  0x5b   :  { %505 = vmatprep.mubr.bf16.mxu0 %v1001_v44 }
  0x5c   :  { %946 = vmatmul.mubr.msk.bf16.gmra.mrb[40].mxu1 %vm375_vm1, %v1012_v48 }
  0x62   :  { %506 = vmatmul.mubr.bf16.gmra.mrb[32].mxu0 %v1003_v46 }
  0x63   :  { %513 = vmatprep.mubr.bf16.mxu0 %v1005_v47 }
  0x6a   :  { %514 = vmatmul.mubr.bf16.gmra.mrb[36].mxu0 %v1007_v49 }
  0x6b   :  { %521 = vmatprep.mubr.bf16.mxu0 %v1009_v50 }
  0x72   :  { %522 = vmatmul.mubr.bf16.gmra.mrb[40].mxu0 %v1011_v51 }
  0xdf   :  { %v564_v52 = vpop.f32.mrb[0].mxu1 }
  0xe0   :  { %v907_v53 = vpop.f32.mrb[1].mxu1 }
  0xe1   :  { %v567_v54 = vpop.f32.mrb[2].mxu1 }
  0xe2   :  { %v908_v55 = vpop.f32.mrb[3].mxu1 }
  0xe7   :  { %v572_v56 = vpop.f32.mrb[4].mxu1 }
  0xe8   :  { %v911_v57 = vpop.f32.mrb[5].mxu1 }
  0xe9   :  { %v575_v59 = vpop.f32.mrb[6].mxu1 }
  0xea   :  { %v912_v62 = vpop.f32.mrb[7].mxu1 }
  0xef   :  { %v580_v6 = vpop.f32.mrb[8].mxu1 }
  0xf0   :  { %v915_v7 = vpop.f32.mrb[9].mxu1 }
  0xf1   :  { %v583_v11 = vpop.f32.mrb[10].mxu1 }
  0xf2   :  { %v916_v13 = vpop.f32.mrb[11].mxu1 }
  0xf5   :  { %v822_v58 = vpop.f32.mrb[0].mxu0 }
  0xf6   :  { %v823_v60 = vpop.f32.mrb[1].mxu0 }
  0xf7   :  { %v824_v63 = vadd.f32 %v823_v60, %v822_v58  ;;  %v825_v0 = vpop.f32.mrb[2].mxu0  ;;  %v588_v24 = vpop.f32.mrb[12].mxu1 }
  0xf8   :  { %v826_v1 = vpop.f32.mrb[3].mxu0  ;;  %v919_v25 = vpop.f32.mrb[13].mxu1 }
  0xf9   :  { %v444_v2 = vadd.f32 %v824_v63, %v1226_v61  ;;  %v827_v3 = vadd.f32 %v826_v1, %v825_v0  ;;  %v591_v29 = vpop.f32.mrb[14].mxu1 }
  0xfa   :  { %v920_v31 = vpop.f32.mrb[15].mxu1 }
  0xfb   :  { %v565_v4 = vadd.f32 %v564_v52, %v444_v2  ;;  %v447_v5 = vadd.f32 %v827_v3, %v1226_v61 }
  0xfd   :  { %vm651_vm2 = vcmp.gt.f32.partialorder %v565_v4, 0.0  ;;  %v673_v8 = vmul.f32 0.01, %v565_v4  ;;  %v568_v9 = vadd.f32 %v567_v54, %v447_v5  ;;  %v828_v10 = vpop.f32.mrb[4].mxu0 }
  0xfe   :  { %v829_v12 = vpop.f32.mrb[5].mxu0 }
  0xff   :  { %v695_v14 = vsel %vm651_vm2, %v565_v4, %v673_v8  ;;  %vm652_vm3 = vcmp.gt.f32.partialorder %v568_v9, 0.0  ;;  %v674_v15 = vmul.f32 0.01, %v568_v9  ;;  %v830_v16 = vadd.f32 %v829_v12, %v828_v10  ;;  %v831_v17 = vpop.f32.mrb[6].mxu0  ;;  %v596_v42 = vpop.f32.mrb[16].mxu1 }
 0x100   :  { %717 = vst [vmem:[%s1319_s3] sm:$0xff] %v695_v14  ;;  %v832_v18 = vpop.f32.mrb[7].mxu0  ;;  %v923_v43 = vpop.f32.mrb[17].mxu1 }
 0x101   :  { %v696_v19 = vsel %vm652_vm3, %v568_v9, %v674_v15  ;;  %v452_v20 = vadd.f32 %v830_v16, %v1226_v61  ;;  %v833_v21 = vadd.f32 %v832_v18, %v831_v17  ;;  %v599_v47 = vpop.f32.mrb[18].mxu1 }
 0x102   :  { %718 = vst [vmem:[%s1319_s3 + $0x8] sm:$0xff] %v696_v19  ;;  %v924_v49 = vpop.f32.mrb[19].mxu1 }
 0x103   :  { %v573_v22 = vadd.f32 %v572_v56, %v452_v20  ;;  %v455_v23 = vadd.f32 %v833_v21, %v1226_v61 }
 0x105   :  { %vm653_vm4 = vcmp.gt.f32.partialorder %v573_v22, 0.0  ;;  %v675_v26 = vmul.f32 0.01, %v573_v22  ;;  %v576_v27 = vadd.f32 %v575_v59, %v455_v23  ;;  %v834_v28 = vpop.f32.mrb[8].mxu0 }
 0x106   :  { %v835_v30 = vpop.f32.mrb[9].mxu0 }
 0x107   :  { %v697_v32 = vsel %vm653_vm4, %v573_v22, %v675_v26  ;;  %vm654_vm5 = vcmp.gt.f32.partialorder %v576_v27, 0.0  ;;  %v676_v33 = vmul.f32 0.01, %v576_v27  ;;  %v836_v34 = vadd.f32 %v835_v30, %v834_v28  ;;  %v837_v35 = vpop.f32.mrb[10].mxu0  ;;  %v604_v60 = vpop.f32.mrb[20].mxu1 }
 0x108   :  { %719 = vst [vmem:[%s1319_s3 + $0x10] sm:$0xff] %v697_v32  ;;  %v838_v36 = vpop.f32.mrb[11].mxu0  ;;  %v927_v62 = vpop.f32.mrb[21].mxu1 }
 0x109   :  { %v698_v37 = vsel %vm654_vm5, %v576_v27, %v676_v33  ;;  %v460_v38 = vadd.f32 %v836_v34, %v1226_v61  ;;  %v839_v39 = vadd.f32 %v838_v36, %v837_v35  ;;  %v607_v2 = vpop.f32.mrb[22].mxu1 }
 0x10a   :  { %720 = vst [vmem:[%s1319_s3 + $0x18] sm:$0xff] %v698_v37  ;;  %v928_v4 = vpop.f32.mrb[23].mxu1 }
 0x10b   :  { %v581_v40 = vadd.f32 %v580_v6, %v460_v38  ;;  %v463_v41 = vadd.f32 %v839_v39, %v1226_v61 }
 0x10d   :  { %vm655_vm6 = vcmp.gt.f32.partialorder %v581_v40, 0.0  ;;  %v677_v44 = vmul.f32 0.01, %v581_v40  ;;  %v584_v45 = vadd.f32 %v583_v11, %v463_v41  ;;  %v840_v46 = vpop.f32.mrb[12].mxu0 }
 0x10e   :  { %v841_v48 = vpop.f32.mrb[13].mxu0 }
 0x10f   :  { %v699_v50 = vsel %vm655_vm6, %v581_v40, %v677_v44  ;;  %vm656_vm7 = vcmp.gt.f32.partialorder %v584_v45, 0.0  ;;  %v678_v51 = vmul.f32 0.01, %v584_v45  ;;  %v842_v52 = vadd.f32 %v841_v48, %v840_v46  ;;  %v843_v53 = vpop.f32.mrb[14].mxu0  ;;  %v612_v15 = vpop.f32.mrb[24].mxu1 }
 0x110   :  { %721 = vst [vmem:[%s1319_s3 + $0x20] sm:$0xff] %v699_v50  ;;  %v844_v54 = vpop.f32.mrb[15].mxu0  ;;  %v931_v16 = vpop.f32.mrb[25].mxu1 }
 0x111   :  { %v700_v55 = vsel %vm656_vm7, %v584_v45, %v678_v51  ;;  %v468_v56 = vadd.f32 %v842_v52, %v1226_v61  ;;  %v845_v57 = vadd.f32 %v844_v54, %v843_v53  ;;  %v615_v20 = vpop.f32.mrb[26].mxu1 }
 0x112   :  { %722 = vst [vmem:[%s1319_s3 + $0x28] sm:$0xff] %v700_v55  ;;  %v932_v22 = vpop.f32.mrb[27].mxu1 }
 0x113   :  { %v589_v58 = vadd.f32 %v588_v24, %v468_v56  ;;  %v471_v59 = vadd.f32 %v845_v57, %v1226_v61 }
 0x115   :  { %vm657_vm8 = vcmp.gt.f32.partialorder %v589_v58, 0.0  ;;  %v679_v63 = vmul.f32 0.01, %v589_v58  ;;  %v592_v0 = vadd.f32 %v591_v29, %v471_v59  ;;  %v846_v1 = vpop.f32.mrb[16].mxu0 }
 0x116   :  { %v847_v3 = vpop.f32.mrb[17].mxu0 }
 0x117   :  { %v701_v5 = vsel %vm657_vm8, %v589_v58, %v679_v63  ;;  %vm658_vm9 = vcmp.gt.f32.partialorder %v592_v0, 0.0  ;;  %v680_v6 = vmul.f32 0.01, %v592_v0  ;;  %v848_v7 = vadd.f32 %v847_v3, %v846_v1  ;;  %v849_v8 = vpop.f32.mrb[18].mxu0  ;;  %v620_v33 = vpop.f32.mrb[28].mxu1 }
 0x118   :  { %723 = vst [vmem:[%s1319_s3 + $0x30] sm:$0xff] %v701_v5  ;;  %v850_v9 = vpop.f32.mrb[19].mxu0  ;;  %v935_v34 = vpop.f32.mrb[29].mxu1 }
 0x119   :  { %v702_v10 = vsel %vm658_vm9, %v592_v0, %v680_v6  ;;  %v476_v11 = vadd.f32 %v848_v7, %v1226_v61  ;;  %v851_v12 = vadd.f32 %v850_v9, %v849_v8  ;;  %v623_v38 = vpop.f32.mrb[30].mxu1 }
 0x11a   :  { %724 = vst [vmem:[%s1319_s3 + $0x38] sm:$0xff] %v702_v10  ;;  %v936_v40 = vpop.f32.mrb[31].mxu1 }
 0x11b   :  { %v597_v13 = vadd.f32 %v596_v42, %v476_v11  ;;  %v479_v14 = vadd.f32 %v851_v12, %v1226_v61 }
 0x11d   :  { %vm659_vm10 = vcmp.gt.f32.partialorder %v597_v13, 0.0  ;;  %v681_v17 = vmul.f32 0.01, %v597_v13  ;;  %v600_v18 = vadd.f32 %v599_v47, %v479_v14  ;;  %v852_v19 = vpop.f32.mrb[20].mxu0 }
 0x11e   :  { %v853_v21 = vpop.f32.mrb[21].mxu0 }
 0x11f   :  { %v703_v23 = vsel %vm659_vm10, %v597_v13, %v681_v17  ;;  %vm660_vm11 = vcmp.gt.f32.partialorder %v600_v18, 0.0  ;;  %v682_v24 = vmul.f32 0.01, %v600_v18  ;;  %v854_v25 = vadd.f32 %v853_v21, %v852_v19  ;;  %v855_v26 = vpop.f32.mrb[22].mxu0  ;;  %v628_v51 = vpop.f32.mrb[32].mxu1 }
 0x120   :  { %725 = vst [vmem:[%s1319_s3 + $0x40] sm:$0xff] %v703_v23  ;;  %v856_v27 = vpop.f32.mrb[23].mxu0  ;;  %v939_v52 = vpop.f32.mrb[33].mxu1 }
 0x121   :  { %v704_v28 = vsel %vm660_vm11, %v600_v18, %v682_v24  ;;  %v484_v29 = vadd.f32 %v854_v25, %v1226_v61  ;;  %v857_v30 = vadd.f32 %v856_v27, %v855_v26  ;;  %v631_v56 = vpop.f32.mrb[34].mxu1 }
 0x122   :  { %726 = vst [vmem:[%s1319_s3 + $0x48] sm:$0xff] %v704_v28  ;;  %v940_v58 = vpop.f32.mrb[35].mxu1 }
 0x123   :  { %v605_v31 = vadd.f32 %v604_v60, %v484_v29  ;;  %v487_v32 = vadd.f32 %v857_v30, %v1226_v61 }
 0x125   :  { %vm661_vm12 = vcmp.gt.f32.partialorder %v605_v31, 0.0  ;;  %v683_v35 = vmul.f32 0.01, %v605_v31  ;;  %v608_v36 = vadd.f32 %v607_v2, %v487_v32  ;;  %v858_v37 = vpop.f32.mrb[24].mxu0 }
 0x126   :  { %v859_v39 = vpop.f32.mrb[25].mxu0 }
 0x127   :  { %v705_v41 = vsel %vm661_vm12, %v605_v31, %v683_v35  ;;  %vm662_vm13 = vcmp.gt.f32.partialorder %v608_v36, 0.0  ;;  %v684_v42 = vmul.f32 0.01, %v608_v36  ;;  %v860_v43 = vadd.f32 %v859_v39, %v858_v37  ;;  %v861_v44 = vpop.f32.mrb[26].mxu0  ;;  %v636_v6 = vpop.f32.mrb[36].mxu1 }
 0x128   :  { %727 = vst [vmem:[%s1319_s3 + $0x50] sm:$0xff] %v705_v41  ;;  %v862_v45 = vpop.f32.mrb[27].mxu0  ;;  %v943_v7 = vpop.f32.mrb[37].mxu1 }
 0x129   :  { %v706_v46 = vsel %vm662_vm13, %v608_v36, %v684_v42  ;;  %v492_v47 = vadd.f32 %v860_v43, %v1226_v61  ;;  %v863_v48 = vadd.f32 %v862_v45, %v861_v44  ;;  %v639_v11 = vpop.f32.mrb[38].mxu1 }
 0x12a   :  { %728 = vst [vmem:[%s1319_s3 + $0x58] sm:$0xff] %v706_v46  ;;  %v944_v13 = vpop.f32.mrb[39].mxu1 }
 0x12b   :  { %v613_v49 = vadd.f32 %v612_v15, %v492_v47  ;;  %v495_v50 = vadd.f32 %v863_v48, %v1226_v61 }
 0x12d   :  { %vm663_vm14 = vcmp.gt.f32.partialorder %v613_v49, 0.0  ;;  %v685_v53 = vmul.f32 0.01, %v613_v49  ;;  %v616_v54 = vadd.f32 %v615_v20, %v495_v50  ;;  %v864_v55 = vpop.f32.mrb[28].mxu0 }
 0x12e   :  { %v865_v57 = vpop.f32.mrb[29].mxu0 }
 0x12f   :  { %v707_v59 = vsel %vm663_vm14, %v613_v49, %v685_v53  ;;  %vm664_vm15 = vcmp.gt.f32.partialorder %v616_v54, 0.0  ;;  %v686_v60 = vmul.f32 0.01, %v616_v54  ;;  %v866_v62 = vadd.f32 %v865_v57, %v864_v55  ;;  %v867_v63 = vpop.f32.mrb[30].mxu0  ;;  %v644_v24 = vpop.f32.mrb[40].mxu1 }
 0x130   :  { %729 = vst [vmem:[%s1319_s3 + $0x60] sm:$0xff] %v707_v59  ;;  %v868_v0 = vpop.f32.mrb[31].mxu0  ;;  %v947_v25 = vpop.f32.mrb[41].mxu1 }
 0x131   :  { %v708_v1 = vsel %vm664_vm15, %v616_v54, %v686_v60  ;;  %v500_v2 = vadd.f32 %v866_v62, %v1226_v61  ;;  %v869_v3 = vadd.f32 %v868_v0, %v867_v63  ;;  %v647_v29 = vpop.f32.mrb[42].mxu1 }
 0x132   :  { %730 = vst [vmem:[%s1319_s3 + $0x68] sm:$0xff] %v708_v1  ;;  %v948_v31 = vpop.f32.mrb[43].mxu1 }
 0x133   :  { %v621_v4 = vadd.f32 %v620_v33, %v500_v2  ;;  %v503_v5 = vadd.f32 %v869_v3, %v1226_v61 }
 0x135   :  { %vm665_vm0 = vcmp.gt.f32.partialorder %v621_v4, 0.0  ;;  %v687_v8 = vmul.f32 0.01, %v621_v4  ;;  %v624_v9 = vadd.f32 %v623_v38, %v503_v5  ;;  %v870_v10 = vpop.f32.mrb[32].mxu0 }
 0x136   :  { %v871_v12 = vpop.f32.mrb[33].mxu0 }
 0x137   :  { %v709_v14 = vsel %vm665_vm0, %v621_v4, %v687_v8  ;;  %vm666_vm1 = vcmp.gt.f32.partialorder %v624_v9, 0.0  ;;  %v688_v15 = vmul.f32 0.01, %v624_v9  ;;  %v872_v16 = vadd.f32 %v871_v12, %v870_v10  ;;  %v873_v17 = vpop.f32.mrb[34].mxu0 }
 0x138   :  { %731 = vst [vmem:[%s1319_s3 + $0x70] sm:$0xff] %v709_v14  ;;  %v874_v18 = vpop.f32.mrb[35].mxu0 }
 0x139   :  { %v710_v19 = vsel %vm666_vm1, %v624_v9, %v688_v15  ;;  %v508_v20 = vadd.f32 %v872_v16, %v1226_v61  ;;  %v875_v21 = vadd.f32 %v874_v18, %v873_v17 }
 0x13a   :  { %732 = vst [vmem:[%s1319_s3 + $0x78] sm:$0xff] %v710_v19 }
 0x13b   :  { %v629_v22 = vadd.f32 %v628_v51, %v508_v20  ;;  %v511_v23 = vadd.f32 %v875_v21, %v1226_v61 }
 0x13d   :  { %vm667_vm2 = vcmp.gt.f32.partialorder %v629_v22, 0.0  ;;  %v689_v26 = vmul.f32 0.01, %v629_v22  ;;  %v632_v27 = vadd.f32 %v631_v56, %v511_v23  ;;  %v876_v28 = vpop.f32.mrb[36].mxu0 }
 0x13e   :  { %v877_v30 = vpop.f32.mrb[37].mxu0 }
 0x13f   :  { %v711_v32 = vsel %vm667_vm2, %v629_v22, %v689_v26  ;;  %vm668_vm3 = vcmp.gt.f32.partialorder %v632_v27, 0.0  ;;  %v690_v33 = vmul.f32 0.01, %v632_v27  ;;  %v878_v34 = vadd.f32 %v877_v30, %v876_v28  ;;  %v879_v35 = vpop.f32.mrb[38].mxu0 }
 0x140   :  { %733 = vst [vmem:[%s1319_s3 + $0x80] sm:$0xff] %v711_v32  ;;  %v880_v36 = vpop.f32.mrb[39].mxu0 }
 0x141   :  { %v712_v37 = vsel %vm668_vm3, %v632_v27, %v690_v33  ;;  %v516_v38 = vadd.f32 %v878_v34, %v1226_v61  ;;  %v881_v39 = vadd.f32 %v880_v36, %v879_v35 }
 0x142   :  { %734 = vst [vmem:[%s1319_s3 + $0x88] sm:$0xff] %v712_v37 }
 0x143   :  { %v637_v40 = vadd.f32 %v636_v6, %v516_v38  ;;  %v519_v41 = vadd.f32 %v881_v39, %v1226_v61 }
 0x145   :  { %vm669_vm4 = vcmp.gt.f32.partialorder %v637_v40, 0.0  ;;  %v691_v42 = vmul.f32 0.01, %v637_v40  ;;  %v640_v43 = vadd.f32 %v639_v11, %v519_v41  ;;  %v882_v44 = vpop.f32.mrb[40].mxu0 }
 0x146   :  { %v883_v45 = vpop.f32.mrb[41].mxu0 }
 0x147   :  { %v713_v46 = vsel %vm669_vm4, %v637_v40, %v691_v42  ;;  %vm670_vm5 = vcmp.gt.f32.partialorder %v640_v43, 0.0  ;;  %v692_v47 = vmul.f32 0.01, %v640_v43  ;;  %v884_v48 = vadd.f32 %v883_v45, %v882_v44  ;;  %v885_v49 = vpop.f32.mrb[42].mxu0 }
 0x148   :  { %735 = vst [vmem:[%s1319_s3 + $0x90] sm:$0xff] %v713_v46  ;;  %v886_v50 = vpop.f32.mrb[43].mxu0 }
 0x149   :  { %v714_v51 = vsel %vm670_vm5, %v640_v43, %v692_v47  ;;  %v524_v52 = vadd.f32 %v884_v48, %v1226_v61  ;;  %v887_v53 = vadd.f32 %v886_v50, %v885_v49 }
 0x14a   :  { %736 = vst [vmem:[%s1319_s3 + $0x98] sm:$0xff] %v714_v51 }
 0x14b   :  { %v645_v54 = vadd.f32 %v644_v24, %v524_v52  ;;  %v527_v55 = vadd.f32 %v887_v53, %v1226_v61 }
 0x14d   :  { %vm671_vm6 = vcmp.gt.f32.partialorder %v645_v54, 0.0  ;;  %v693_v56 = vmul.f32 0.01, %v645_v54  ;;  %v648_v57 = vadd.f32 %v647_v29, %v527_v55 }
 0x14f   :  { %v715_v58 = vsel %vm671_vm6, %v645_v54, %v693_v56  ;;  %vm672_vm7 = vcmp.gt.f32.partialorder %v648_v57, 0.0  ;;  %v694_v59 = vmul.f32 0.01, %v648_v57 }
 0x150   :  { %737 = vst [vmem:[%s1319_s3 + $0xa0] sm:$0xff] %v715_v58 }
 0x151   :  { %v716_v60 = vsel %vm672_vm7, %v648_v57, %v694_v59 }
 0x152   :  { %738 = vst [vmem:[%s1319_s3 + $0xa8] sm:$0xff] %v716_v60 }

// kernel: tile.110
= control target key start
LH: loop header
LB: loop body
LE: loop exit
PB: predicated region body
PF: predicated region fallthrough
CT: control target
= control target key end

     0   :  { %s22_s0 = inlined_call_operand.vmem [shape: f32[3], index: 0, kind: input, shape index: {}]   ;;  %s23_s1 = inlined_call_operand.vmem [shape: f32[4,3], index: 1, kind: output, shape index: {}]  }
   0x1   :  { %v4_v0 = vld [vmem:[%s22_s0] ss:$0 sm:$0xff] }
   0x2   :  { %5 = vst [vmem:[%s23_s1] sm:$0xf] %v4_v0 }

// kernel: tile.113
= control target key start
LH: loop header
LB: loop body
LE: loop exit
PB: predicated region body
PF: predicated region fallthrough
CT: control target
= control target key end

     0   :  { %vm7_vm0 = vcmask 23552   ;;  %s37_s8 = smov 3   ;;  %s38_s9 = smov 6   ;;  %vm13_vm1 = vcmask 97352   ;;  %vm19_vm2 = vcmask 72752   ;;  %vm25_vm3 = vcmask 48152   ;;  %s55_s0 = inlined_call_operand.vmem [shape: f32[4,3], index: 0, kind: input, shape index: {}]   ;;  %s56_s1 = inlined_call_operand.vmem [shape: f32[12], index: 1, kind: output, shape index: {}]  }
   0x1   :  { %v4_v0 = vld [vmem:[%s55_s0] sm:$0xf]  ;;  %s36_s0 = smov 9  }
   0x2   :  { %5 = vst [vmem:[#allocation1] sm:$0xf] %v4_v0 }
   0x9   :  { %v10_v1 = vld [vmem:[#allocation1 + $0x3] sm:$0x1]   ;;  %v22_v2 = vld [vmem:[#allocation1 + $0x1] sm:$0x1]   ;;  %v6_v3 = vld [vmem:[#allocation1] sm:$0x1]  }
   0xa   :  { %11 = vrot.lane.b32.xlu0 %v10_v1, %s36_s0  ;;  %23 = vrot.lane.b32.xlu1 %v22_v2, %s37_s8  ;;  %v16_v4 = vld [vmem:[#allocation1 + $0x2] sm:$0x1]   ;;  %8 = vst.msk [vmem:[#allocation0] sm:$0x1] %vm7_vm0, %v6_v3  }
   0xe   :  { %17 = vrot.lane.b32.xlu0 %v16_v4, %s38_s9 }
  0x7c   :  { %v12_v5 = vpop.permute.xlu0 %11   ;;  %v24_v6 = vpop.permute.xlu1 %23  }
  0x7d   :  { %14 = vst.msk [vmem:[#allocation0] sm:$0x1] %vm13_vm1, %v12_v5  }
  0x80   :  { %v18_v7 = vpop.permute.xlu0 %17  }
  0x81   :  { %20 = vst.msk [vmem:[#allocation0] sm:$0x1] %vm19_vm2, %v18_v7  }
  0x82   :  { %26 = vst.msk [vmem:[#allocation0] sm:$0x1] %vm25_vm3, %v24_v6  }
  0x89   :  { %v30_v8 = vld [vmem:[#allocation0] sm:$0x1] }
  0x8a   :  { %32 = vst [vmem:[%s56_s1] sm:$0x1] %v30_v8 }

// kernel: tile.114
= control target key start
LH: loop header
LB: loop body
LE: loop exit
PB: predicated region body
PF: predicated region fallthrough
CT: control target
= control target key end

     0   :  { %s28_s0 = inlined_call_operand.vmem [shape: f32[12], index: 0, kind: input, shape index: {}]   ;;  %s29_s1 = inlined_call_operand.vmem [shape: f32[10,12], index: 1, kind: output, shape index: {}]  }
   0x1   :  { %v4_v0 = vld [vmem:[%s28_s0] ss:$0 sm:$0xff] }
   0x2   :  { %5 = vst [vmem:[%s29_s1] sm:$0xff] %v4_v0  ;;  %8 = vst [vmem:[%s29_s1 + $0x8] sm:$0xff] %v4_v0 }

// kernel: tile.115
= control target key start
LH: loop header
LB: loop body
LE: loop exit
PB: predicated region body
PF: predicated region fallthrough
CT: control target
= control target key end

     0   :  { %s83_s10 = smov 108   ;;  %s84_s11 = smov 84   ;;  %vm3_vm0 = vcmask 97280   ;;  %vm9_vm1 = vcmask 982880   ;;  %vm15_vm2 = vcmask 884480   ;;  %vm21_vm3 = vcmask 786080   ;;  %s135_s0 = inlined_call_operand.vmem [shape: f32[10,12], index: 0, kind: input, shape index: {}]   ;;  %s136_s1 = inlined_call_operand.vmem [shape: f32[1,120], index: 1, kind: output, shape index: {}]  }
   0x1   :  { %v65_v0 = vld [vmem:[%s135_s0 + $0x9] sm:$0x1]   ;;  %v67_v1 = vld [vmem:[%s135_s0 + $0x7] sm:$0x1]   ;;  %v66_v2 = vld [vmem:[%s135_s0 + $0x8] sm:$0x1]  }
   0x2   :  { %7 = vrot.lane.b32.xlu0 %v65_v0, %s83_s10  ;;  %19 = vrot.lane.b32.xlu1 %v67_v1, %s84_s11  ;;  %v68_v3 = vld [vmem:[%s135_s0 + $0x6] sm:$0x1]   ;;  %v2_v4 = vld [vmem:[%s135_s0] sm:$0x1]   ;;  %s85_s18 = smov 96   ;;  %s86_s19 = smov 72  }
   0x3   :  { %v69_v5 = vld [vmem:[%s135_s0 + $0x5] sm:$0x1]   ;;  %v70_v6 = vld [vmem:[%s135_s0 + $0x4] sm:$0x1]   ;;  %4 = vst.msk [vmem:[#allocation0] sm:$0x1] %vm3_vm0, %v2_v4  }
   0x4   :  { %s87_s24 = smov 60   ;;  %s88_s25 = smov 48   ;;  %v71_v7 = vld [vmem:[%s135_s0 + $0x3] sm:$0x1]   ;;  %v72_v8 = vld [vmem:[%s135_s0 + $0x2] sm:$0x1]  }
   0x5   :  { %s89_s30 = smov 36   ;;  %s90_s2 = smov 24   ;;  %v73_v9 = vld [vmem:[%s135_s0 + $0x1] sm:$0x1]   ;;  %vm27_vm4 = vcmask 687680   ;;  %vm33_vm5 = vcmask 589280  }
   0x6   :  { %13 = vrot.lane.b32.xlu0 %v66_v2, %s85_s18  ;;  %25 = vrot.lane.b32.xlu1 %v68_v3, %s86_s19  ;;  %s91_s0 = smov 12   ;;  %vm39_vm6 = vcmask 490880   ;;  %vm45_vm7 = vcmask 392480   ;;  %vm51_vm8 = vcmask 294080   ;;  %vm57_vm9 = vcmask 195680  }
   0xa   :  { %31 = vrot.lane.b32.xlu0 %v69_v5, %s87_s24  ;;  %37 = vrot.lane.b32.xlu1 %v70_v6, %s88_s25 }
   0xe   :  { %43 = vrot.lane.b32.xlu0 %v71_v7, %s89_s30  ;;  %49 = vrot.lane.b32.xlu1 %v72_v8, %s90_s2 }
  0x12   :  { %55 = vrot.lane.b32.xlu0 %v73_v9, %s91_s0 }
  0x74   :  { %v8_v10 = vpop.permute.xlu0 %7   ;;  %v20_v11 = vpop.permute.xlu1 %19  }
  0x75   :  { %10 = vst.msk [vmem:[#allocation0] sm:$0x1] %vm9_vm1, %v8_v10  }
  0x78   :  { %v14_v12 = vpop.permute.xlu0 %13   ;;  %v26_v13 = vpop.permute.xlu1 %25  }
  0x79   :  { %16 = vst.msk [vmem:[#allocation0] sm:$0x1] %vm15_vm2, %v14_v12  }
  0x7a   :  { %22 = vst.msk [vmem:[#allocation0] sm:$0x1] %vm21_vm3, %v20_v11  }
  0x7b   :  { %28 = vst.msk [vmem:[#allocation0] sm:$0x1] %vm27_vm4, %v26_v13  }
  0x7c   :  { %v32_v14 = vpop.permute.xlu0 %31   ;;  %v38_v15 = vpop.permute.xlu1 %37  }
  0x7d   :  { %34 = vst.msk [vmem:[#allocation0] sm:$0x1] %vm33_vm5, %v32_v14  }
  0x7e   :  { %40 = vst.msk [vmem:[#allocation0] sm:$0x1] %vm39_vm6, %v38_v15  }
  0x80   :  { %v44_v16 = vpop.permute.xlu0 %43   ;;  %v50_v17 = vpop.permute.xlu1 %49  }
  0x81   :  { %46 = vst.msk [vmem:[#allocation0] sm:$0x1] %vm45_vm7, %v44_v16  }
  0x82   :  { %52 = vst.msk [vmem:[#allocation0] sm:$0x1] %vm51_vm8, %v50_v17  }
  0x84   :  { %v56_v18 = vpop.permute.xlu0 %55  }
  0x85   :  { %58 = vst.msk [vmem:[#allocation0] sm:$0x1] %vm57_vm9, %v56_v18  }
  0x8c   :  { %v62_v19 = vld [vmem:[#allocation0] sm:$0x1] }
  0x8d   :  { %64 = vst [vmem:[%s136_s1] sm:$0x1] %v62_v19 }

// kernel: cae5_forward.21
= control target key start
LH: loop header
LB: loop body
LE: loop exit
PB: predicated region body
PF: predicated region fallthrough
CT: control target
= control target key end

     0   :  { %s1093_s12 = smov 0   ;;  %s1287_s0 = inlined_call_operand.vmem [shape: bf16[288,288], index: 0, kind: input, shape index: {}]   ;;  %s1288_s1 = inlined_call_operand.vmem [shape: bf16[288,120], index: 1, kind: input, shape index: {}]   ;;  %s1289_s2 = inlined_call_operand.vmem [shape: f32[1,120], index: 2, kind: input, shape index: {}]   ;;  %s1290_s3 = inlined_call_operand.vmem [shape: f32[288,120], index: 3, kind: output, shape index: {}]  }
   0x1 LB: > { %s813_s13 = sadd.s32 4294967295, %s1069_s12   ;;  %p817_p0 = scmp.ge.s32.totalorder %s1069_s12, 1  ;;  %s1069_s12 = sphi %s1093_s12, %s13_s12  }
   0x2   : > { %p139_p1 = scmp.lt.s32.totalorder %s1069_s12, 3 }
   0x4   : > { %p140_p2 = pnand %p817_p0, %p139_p1 }
   0x5   : > { %v1009_v0 = vld [vmem:[%s1288_s1 + $0x40] sm:$0xff] (!%p140_p2)   ;;  %v1071_v2 = vmov (!%p140_p2), 0.0   ;;  %s164_s18 = smul.u32 (!%p140_p2), 18, %s813_s13  ;;  %v1011_v3 = vld [vmem:[%s1288_s1 + $0x48] sm:$0xff] (!%p140_p2)   ;;  %vm1072_vm0 = vmmov (!%p140_p2), 0   ;;  %v1013_v5 = vld [vmem:[%s1288_s1 + $0x50] sm:$0xff] (!%p140_p2)  }
   0x6   : > { %143 = sbr.rel (%p140_p2) target bundleno = 324 (0x144), region = 32  ;;  %v1010_v1 = vld [vmem:[%s1288_s1] sm:$0xff] (!%p140_p2)   ;;  %958 = vmatprep.subr.bf16.mxu1 (!%p140_p2), %v1071_v2  ;;  %877 = vmatprep.subr.bf16.mxu0 (!%p140_p2), %v1009_v0  ;;  %v1012_v4 = vld [vmem:[%s1288_s1 + $0x8] sm:$0xff] (!%p140_p2)   ;;  %v1014_v6 = vld [vmem:[%s1288_s1 + $0x10] sm:$0xff] (!%p140_p2)   ;;  %vm500_vm1 = vcmask (!%p140_p2), 261120   ;;  %vm738_vm2 = vcmask (!%p140_p2), 982016  }
   0x7   : > { %878 = vmatpush3.bf16.msra.mxu0 (!%p140_p2), %v1010_v1  ;;  %p165_p3 = scmp.lt.s32.totalorder (!%p140_p2), %s164_s18, 35  ;;  %962 = vmatprep.mubr.msk.bf16.mxu1 (!%p140_p2), %vm1072_vm0, %v1071_v2  ;;  %v1015_v7 = vld [vmem:[%s1288_s1 + $0x58] sm:$0xff] (!%p140_p2)   ;;  %v1017_v9 = vld [vmem:[%s1288_s1 + $0x60] sm:$0xff] (!%p140_p2)   ;;  %v1019_v12 = vld [vmem:[%s1288_s1 + $0x68] sm:$0xff] (!%p140_p2)  }
   0x8   : > { %879 = vmatprep.subr.bf16.mxu0 (!%p140_p2), %v1011_v3  ;;  %v1016_v8 = vld [vmem:[%s1288_s1 + $0x18] sm:$0xff] (!%p140_p2)   ;;  %v1023_v10 = vld [vmem:[%s1288_s1 + $0x80] sm:$0xff] (!%p140_p2)   ;;  %v1020_v13 = vld [vmem:[%s1288_s1 + $0x28] sm:$0xff] (!%p140_p2)  }
   0x9   : > { %v1018_v11 = vld [vmem:[%s1288_s1 + $0x20] sm:$0xff] (!%p140_p2)   ;;  %959 = vmatpush3.bf16.msra.mxu1 (!%p140_p2), %v1023_v10  ;;  %v1021_v14 = vld [vmem:[%s1288_s1 + $0x70] sm:$0xff] (!%p140_p2)   ;;  %v1029_v16 = vld [vmem:[%s1288_s1 + $0x88] sm:$0xff] (!%p140_p2)  }
   0xa   : > { %960 = vmatprep.subr.bf16.mxu1 (!%p140_p2), %v1071_v2  ;;  %v1022_v18 = vld [vmem:[%s1288_s1 + $0x30] sm:$0xff] (!%p140_p2)   ;;  %v1024_v19 = vld [vmem:[%s1288_s1 + $0x78] sm:$0xff] (!%p140_p2)   ;;  %v1222_v55 = vld [vmem:[%s1289_s2] ss:$0 sm:$0xff] (!%p140_p2) }
   0xb   : > { %880 = vmatpush3.bf16.msra.mxu0 (!%p140_p2), %v1012_v4  ;;  %v1025_v20 = vld [vmem:[%s1288_s1 + $0x38] sm:$0xff] (!%p140_p2)  }
   0xc   : > { %881 = vmatprep.subr.bf16.mxu0 (!%p140_p2), %v1013_v5 }
   0xd   : > { %s1292_s18 = smov (!%p165_p3, %s164_s18), 35  ;;  %961 = vmatpush3.bf16.msra.mxu1 %v1029_v16 }
   0xe   : > { %s998_s4 = smul.u32 12, %s1292_s18  ;;  %s819_s5 = sshll.u32 %s1292_s18, 3 }
   0xf   : > { %882 = vmatpush3.bf16.msra.mxu0 %v1014_v6  ;;  %s1229_s8 = scalar_lea.vmem %s1290_s3, %s819_s5 }
  0x10   : > { %883 = vmatprep.subr.bf16.mxu0 %v1015_v7  ;;  %s1143_s14 = scalar_lea.vmem %s1287_s0, %s998_s4 }
  0x11   : > { %v1028_v15 = vld [vmem:[%s1143_s14 + $0x4] ss:$12 sps:$4 sm:$0xff]   ;;  %v1030_v17 = vld [vmem:[%s1143_s14 + $0x8] ss:$12 sps:$4 sm:$0xff]   ;;  %v1034_v21 = vld [vmem:[%s1143_s14 + $0x20] ss:$12 sps:$4 sm:$0xff]  }
  0x12   : > { %560 = vmatprep.mubr.bf16.mxu0 %v1028_v15  ;;  %963 = vmatmul.mubr.msk.bf16.vlgmr.msra.gmra.mrb[0].mxu1 %vm500_vm1, %v1030_v17  ;;  %v1026_v22 = vld [vmem:[%s1143_s14] ss:$12 sps:$4 sm:$0xff]   ;;  %v1031_v23 = vld [vmem:[%s1143_s14 + $0x1c] ss:$12 sps:$4 sm:$0xff]   ;;  %v1038_v24 = vld [vmem:[%s1143_s14 + $0x38] ss:$12 sps:$4 sm:$0xff]  }
  0x13   : > { %884 = vmatpush3.bf16.msra.mxu0 %v1016_v8  ;;  %966 = vmatprep.mubr.msk.bf16.mxu1 %vm1072_vm0, %v1071_v2  ;;  %v1033_v25 = vld [vmem:[%s1143_s14 + $0x18] ss:$12 sps:$4 sm:$0xff]   ;;  %v1035_v26 = vld [vmem:[%s1143_s14 + $0x34] ss:$12 sps:$4 sm:$0xff]   ;;  %v1042_v27 = vld [vmem:[%s1143_s14 + $0x50] ss:$12 sps:$4 sm:$0xff]  }
  0x14   : > { %885 = vmatprep.subr.bf16.mxu0 %v1017_v9  ;;  %v1037_v28 = vld [vmem:[%s1143_s14 + $0x30] ss:$12 sps:$4 sm:$0xff]   ;;  %v1039_v29 = vld [vmem:[%s1143_s14 + $0x4c] ss:$12 sps:$4 sm:$0xff]   ;;  %v1046_v30 = vld [vmem:[%s1143_s14 + $0x68] ss:$12 sps:$4 sm:$0xff]  }
  0x15   : > { %v1041_v31 = vld [vmem:[%s1143_s14 + $0x48] ss:$12 sps:$4 sm:$0xff]   ;;  %v1043_v32 = vld [vmem:[%s1143_s14 + $0x64] ss:$12 sps:$4 sm:$0xff]   ;;  %v1050_v33 = vld [vmem:[%s1143_s14 + $0x80] ss:$12 sps:$4 sm:$0xff]  }
  0x16   : > { %v1045_v34 = vld [vmem:[%s1143_s14 + $0x60] ss:$12 sps:$4 sm:$0xff]   ;;  %v1047_v35 = vld [vmem:[%s1143_s14 + $0x7c] ss:$12 sps:$4 sm:$0xff]   ;;  %v1054_v36 = vld [vmem:[%s1143_s14 + $0x98] ss:$12 sps:$4 sm:$0xff]  }
  0x17   : > { %886 = vmatpush3.bf16.msra.mxu0 %v1018_v11  ;;  %v1049_v37 = vld [vmem:[%s1143_s14 + $0x78] ss:$12 sps:$4 sm:$0xff]   ;;  %v1051_v38 = vld [vmem:[%s1143_s14 + $0x94] ss:$12 sps:$4 sm:$0xff]   ;;  %v1058_v39 = vld [vmem:[%s1143_s14 + $0xb0] ss:$12 sps:$4 sm:$0xff]  }
  0x18   : > { %887 = vmatprep.subr.bf16.mxu0 %v1019_v12  ;;  %v1053_v40 = vld [vmem:[%s1143_s14 + $0x90] ss:$12 sps:$4 sm:$0xff]   ;;  %v1055_v41 = vld [vmem:[%s1143_s14 + $0xac] ss:$12 sps:$4 sm:$0xff]   ;;  %v1062_v42 = vld [vmem:[%s1143_s14 + $0xc8] ss:$12 sps:$4 sm:$0xff]  }
  0x19   : > { %v1057_v43 = vld [vmem:[%s1143_s14 + $0xa8] ss:$12 sps:$4 sm:$0xff]   ;;  %v1059_v44 = vld [vmem:[%s1143_s14 + $0xc4] ss:$12 sps:$4 sm:$0xff]   ;;  %v1061_v45 = vld [vmem:[%s1143_s14 + $0xc0] ss:$12 sps:$4 sm:$0xff]  }
  0x1a   : > { %967 = vmatmul.mubr.msk.bf16.gmra.mrb[4].mxu1 %vm500_vm1, %v1034_v21 }
  0x1b   : > { %888 = vmatpush3.bf16.msra.mxu0 %v1020_v13  ;;  %970 = vmatprep.mubr.msk.bf16.mxu1 %vm1072_vm0, %v1071_v2 }
  0x1c   : > { %889 = vmatprep.subr.bf16.mxu0 %v1021_v14 }
  0x1f   : > { %890 = vmatpush3.bf16.msra.mxu0 %v1022_v18 }
  0x20   : > { %891 = vmatprep.subr.bf16.mxu0 %v1024_v19 }
  0x22   : > { %971 = vmatmul.mubr.msk.bf16.gmra.mrb[8].mxu1 %vm500_vm1, %v1038_v24 }
  0x23   : > { %892 = vmatpush3.bf16.msra.mxu0 %v1025_v20  ;;  %974 = vmatprep.mubr.msk.bf16.mxu1 %vm1072_vm0, %v1071_v2 }
  0x26   : > { %561 = vmatmul.mubr.bf16.vlgmr.msra.gmra.mrb[0].mxu0 %v1026_v22 }
  0x27   : > { %568 = vmatprep.mubr.bf16.mxu0 %v1031_v23 }
  0x2a   : > { %975 = vmatmul.mubr.msk.bf16.gmra.mrb[12].mxu1 %vm500_vm1, %v1042_v27 }
  0x2b   : > { %978 = vmatprep.mubr.msk.bf16.mxu1 %vm1072_vm0, %v1071_v2 }
  0x2e   : > { %569 = vmatmul.mubr.bf16.gmra.mrb[4].mxu0 %v1033_v25 }
  0x2f   : > { %576 = vmatprep.mubr.bf16.mxu0 %v1035_v26 }
  0x32   : > { %979 = vmatmul.mubr.msk.bf16.gmra.mrb[16].mxu1 %vm500_vm1, %v1046_v30 }
  0x33   : > { %982 = vmatprep.mubr.msk.bf16.mxu1 %vm1072_vm0, %v1071_v2 }
  0x36   : > { %577 = vmatmul.mubr.bf16.gmra.mrb[8].mxu0 %v1037_v28 }
  0x37   : > { %584 = vmatprep.mubr.bf16.mxu0 %v1039_v29 }
  0x3a   : > { %983 = vmatmul.mubr.msk.bf16.gmra.mrb[20].mxu1 %vm500_vm1, %v1050_v33 }
  0x3b   : > { %986 = vmatprep.mubr.msk.bf16.mxu1 %vm1072_vm0, %v1071_v2 }
  0x3e   : > { %585 = vmatmul.mubr.bf16.gmra.mrb[12].mxu0 %v1041_v31 }
  0x3f   : > { %592 = vmatprep.mubr.bf16.mxu0 %v1043_v32 }
  0x42   : > { %987 = vmatmul.mubr.msk.bf16.gmra.mrb[24].mxu1 %vm500_vm1, %v1054_v36 }
  0x43   : > { %990 = vmatprep.mubr.msk.bf16.mxu1 %vm1072_vm0, %v1071_v2 }
  0x46   : > { %593 = vmatmul.mubr.bf16.gmra.mrb[16].mxu0 %v1045_v34 }
  0x47   : > { %600 = vmatprep.mubr.bf16.mxu0 %v1047_v35 }
  0x4a   : > { %991 = vmatmul.mubr.msk.bf16.gmra.mrb[28].mxu1 %vm500_vm1, %v1058_v39 }
  0x4b   : > { %994 = vmatprep.mubr.msk.bf16.mxu1 %vm1072_vm0, %v1071_v2 }
  0x4e   : > { %601 = vmatmul.mubr.bf16.gmra.mrb[20].mxu0 %v1049_v37 }
  0x4f   : > { %608 = vmatprep.mubr.bf16.mxu0 %v1051_v38 }
  0x52   : > { %995 = vmatmul.mubr.msk.bf16.gmra.mrb[32].mxu1 %vm500_vm1, %v1062_v42 }
  0x56   : > { %609 = vmatmul.mubr.bf16.gmra.mrb[24].mxu0 %v1053_v40 }
  0x57   : > { %616 = vmatprep.mubr.bf16.mxu0 %v1055_v41 }
  0x5e   : > { %617 = vmatmul.mubr.bf16.gmra.mrb[28].mxu0 %v1057_v43 }
  0x5f   : > { %624 = vmatprep.mubr.bf16.mxu0 %v1059_v44 }
  0x66   : > { %625 = vmatmul.mubr.bf16.gmra.mrb[32].mxu0 %v1061_v45 }
  0xe5   : > { %v667_v46 = vpop.f32.mrb[0].mxu1 }
  0xe6   : > { %v964_v47 = vpop.f32.mrb[1].mxu1 }
  0xe7   : > { %v670_v48 = vpop.f32.mrb[2].mxu1 }
  0xe8   : > { %v965_v49 = vpop.f32.mrb[3].mxu1 }
  0xed   : > { %v675_v50 = vpop.f32.mrb[4].mxu1 }
  0xee   : > { %v968_v51 = vpop.f32.mrb[5].mxu1 }
  0xef   : > { %v678_v53 = vpop.f32.mrb[6].mxu1 }
  0xf0   : > { %v969_v56 = vpop.f32.mrb[7].mxu1 }
  0xf5   : > { %v683_v0 = vpop.f32.mrb[8].mxu1 }
  0xf6   : > { %v972_v1 = vpop.f32.mrb[9].mxu1 }
  0xf7   : > { %v686_v4 = vpop.f32.mrb[10].mxu1 }
  0xf8   : > { %v973_v6 = vpop.f32.mrb[11].mxu1 }
  0xf9   : > { %v893_v52 = vpop.f32.mrb[0].mxu0 }
  0xfa   : > { %v894_v54 = vpop.f32.mrb[1].mxu0 }
  0xfb   : > { %v895_v57 = vadd.f32 %v894_v54, %v893_v52  ;;  %v896_v58 = vpop.f32.mrb[2].mxu0 }
  0xfc   : > { %v897_v59 = vpop.f32.mrb[3].mxu0 }
  0xfd   : > { %v563_v60 = vadd.f32 %v895_v57, %v1222_v55  ;;  %v898_v61 = vadd.f32 %v897_v59, %v896_v58  ;;  %v691_v14 = vpop.f32.mrb[12].mxu1 }
  0xfe   : > { %v976_v15 = vpop.f32.mrb[13].mxu1 }
  0xff   : > { %v668_v62 = vadd.f32 %v667_v46, %v563_v60  ;;  %v566_v63 = vadd.f32 %v898_v61, %v1222_v55  ;;  %v694_v18 = vpop.f32.mrb[14].mxu1 }
 0x100   : > { %v977_v20 = vpop.f32.mrb[15].mxu1 }
 0x101   : > { %739 = vst.msk [vmem:[%s1229_s8] sm:$0xff] %vm738_vm2, %v668_v62  ;;  %v671_v2 = vadd.f32 %v670_v48, %v566_v63  ;;  %v899_v3 = vpop.f32.mrb[4].mxu0 }
 0x102   : > { %v900_v5 = vpop.f32.mrb[5].mxu0 }
 0x103   : > { %740 = vst.msk [vmem:[%s1229_s8 + $0x8] sm:$0xff] %vm738_vm2, %v671_v2  ;;  %v901_v7 = vadd.f32 %v900_v5, %v899_v3  ;;  %v902_v8 = vpop.f32.mrb[6].mxu0 }
 0x104   : > { %v903_v9 = vpop.f32.mrb[7].mxu0 }
 0x105   : > { %v571_v10 = vadd.f32 %v901_v7, %v1222_v55  ;;  %v904_v11 = vadd.f32 %v903_v9, %v902_v8  ;;  %v699_v28 = vpop.f32.mrb[16].mxu1 }
 0x106   : > { %v980_v29 = vpop.f32.mrb[17].mxu1 }
 0x107   : > { %v676_v12 = vadd.f32 %v675_v50, %v571_v10  ;;  %v574_v13 = vadd.f32 %v904_v11, %v1222_v55  ;;  %v702_v32 = vpop.f32.mrb[18].mxu1 }
 0x108   : > { %v981_v34 = vpop.f32.mrb[19].mxu1 }
 0x109   : > { %741 = vst.msk [vmem:[%s1229_s8 + $0x10] sm:$0xff] %vm738_vm2, %v676_v12  ;;  %v679_v16 = vadd.f32 %v678_v53, %v574_v13  ;;  %v905_v17 = vpop.f32.mrb[8].mxu0 }
 0x10a   : > { %v906_v19 = vpop.f32.mrb[9].mxu0 }
 0x10b   : > { %742 = vst.msk [vmem:[%s1229_s8 + $0x18] sm:$0xff] %vm738_vm2, %v679_v16  ;;  %v907_v21 = vadd.f32 %v906_v19, %v905_v17  ;;  %v908_v22 = vpop.f32.mrb[10].mxu0 }
 0x10c   : > { %v909_v23 = vpop.f32.mrb[11].mxu0 }
 0x10d   : > { %v579_v24 = vadd.f32 %v907_v21, %v1222_v55  ;;  %v910_v25 = vadd.f32 %v909_v23, %v908_v22  ;;  %v707_v42 = vpop.f32.mrb[20].mxu1 }
 0x10e   : > { %v984_v43 = vpop.f32.mrb[21].mxu1 }
 0x10f   : > { %v684_v26 = vadd.f32 %v683_v0, %v579_v24  ;;  %v582_v27 = vadd.f32 %v910_v25, %v1222_v55  ;;  %v710_v46 = vpop.f32.mrb[22].mxu1 }
 0x110   : > { %v985_v48 = vpop.f32.mrb[23].mxu1 }
 0x111   : > { %743 = vst.msk [vmem:[%s1229_s8 + $0x20] sm:$0xff] %vm738_vm2, %v684_v26  ;;  %v687_v30 = vadd.f32 %v686_v4, %v582_v27  ;;  %v911_v31 = vpop.f32.mrb[12].mxu0 }
 0x112   : > { %v912_v33 = vpop.f32.mrb[13].mxu0 }
 0x113   : > { %744 = vst.msk [vmem:[%s1229_s8 + $0x28] sm:$0xff] %vm738_vm2, %v687_v30  ;;  %v913_v35 = vadd.f32 %v912_v33, %v911_v31  ;;  %v914_v36 = vpop.f32.mrb[14].mxu0 }
 0x114   : > { %v915_v37 = vpop.f32.mrb[15].mxu0 }
 0x115   : > { %v587_v38 = vadd.f32 %v913_v35, %v1222_v55  ;;  %v916_v39 = vadd.f32 %v915_v37, %v914_v36  ;;  %v715_v57 = vpop.f32.mrb[24].mxu1 }
 0x116   : > { %v988_v58 = vpop.f32.mrb[25].mxu1 }
 0x117   : > { %v692_v40 = vadd.f32 %v691_v14, %v587_v38  ;;  %v590_v41 = vadd.f32 %v916_v39, %v1222_v55  ;;  %v718_v61 = vpop.f32.mrb[26].mxu1 }
 0x118   : > { %v989_v63 = vpop.f32.mrb[27].mxu1 }
 0x119   : > { %745 = vst.msk [vmem:[%s1229_s8 + $0x30] sm:$0xff] %vm738_vm2, %v692_v40  ;;  %v695_v44 = vadd.f32 %v694_v18, %v590_v41  ;;  %v917_v45 = vpop.f32.mrb[16].mxu0 }
 0x11a   : > { %v918_v47 = vpop.f32.mrb[17].mxu0 }
 0x11b   : > { %746 = vst.msk [vmem:[%s1229_s8 + $0x38] sm:$0xff] %vm738_vm2, %v695_v44  ;;  %v919_v49 = vadd.f32 %v918_v47, %v917_v45  ;;  %v920_v50 = vpop.f32.mrb[18].mxu0 }
 0x11c   : > { %v921_v51 = vpop.f32.mrb[19].mxu0 }
 0x11d   : > { %v595_v52 = vadd.f32 %v919_v49, %v1222_v55  ;;  %v922_v53 = vadd.f32 %v921_v51, %v920_v50  ;;  %v723_v7 = vpop.f32.mrb[28].mxu1 }
 0x11e   : > { %v992_v8 = vpop.f32.mrb[29].mxu1 }
 0x11f   : > { %v700_v54 = vadd.f32 %v699_v28, %v595_v52  ;;  %v598_v56 = vadd.f32 %v922_v53, %v1222_v55  ;;  %v726_v11 = vpop.f32.mrb[30].mxu1 }
 0x120   : > { %v993_v13 = vpop.f32.mrb[31].mxu1 }
 0x121   : > { %747 = vst.msk [vmem:[%s1229_s8 + $0x40] sm:$0xff] %vm738_vm2, %v700_v54  ;;  %v703_v59 = vadd.f32 %v702_v32, %v598_v56  ;;  %v923_v60 = vpop.f32.mrb[20].mxu0 }
 0x122   : > { %v924_v62 = vpop.f32.mrb[21].mxu0 }
 0x123   : > { %748 = vst.msk [vmem:[%s1229_s8 + $0x48] sm:$0xff] %vm738_vm2, %v703_v59  ;;  %v925_v0 = vadd.f32 %v924_v62, %v923_v60  ;;  %v926_v1 = vpop.f32.mrb[22].mxu0 }
 0x124   : > { %v927_v2 = vpop.f32.mrb[23].mxu0 }
 0x125   : > { %v603_v3 = vadd.f32 %v925_v0, %v1222_v55  ;;  %v928_v4 = vadd.f32 %v927_v2, %v926_v1  ;;  %v731_v21 = vpop.f32.mrb[32].mxu1 }
 0x126   : > { %v996_v22 = vpop.f32.mrb[33].mxu1 }
 0x127   : > { %v708_v5 = vadd.f32 %v707_v42, %v603_v3  ;;  %v606_v6 = vadd.f32 %v928_v4, %v1222_v55  ;;  %v734_v25 = vpop.f32.mrb[34].mxu1 }
 0x128   : > { %v997_v27 = vpop.f32.mrb[35].mxu1 }
 0x129   : > { %749 = vst.msk [vmem:[%s1229_s8 + $0x50] sm:$0xff] %vm738_vm2, %v708_v5  ;;  %v711_v9 = vadd.f32 %v710_v46, %v606_v6  ;;  %v929_v10 = vpop.f32.mrb[24].mxu0 }
 0x12a   : > { %v930_v12 = vpop.f32.mrb[25].mxu0 }
 0x12b   : > { %750 = vst.msk [vmem:[%s1229_s8 + $0x58] sm:$0xff] %vm738_vm2, %v711_v9  ;;  %v931_v14 = vadd.f32 %v930_v12, %v929_v10  ;;  %v932_v15 = vpop.f32.mrb[26].mxu0 }
 0x12c   : > { %v933_v16 = vpop.f32.mrb[27].mxu0 }
 0x12d   : > { %v611_v17 = vadd.f32 %v931_v14, %v1222_v55  ;;  %v934_v18 = vadd.f32 %v933_v16, %v932_v15 }
 0x12f   : > { %v716_v19 = vadd.f32 %v715_v57, %v611_v17  ;;  %v614_v20 = vadd.f32 %v934_v18, %v1222_v55 }
 0x131   : > { %751 = vst.msk [vmem:[%s1229_s8 + $0x60] sm:$0xff] %vm738_vm2, %v716_v19  ;;  %v719_v23 = vadd.f32 %v718_v61, %v614_v20  ;;  %v935_v24 = vpop.f32.mrb[28].mxu0 }
 0x132   : > { %v936_v26 = vpop.f32.mrb[29].mxu0 }
 0x133   : > { %752 = vst.msk [vmem:[%s1229_s8 + $0x68] sm:$0xff] %vm738_vm2, %v719_v23  ;;  %v937_v28 = vadd.f32 %v936_v26, %v935_v24  ;;  %v938_v29 = vpop.f32.mrb[30].mxu0 }
 0x134   : > { %v939_v30 = vpop.f32.mrb[31].mxu0 }
 0x135   : > { %v619_v31 = vadd.f32 %v937_v28, %v1222_v55  ;;  %v940_v32 = vadd.f32 %v939_v30, %v938_v29 }
 0x137   : > { %v724_v33 = vadd.f32 %v723_v7, %v619_v31  ;;  %v622_v34 = vadd.f32 %v940_v32, %v1222_v55 }
 0x139   : > { %753 = vst.msk [vmem:[%s1229_s8 + $0x70] sm:$0xff] %vm738_vm2, %v724_v33  ;;  %v727_v35 = vadd.f32 %v726_v11, %v622_v34  ;;  %v941_v36 = vpop.f32.mrb[32].mxu0 }
 0x13a   : > { %v942_v37 = vpop.f32.mrb[33].mxu0 }
 0x13b   : > { %754 = vst.msk [vmem:[%s1229_s8 + $0x78] sm:$0xff] %vm738_vm2, %v727_v35  ;;  %v943_v38 = vadd.f32 %v942_v37, %v941_v36  ;;  %v944_v39 = vpop.f32.mrb[34].mxu0 }
 0x13c   : > { %v945_v40 = vpop.f32.mrb[35].mxu0 }
 0x13d   : > { %v627_v41 = vadd.f32 %v943_v38, %v1222_v55  ;;  %v946_v42 = vadd.f32 %v945_v40, %v944_v39 }
 0x13f   : > { %v732_v43 = vadd.f32 %v731_v21, %v627_v41  ;;  %v630_v44 = vadd.f32 %v946_v42, %v1222_v55 }
 0x141   : > { %755 = vst.msk [vmem:[%s1229_s8 + $0x80] sm:$0xff] %vm738_vm2, %v732_v43  ;;  %v735_v45 = vadd.f32 %v734_v25, %v630_v44 }
 0x143   : > { %756 = vst.msk [vmem:[%s1229_s8 + $0x88] sm:$0xff] %vm738_vm2, %v735_v45 }
 0x144 PF: > { %s13_s12 = sadd.s32 1, %s1069_s12  }
 0x145   : > { %p10_p4 = scmp.ge.s32.totalorder %s13_s12, 4  }
 0x147   :  { %12 = sbr.rel (!%p10_p4) target bundleno = 1 (0x1), region = 62 }

</bundles_post_ra>
